<compile_context>
chip_gen: v7x
topology: tpu7x:2x2x1
jax: 0.10.0
libtpu: 0.0.40
codegen_flags: <defaults>
</compile_context>

<pallas_src>
import jax
import jax.numpy as jnp
from jax import lax
from jax.experimental import pallas as pl
from jax.experimental.pallas import tpu as pltpu


def _round_up(v, m):
    return -(-v // m) * m


# Kernel gate order (i, f, o, g); torch order is (i, f, g, o).
_GATE_PERM = (0, 1, 3, 2)   # kernel slot -> torch gate index


# ----------------------------------------------------------------------------
# Fused Pallas kernel: all LSTM layers + final Linear, time-chunked
# ----------------------------------------------------------------------------
def _make_disc_kernel(num_layers, T, CT, BT, Ep, Hp, n_chunks, gate_bf16):
    """One batch tile of BT sequences, processed CT timesteps per grid step."""
    G = 4 * Hp
    has_pad = (n_chunks * CT) != T          # padded timesteps exist after t = T-1
    unroll = True if CT <= 8 else 4         # partial unroll: vreg pressure vs. LLO visibility

    def kernel(x_ref, w_ih0_ref, w_ihr_ref, w_hh_ref, b_ref, wlin_ref, blin_ref,
               out_ref, seq_scr, gates_scr, h_scr, c_scr, hlast_scr):
        # x_ref    : [CT*BT, Ep]            bf16  embedded input chunk (time-major in tile)
        # w_ih0_ref: [Ep, 4Hp]              bf16  layer-0 input->gates (transposed, gate-padded)
        # w_ihr_ref: [max(L-1,1), Hp, 4Hp]  bf16  layers 1.. input->gates
        # w_hh_ref : [L, Hp, 4Hp]           bf16  hidden->gates
        # b_ref    : [L, 1, 4Hp]            f32   b_ih + b_hh
        # wlin_ref : [Hp, 1] bf16, blin_ref: [1, 1] f32
        # out_ref  : [BT, 1] f32
        # seq_scr  : [CT*BT, Hp]  bf16   current layer's chunk output (next layer's input)
        # gates_scr: [CT*BT, 4Hp] bf16   precomputed input-projection gates for the chunk
        # h_scr    : [L, BT, Hp]  bf16   recurrent h per layer (carried across chunks)
        # c_scr    : [L, BT, Hp]  f32    recurrent c per layer (carried across chunks)
        # hlast_scr: [BT, Hp]     bf16   h of last layer at t = T-1 (only used when has_pad)
        chunk = pl.program_id(1)

        @pl.when(chunk == 0)
        def _init():
            h_scr[...] = jnp.zeros_like(h_scr)
            c_scr[...] = jnp.zeros_like(c_scr)
            hlast_scr[...] = jnp.zeros_like(hlast_scr)

        for layer in range(num_layers):                 # static unroll, L is small
            last = layer == num_layers - 1

            # ---- input projection for the WHOLE chunk: one big MXU matmul ----
            if layer == 0:
                proj = jnp.dot(x_ref[...], w_ih0_ref[...],
                               preferred_element_type=jnp.float32)
            else:
                proj = jnp.dot(seq_scr[...], w_ihr_ref[layer - 1],
                               preferred_element_type=jnp.float32)
            gates_scr[...] = (proj + b_ref[layer]).astype(jnp.bfloat16)

            # ---- serial recurrence: only h @ W_hh per timestep ----
            # TODO(synk): hold W_hh[layer] in MXU weight-staging registers across the CT
            # steps (pltpu.matmul_push_rhs / matmul_acc_lhs / matmul_pop) if the bundle
            # dump shows Mosaic re-pushing the identical RHS every iteration.
            def step(t, carry, layer=layer, last=last):
                row = pl.multiple_of(t * BT, BT)
                h_prev = h_scr[layer]                            # bf16 [BT, Hp]
                g = gates_scr[pl.ds(row, BT), :] + jnp.dot(
                    h_prev, w_hh_ref[layer],
                    preferred_element_type=jnp.float32)          # f32 [BT, 4Hp]
                act = g.astype(jnp.bfloat16) if gate_bf16 else g
                sig = jax.nn.sigmoid(act[:, 0:3 * Hp])           # contiguous i, f, o slab
                i_g = sig[:, 0 * Hp:1 * Hp]
                f_g = sig[:, 1 * Hp:2 * Hp]
                o_g = sig[:, 2 * Hp:3 * Hp]
                g_g = jnp.tanh(act[:, 3 * Hp:4 * Hp])
                c_new = (f_g.astype(jnp.float32) * c_scr[layer]
                         + (i_g * g_g).astype(jnp.float32))      # c stays f32
                h_new = (o_g.astype(jnp.float32)
                         * jnp.tanh(c_new)).astype(jnp.bfloat16)
                c_scr[layer] = c_new
                h_scr[layer] = h_new
                if not last:              # last layer: only h at t = T-1 is needed
                    seq_scr[pl.ds(row, BT), :] = h_new
                elif has_pad:
                    # Padded timesteps (t >= T) run past the real sequence end; capture
                    # the real last hidden state when we pass it.
                    take = (chunk * CT + t) == (T - 1)
                    hlast_scr[...] = jnp.where(take, h_new, hlast_scr[...])
                return carry

            lax.fori_loop(0, CT, step, 0, unroll=unroll)

        # ---- final Linear on h at t = T-1 of the last layer (written once) ----
        @pl.when(chunk == n_chunks - 1)
        def _final():
            h_fin = hlast_scr[...] if has_pad else h_scr[num_layers - 1]
            out_ref[...] = (
                jnp.dot(h_fin, wlin_ref[...], preferred_element_type=jnp.float32)
                + blin_ref[...]
            )

    return kernel


def _disc_pallas(x, w_ih0, w_ihr, w_hh, bias, wlin, blin, *,
                 batch_tile, chunk_steps, seq_len, gate_bf16):
    nbt, TPB, Ep = x.shape
    L, Hp, G = w_hh.shape
    BT = batch_tile
    CT = chunk_steps
    n_chunks = TPB // (CT * BT)
    Bp = nbt * BT
    T = seq_len

    kernel = _make_disc_kernel(L, T, CT, BT, Ep, Hp, n_chunks, gate_bf16)

    # VMEM budget: double-buffered chunk of x + (double-buffered) weights + scratch + out.
    est = (
        2 * CT * BT * Ep * 2                                           # x chunk (bf16, 2 bufs)
        + 2 * 2 * (Ep * G + w_ihr.shape[0] * Hp * G + L * Hp * G)      # bf16 weights, 2 bufs
        + 2 * (4 * L * G + 2 * Hp + 4)                                 # bias f32, wlin bf16, blin
        + CT * BT * Hp * 2 + CT * BT * G * 2                           # seq / gates scratch
        + L * BT * Hp * (2 + 4) + BT * Hp * 2                          # h / c / hlast scratch
        + 2 * BT * 4                                                   # output tile
    )
    try:
        cap = pltpu.get_tpu_info().vmem_capacity_bytes                 # generation-aware
    except Exception:
        cap = 64 << 20
    vmem_limit = int(min(max(int(1.25 * est) + (2 << 20), 16 << 20), int(0.9 * cap)))

    grid_spec = pltpu.PrefetchScalarGridSpec(
        num_scalar_prefetch=0,
        grid=(nbt, n_chunks),
        in_specs=[
            pl.BlockSpec((None, CT * BT, Ep), lambda b, c: (b, c, 0)),   # x: one time chunk
            pl.BlockSpec(w_ih0.shape, lambda b, c: (0, 0)),
            pl.BlockSpec(w_ihr.shape, lambda b, c: (0, 0, 0)),
            pl.BlockSpec(w_hh.shape, lambda b, c: (0, 0, 0)),
            pl.BlockSpec(bias.shape, lambda b, c: (0, 0, 0)),
            pl.BlockSpec(wlin.shape, lambda b, c: (0, 0)),
            pl.BlockSpec(blin.shape, lambda b, c: (0, 0)),
        ],
        out_specs=pl.BlockSpec((BT, 1), lambda b, c: (b, 0)),
        scratch_shapes=[
            pltpu.VMEM((CT * BT, Hp), jnp.bfloat16),   # layer output chunk
            pltpu.VMEM((CT * BT, G), jnp.bfloat16),    # precomputed input-projection gates
            pltpu.VMEM((L, BT, Hp), jnp.bfloat16),     # h per layer
            pltpu.VMEM((L, BT, Hp), jnp.float32),      # c per layer
            pltpu.VMEM((BT, Hp), jnp.bfloat16),        # h at t = T-1 (used when T % CT != 0)
        ],
    )
    return pl.pallas_call(
        kernel,
        out_shape=jax.ShapeDtypeStruct((Bp, 1), jnp.float32),
        grid_spec=grid_spec,
        compiler_params=pltpu.CompilerParams(
            dimension_semantics=("parallel", "arbitrary"),
            vmem_limit_bytes=vmem_limit,
        ),
    )(x, w_ih0, w_ihr, w_hh, bias, wlin, blin)


# ----------------------------------------------------------------------------
# Weight preparation (pad to tile-friendly sizes, transpose, reorder gates, cast)
# ----------------------------------------------------------------------------
def _prep_gate_matrix(w, in_pad, H, Hp):
    """[4H, in_dim] (torch layout) -> [in_pad, 4*Hp] transposed, gates reordered (i,f,o,g)."""
    in_dim = w.shape[1]
    out = jnp.zeros((in_pad, 4 * Hp), jnp.float32)
    for slot, src in enumerate(_GATE_PERM):
        out = out.at[:in_dim, slot * Hp:slot * Hp + H].set(w[src * H:(src + 1) * H, :].T)
    return out


def _prep_gate_bias(b, H, Hp):
    out = jnp.zeros((4 * Hp,), jnp.float32)
    for slot, src in enumerate(_GATE_PERM):
        out = out.at[slot * Hp:slot * Hp + H].set(b[src * H:(src + 1) * H])
    return out


# ----------------------------------------------------------------------------
# Parameters (deterministic, matching nn.Module shapes / torch layout)
# ----------------------------------------------------------------------------
def init_params(key, hidden_size, num_layers, embedding_size, embedding_dim):
    keys = jax.random.split(key, 1 + 4 * num_layers + 2)
    k = iter(keys)

    # nn.Embedding(embedding_size, embedding_dim, padding_idx=0) followed by
    # nn.init.xavier_uniform_ over the WHOLE table -> row 0 is nonzero (faithful port).
    bound = (6.0 / (embedding_size + embedding_dim)) ** 0.5
    emb = jax.random.uniform(next(k), (embedding_size, embedding_dim),
                             jnp.float32, -bound, bound)

    # nn.LSTM default init U(-1/sqrt(H), 1/sqrt(H)); torch gate order i, f, g, o.
    s = 1.0 / (hidden_size ** 0.5)
    layers = []
    for layer in range(num_layers):
        in_dim = embedding_dim if layer == 0 else hidden_size
        layers.append(dict(
            w_ih=jax.random.uniform(next(k), (4 * hidden_size, in_dim), jnp.float32, -s, s),
            w_hh=jax.random.uniform(next(k), (4 * hidden_size, hidden_size), jnp.float32, -s, s),
            b_ih=jax.random.uniform(next(k), (4 * hidden_size,), jnp.float32, -s, s),
            b_hh=jax.random.uniform(next(k), (4 * hidden_size,), jnp.float32, -s, s),
        ))

    # nn.Linear(hidden_size, 1)
    lin_w = jax.random.uniform(next(k), (1, hidden_size), jnp.float32, -s, s)
    lin_b = jax.random.uniform(next(k), (1,), jnp.float32, -s, s)
    return dict(embedding=emb, layers=layers, lin_w=lin_w, lin_b=lin_b)


# ----------------------------------------------------------------------------
# Forward (mirrors Discriminator.forward)
# ----------------------------------------------------------------------------
@jax.jit
def discriminator_forward(params, tokens):
    """tokens: [B, T] int -> [B, 1] f32."""
    B, T = tokens.shape
    emb = params["embedding"]
    V, E = emb.shape
    layers = params["layers"]
    L = len(layers)
    H = layers[0]["w_hh"].shape[1]

    # Tile-friendly padded sizes.
    Hp = _round_up(H, 128)            # per-gate width, lane aligned
    Ep = _round_up(E, 128)            # embedding dim, lane aligned

    # Generation-aware knobs (trace-time constants).
    kind = ""
    try:
        kind = jax.devices()[0].device_kind.lower()
    except Exception:
        pass
    gate_bf16 = ("v6" in kind) or ("v7" in kind)   # bf16 VPU/EUP only on v6e/v7x
    multi_tc = "v7" in kind                        # v7x: 2 TensorCores per chip

    if "v6" in kind and B >= 256:
        max_bt = 256                  # fill the 256-wide MXU M dimension
    elif "v7" in kind and B >= 1024:
        max_bt = 256                  # only when >= 2 tiles per TC remain
    else:
        max_bt = 128

    B16 = _round_up(B, 16)            # batch, sublane aligned for bf16
    if B16 > max_bt:
        BT = max_bt
    elif multi_tc and B16 >= 32:
        BT = _round_up(B16 // 2, 16)  # guarantee >= 2 batch tiles so both v7x TCs get work
    else:
        BT = B16
    Bp = _round_up(B16, BT)
    nbt = Bp // BT

    # Time chunking: bounds VMEM to O(CT) instead of O(T).
    CT = T if T <= 64 else 64
    n_chunks = -(-T // CT)
    Tp = n_chunks * CT

    # Embedding lookup, gathered directly into time-major-within-tile layout:
    # x[tile, t*BT + b_local, :] = emb[tokens[tile*BT + b_local, t]]
    # TODO(synk): fuse this gather into the kernel (scalar-prefetch token ids, keep the
    # padded table in HBM via memory_space=pl.ANY, DMA-gather rows per time chunk) to
    # avoid a full HBM write+read of the embedded sequence.
    emb_p = jnp.zeros((V, Ep), jnp.float32).at[:, :E].set(emb)
    tok_p = jnp.zeros((Bp, Tp), jnp.int32).at[:B, :T].set(tokens.astype(jnp.int32))
    tok_tiles = tok_p.reshape(nbt, BT, Tp).transpose(0, 2, 1)          # [nbt, Tp, BT]
    x = emb_p[tok_tiles].reshape(nbt, Tp * BT, Ep).astype(jnp.bfloat16)

    # Pad / transpose / reorder / cast weights for the kernel.
    w_ih0 = _prep_gate_matrix(layers[0]["w_ih"], Ep, H, Hp).astype(jnp.bfloat16)
    if L > 1:
        w_ihr = jnp.stack(
            [_prep_gate_matrix(layers[l]["w_ih"], Hp, H, Hp) for l in range(1, L)]
        ).astype(jnp.bfloat16)
    else:
        w_ihr = jnp.zeros((1, Hp, 4 * Hp), jnp.bfloat16)               # unused placeholder
    w_hh = jnp.stack(
        [_prep_gate_matrix(l["w_hh"], Hp, H, Hp) for l in layers]
    ).astype(jnp.bfloat16)
    bias = jnp.stack(
        [_prep_gate_bias(l["b_ih"] + l["b_hh"], H, Hp)[None, :] for l in layers]
    )                                                                  # [L, 1, 4Hp] f32
    wlin = (jnp.zeros((Hp, 1), jnp.float32).at[:H, :].set(params["lin_w"].T)
            .astype(jnp.bfloat16))
    blin = params["lin_b"].reshape(1, 1).astype(jnp.float32)

    out_p = _disc_pallas(x, w_ih0, w_ihr, w_hh, bias, wlin, blin,
                         batch_tile=BT, chunk_steps=CT, seq_len=T,
                         gate_bf16=gate_bf16)
    return out_p[:B]   # drop padded batch rows (do not remove)


# ----------------------------------------------------------------------------
# Pure-JAX reference (bf16 matmul operands, f32 gate math) for sanity checking
# ----------------------------------------------------------------------------
def _reference_forward(params, tokens):
    def mm(a, bm):
        return jnp.dot(a.astype(jnp.bfloat16), bm.astype(jnp.bfloat16),
                       preferred_element_type=jnp.float32)

    x = params["embedding"][tokens].astype(jnp.float32)   # [B, T, E]
    B = x.shape[0]
    for layer in params["layers"]:
        H = layer["w_hh"].shape[1]
        w_ih_t = layer["w_ih"].T
        w_hh_t = layer["w_hh"].T
        b = (layer["b_ih"] + layer["b_hh"])[None, :]
        h0 = jnp.zeros((B, H), jnp.float32)
        c0 = jnp.zeros((B, H), jnp.float32)

        def step(carry, x_t, w_ih_t=w_ih_t, w_hh_t=w_hh_t, b=b, H=H):
            h, c = carry
            g = mm(x_t, w_ih_t) + mm(h, w_hh_t) + b
            i = jax.nn.sigmoid(g[:, 0 * H:1 * H])
            f = jax.nn.sigmoid(g[:, 1 * H:2 * H])
            gg = jnp.tanh(g[:, 2 * H:3 * H])
            o = jax.nn.sigmoid(g[:, 3 * H:4 * H])
            c = f * c + i * gg
            h = o * jnp.tanh(c)
            return (h, c), h

        _, hs = lax.scan(step, (h0, c0), jnp.transpose(x, (1, 0, 2)))
        x = jnp.transpose(hs, (1, 0, 2))
    return x[:, -1, :] @ params["lin_w"].T + params["lin_b"][None, :]


if __name__ == "__main__":
    batch, seq = 2, 8
    hidden_size, num_layers = 32, 2
    embedding_size, embedding_dim = 16, 32

    key = jax.random.PRNGKey(0)
    k_params, k_tok = jax.random.split(key)
    params = init_params(k_params, hidden_size, num_layers, embedding_size, embedding_dim)
    tokens = jax.random.randint(k_tok, (batch, seq), 0, embedding_size, dtype=jnp.int32)

    out = jax.block_until_ready(discriminator_forward(params, tokens))
    assert out.shape == (batch, 1), out.shape

    ref = jax.block_until_ready(_reference_forward(params, tokens))
    # Tolerance accounts for bf16 gate storage (and bf16 gate math on v6e/v7x).
    assert jnp.allclose(out, ref, atol=3e-2, rtol=3e-2), (out, ref)

    print("KERNEL_OK")
</pallas_src>

<mosaic_0001>
module attributes {stable_mosaic.version = 11 : i64} {
  func.func @kernel(%arg0: i32, %arg1: i32, %arg2: memref<1x128x128xbf16, #tpu.memory_space<vmem>>, %arg3: memref<128x512xbf16, #tpu.memory_space<vmem>>, %arg4: memref<1x128x512xbf16, #tpu.memory_space<vmem>>, %arg5: memref<2x128x512xbf16, #tpu.memory_space<vmem>>, %arg6: memref<2x1x512xf32, #tpu.memory_space<vmem>>, %arg7: memref<128x1xbf16, #tpu.memory_space<vmem>>, %arg8: memref<1x1xf32, #tpu.memory_space<vmem>>, %arg9: memref<16x1xf32, #tpu.memory_space<vmem>>, %arg10: memref<128x128xbf16, #tpu.memory_space<vmem>>, %arg11: memref<128x512xbf16, #tpu.memory_space<vmem>>, %arg12: memref<2x16x128xbf16, #tpu.memory_space<vmem>>, %arg13: memref<2x16x128xf32, #tpu.memory_space<vmem>>, %arg14: memref<16x128xbf16, #tpu.memory_space<vmem>>) attributes {dimension_semantics = [#tpu.dimension_semantics<parallel>, #tpu.dimension_semantics<arbitrary>], iteration_bounds = array<i64: 1, 1>, scalar_prefetch = 0 : i64, scratch_operands = 5 : i64, tpu.core_type = #tpu.core_type<tc>, window_params = [{transform_indices = @transform_0, window_bounds = array<i64: 1, 128, 128>}, {pipeline_mode = #tpu.pipeline_mode<synchronous>, transform_indices = @transform_1, window_bounds = array<i64: 128, 512>}, {pipeline_mode = #tpu.pipeline_mode<synchronous>, transform_indices = @transform_2, window_bounds = array<i64: 1, 128, 512>}, {pipeline_mode = #tpu.pipeline_mode<synchronous>, transform_indices = @transform_3, window_bounds = array<i64: 2, 128, 512>}, {pipeline_mode = #tpu.pipeline_mode<synchronous>, transform_indices = @transform_4, window_bounds = array<i64: 2, 1, 512>}, {pipeline_mode = #tpu.pipeline_mode<synchronous>, transform_indices = @transform_5, window_bounds = array<i64: 128, 1>}, {pipeline_mode = #tpu.pipeline_mode<synchronous>, transform_indices = @transform_6, window_bounds = array<i64: 1, 1>}, {transform_indices = @transform_7, window_bounds = array<i64: 16, 1>}]} {
    %c0_i32 = arith.constant 0 : i32
    %0 = arith.cmpi eq, %arg1, %c0_i32 : i32
    %1 = arith.extui %0 : i1 to i32
    %c0_i32_0 = arith.constant 0 : i32
    %2 = arith.cmpi ne, %1, %c0_i32_0 : i32
    scf.if %2 {
      %cst_343 = arith.constant 0.000000e+00 : bf16
      %618 = vector.broadcast %cst_343 : bf16 to vector<2x16x128xbf16>
      %c0_344 = arith.constant 0 : index
      %c0_345 = arith.constant 0 : index
      %c0_346 = arith.constant 0 : index
      %619 = vector.load %arg12[%c0_344, %c0_345, %c0_346] : memref<2x16x128xbf16, #tpu.memory_space<vmem>>, vector<2x16x128xbf16>
      tpu.vector_store %arg12[%c0_344, %c0_345, %c0_346], %618 {strides = array<i32>} : memref<2x16x128xbf16, #tpu.memory_space<vmem>>, vector<2x16x128xbf16>,
      %cst_347 = arith.constant 0.000000e+00 : f32
      %620 = vector.broadcast %cst_347 : f32 to vector<2x16x128xf32>
      %c0_348 = arith.constant 0 : index
      %c0_349 = arith.constant 0 : index
      %c0_350 = arith.constant 0 : index
      %621 = vector.load %arg13[%c0_348, %c0_349, %c0_350] : memref<2x16x128xf32, #tpu.memory_space<vmem>>, vector<2x16x128xf32>
      tpu.vector_store %arg13[%c0_348, %c0_349, %c0_350], %620 {strides = array<i32>} : memref<2x16x128xf32, #tpu.memory_space<vmem>>, vector<2x16x128xf32>,
      %cst_351 = arith.constant 0.000000e+00 : bf16
      %622 = vector.broadcast %cst_351 : bf16 to vector<16x128xbf16>
      %c0_352 = arith.constant 0 : index
      %c0_353 = arith.constant 0 : index
      %623 = vector.load %arg14[%c0_352, %c0_353] : memref<16x128xbf16, #tpu.memory_space<vmem>>, vector<16x128xbf16>
      tpu.vector_store %arg14[%c0_352, %c0_353], %622 {strides = array<i32>} : memref<16x128xbf16, #tpu.memory_space<vmem>>, vector<16x128xbf16>,
    } else {
    }
    %c0 = arith.constant 0 : index
    %c0_1 = arith.constant 0 : index
    %c0_2 = arith.constant 0 : index
    %3 = vector.load %arg2[%c0, %c0_1, %c0_2] : memref<1x128x128xbf16, #tpu.memory_space<vmem>>, vector<1x128x128xbf16>
    %4 = vector.shape_cast %3 : vector<1x128x128xbf16> to vector<128x128xbf16>
    %c0_3 = arith.constant 0 : index
    %c0_4 = arith.constant 0 : index
    %5 = vector.load %arg3[%c0_3, %c0_4] : memref<128x512xbf16, #tpu.memory_space<vmem>>, vector<128x512xbf16>
    %cst = arith.constant dense<0.000000e+00> : vector<128x512xf32>
    %6 = tpu.matmul %4, %5, %cst {dimension_numbers = #tpu.dot_dimension_numbers<[1], [0], [0], [1], [0, 0, 1, 1], [], []>} : vector<128x128xbf16>, vector<128x512xbf16>, vector<128x512xf32> -> vector<128x512xf32>
    %c0_5 = arith.constant 0 : index
    %c0_6 = arith.constant 0 : index
    %c0_7 = arith.constant 0 : index
    %7 = vector.load %arg6[%c0_5, %c0_6, %c0_7] : memref<2x1x512xf32, #tpu.memory_space<vmem>>, vector<1x1x512xf32>
    %8 = vector.shape_cast %7 : vector<1x1x512xf32> to vector<1x512xf32>
    %9 = vector.broadcast %8 : vector<1x512xf32> to vector<128x512xf32>
    %10 = arith.addf %6, %9 : vector<128x512xf32>
    %11 = arith.truncf %10 : vector<128x512xf32> to vector<128x512xbf16>
    %c0_8 = arith.constant 0 : index
    %c0_9 = arith.constant 0 : index
    %12 = vector.load %arg11[%c0_8, %c0_9] : memref<128x512xbf16, #tpu.memory_space<vmem>>, vector<128x512xbf16>
    tpu.vector_store %arg11[%c0_8, %c0_9], %11 {strides = array<i32>} : memref<128x512xbf16, #tpu.memory_space<vmem>>, vector<128x512xbf16>,
    %c0_i32_10 = arith.constant 0 : i32
    %c16_i32 = arith.constant 16 : i32
    %13 = arith.muli %c0_i32_10, %c16_i32 : i32
    %14 = tpu.assume_multiple %13, 16 : i32
    %c0_11 = arith.constant 0 : index
    %c0_12 = arith.constant 0 : index
    %c0_13 = arith.constant 0 : index
    %15 = vector.load %arg12[%c0_11, %c0_12, %c0_13] : memref<2x16x128xbf16, #tpu.memory_space<vmem>>, vector<1x16x128xbf16>
    %16 = vector.shape_cast %15 : vector<1x16x128xbf16> to vector<16x128xbf16>
    %17 = arith.index_cast %14 : i32 to index
    %c0_14 = arith.constant 0 : index
    %18 = vector.load %arg11[%17, %c0_14] : memref<128x512xbf16, #tpu.memory_space<vmem>>, vector<16x512xbf16>
    %c0_15 = arith.constant 0 : index
    %c0_16 = arith.constant 0 : index
    %c0_17 = arith.constant 0 : index
    %19 = vector.load %arg5[%c0_15, %c0_16, %c0_17] : memref<2x128x512xbf16, #tpu.memory_space<vmem>>, vector<1x128x512xbf16>
    %20 = vector.shape_cast %19 : vector<1x128x512xbf16> to vector<128x512xbf16>
    %cst_18 = arith.constant dense<0.000000e+00> : vector<16x512xf32>
    %21 = tpu.matmul %16, %20, %cst_18 {dimension_numbers = #tpu.dot_dimension_numbers<[1], [0], [0], [1], [0, 0, 1, 1], [], []>} : vector<16x128xbf16>, vector<128x512xbf16>, vector<16x512xf32> -> vector<16x512xf32>
    %22 = arith.extf %18 : vector<16x512xbf16> to vector<16x512xf32>
    %23 = arith.addf %22, %21 : vector<16x512xf32>
    %24 = vector.extract_strided_slice %23 {offsets = [0, 0], sizes = [16, 384], strides = [1, 1]} : vector<16x512xf32> to vector<16x384xf32>
    %25 = arith.negf %24 : vector<16x384xf32>
    %26 = math.exp %25 : vector<16x384xf32>
    %cst_19 = arith.constant 1.000000e+00 : f32
    %27 = vector.broadcast %cst_19 : f32 to vector<16x384xf32>
    %28 = arith.addf %27, %26 : vector<16x384xf32>
    %29 = arith.divf %27, %28 : vector<16x384xf32>
    %30 = vector.extract_strided_slice %29 {offsets = [0, 0], sizes = [16, 128], strides = [1, 1]} : vector<16x384xf32> to vector<16x128xf32>
    %31 = vector.extract_strided_slice %29 {offsets = [0, 128], sizes = [16, 128], strides = [1, 1]} : vector<16x384xf32> to vector<16x128xf32>
    %32 = vector.extract_strided_slice %29 {offsets = [0, 256], sizes = [16, 128], strides = [1, 1]} : vector<16x384xf32> to vector<16x128xf32>
    %33 = vector.extract_strided_slice %23 {offsets = [0, 384], sizes = [16, 128], strides = [1, 1]} : vector<16x512xf32> to vector<16x128xf32>
    %34 = math.tanh %33 : vector<16x128xf32>
    %c0_20 = arith.constant 0 : index
    %c0_21 = arith.constant 0 : index
    %c0_22 = arith.constant 0 : index
    %35 = vector.load %arg13[%c0_20, %c0_21, %c0_22] : memref<2x16x128xf32, #tpu.memory_space<vmem>>, vector<1x16x128xf32>
    %36 = vector.shape_cast %35 : vector<1x16x128xf32> to vector<16x128xf32>
    %37 = arith.mulf %31, %36 : vector<16x128xf32>
    %38 = arith.mulf %30, %34 : vector<16x128xf32>
    %39 = arith.addf %37, %38 : vector<16x128xf32>
    %40 = math.tanh %39 : vector<16x128xf32>
    %41 = arith.mulf %32, %40 : vector<16x128xf32>
    %42 = arith.truncf %41 : vector<16x128xf32> to vector<16x128xbf16>
    %c0_23 = arith.constant 0 : index
    %c0_24 = arith.constant 0 : index
    %c0_25 = arith.constant 0 : index
    %43 = vector.load %arg13[%c0_23, %c0_24, %c0_25] : memref<2x16x128xf32, #tpu.memory_space<vmem>>, vector<1x16x128xf32>
    %44 = vector.shape_cast %43 : vector<1x16x128xf32> to vector<16x128xf32>
    %45 = vector.shape_cast %39 : vector<16x128xf32> to vector<1x16x128xf32>
    tpu.vector_store %arg13[%c0_23, %c0_24, %c0_25], %45 {strides = array<i32>} : memref<2x16x128xf32, #tpu.memory_space<vmem>>, vector<1x16x128xf32>,
    %c0_26 = arith.constant 0 : index
    %c0_27 = arith.constant 0 : index
    %c0_28 = arith.constant 0 : index
    %46 = vector.load %arg12[%c0_26, %c0_27, %c0_28] : memref<2x16x128xbf16, #tpu.memory_space<vmem>>, vector<1x16x128xbf16>
    %47 = vector.shape_cast %46 : vector<1x16x128xbf16> to vector<16x128xbf16>
    %48 = vector.shape_cast %42 : vector<16x128xbf16> to vector<1x16x128xbf16>
    tpu.vector_store %arg12[%c0_26, %c0_27, %c0_28], %48 {strides = array<i32>} : memref<2x16x128xbf16, #tpu.memory_space<vmem>>, vector<1x16x128xbf16>,
    %49 = arith.index_cast %14 : i32 to index
    %c0_29 = arith.constant 0 : index
    %50 = vector.load %arg10[%49, %c0_29] : memref<128x128xbf16, #tpu.memory_space<vmem>>, vector<16x128xbf16>
    tpu.vector_store %arg10[%49, %c0_29], %42 {strides = array<i32>} : memref<128x128xbf16, #tpu.memory_space<vmem>>, vector<16x128xbf16>,
    %c1_i32 = arith.constant 1 : i32
    %c16_i32_30 = arith.constant 16 : i32
    %51 = arith.muli %c1_i32, %c16_i32_30 : i32
    %52 = tpu.assume_multiple %51, 16 : i32
    %c0_31 = arith.constant 0 : index
    %c0_32 = arith.constant 0 : index
    %c0_33 = arith.constant 0 : index
    %53 = vector.load %arg12[%c0_31, %c0_32, %c0_33] : memref<2x16x128xbf16, #tpu.memory_space<vmem>>, vector<1x16x128xbf16>
    %54 = vector.shape_cast %53 : vector<1x16x128xbf16> to vector<16x128xbf16>
    %55 = arith.index_cast %52 : i32 to index
    %c0_34 = arith.constant 0 : index
    %56 = vector.load %arg11[%55, %c0_34] : memref<128x512xbf16, #tpu.memory_space<vmem>>, vector<16x512xbf16>
    %c0_35 = arith.constant 0 : index
    %c0_36 = arith.constant 0 : index
    %c0_37 = arith.constant 0 : index
    %57 = vector.load %arg5[%c0_35, %c0_36, %c0_37] : memref<2x128x512xbf16, #tpu.memory_space<vmem>>, vector<1x128x512xbf16>
    %58 = vector.shape_cast %57 : vector<1x128x512xbf16> to vector<128x512xbf16>
    %cst_38 = arith.constant dense<0.000000e+00> : vector<16x512xf32>
    %59 = tpu.matmul %54, %58, %cst_38 {dimension_numbers = #tpu.dot_dimension_numbers<[1], [0], [0], [1], [0, 0, 1, 1], [], []>} : vector<16x128xbf16>, vector<128x512xbf16>, vector<16x512xf32> -> vector<16x512xf32>
    %60 = arith.extf %56 : vector<16x512xbf16> to vector<16x512xf32>
    %61 = arith.addf %60, %59 : vector<16x512xf32>
    %62 = vector.extract_strided_slice %61 {offsets = [0, 0], sizes = [16, 384], strides = [1, 1]} : vector<16x512xf32> to vector<16x384xf32>
    %63 = arith.negf %62 : vector<16x384xf32>
    %64 = math.exp %63 : vector<16x384xf32>
    %cst_39 = arith.constant 1.000000e+00 : f32
    %65 = vector.broadcast %cst_39 : f32 to vector<16x384xf32>
    %66 = arith.addf %65, %64 : vector<16x384xf32>
    %67 = arith.divf %65, %66 : vector<16x384xf32>
    %68 = vector.extract_strided_slice %67 {offsets = [0, 0], sizes = [16, 128], strides = [1, 1]} : vector<16x384xf32> to vector<16x128xf32>
    %69 = vector.extract_strided_slice %67 {offsets = [0, 128], sizes = [16, 128], strides = [1, 1]} : vector<16x384xf32> to vector<16x128xf32>
    %70 = vector.extract_strided_slice %67 {offsets = [0, 256], sizes = [16, 128], strides = [1, 1]} : vector<16x384xf32> to vector<16x128xf32>
    %71 = vector.extract_strided_slice %61 {offsets = [0, 384], sizes = [16, 128], strides = [1, 1]} : vector<16x512xf32> to vector<16x128xf32>
    %72 = math.tanh %71 : vector<16x128xf32>
    %c0_40 = arith.constant 0 : index
    %c0_41 = arith.constant 0 : index
    %c0_42 = arith.constant 0 : index
    %73 = vector.load %arg13[%c0_40, %c0_41, %c0_42] : memref<2x16x128xf32, #tpu.memory_space<vmem>>, vector<1x16x128xf32>
    %74 = vector.shape_cast %73 : vector<1x16x128xf32> to vector<16x128xf32>
    %75 = arith.mulf %69, %74 : vector<16x128xf32>
    %76 = arith.mulf %68, %72 : vector<16x128xf32>
    %77 = arith.addf %75, %76 : vector<16x128xf32>
    %78 = math.tanh %77 : vector<16x128xf32>
    %79 = arith.mulf %70, %78 : vector<16x128xf32>
    %80 = arith.truncf %79 : vector<16x128xf32> to vector<16x128xbf16>
    %c0_43 = arith.constant 0 : index
    %c0_44 = arith.constant 0 : index
    %c0_45 = arith.constant 0 : index
    %81 = vector.load %arg13[%c0_43, %c0_44, %c0_45] : memref<2x16x128xf32, #tpu.memory_space<vmem>>, vector<1x16x128xf32>
    %82 = vector.shape_cast %81 : vector<1x16x128xf32> to vector<16x128xf32>
    %83 = vector.shape_cast %77 : vector<16x128xf32> to vector<1x16x128xf32>
    tpu.vector_store %arg13[%c0_43, %c0_44, %c0_45], %83 {strides = array<i32>} : memref<2x16x128xf32, #tpu.memory_space<vmem>>, vector<1x16x128xf32>,
    %c0_46 = arith.constant 0 : index
    %c0_47 = arith.constant 0 : index
    %c0_48 = arith.constant 0 : index
    %84 = vector.load %arg12[%c0_46, %c0_47, %c0_48] : memref<2x16x128xbf16, #tpu.memory_space<vmem>>, vector<1x16x128xbf16>
    %85 = vector.shape_cast %84 : vector<1x16x128xbf16> to vector<16x128xbf16>
    %86 = vector.shape_cast %80 : vector<16x128xbf16> to vector<1x16x128xbf16>
    tpu.vector_store %arg12[%c0_46, %c0_47, %c0_48], %86 {strides = array<i32>} : memref<2x16x128xbf16, #tpu.memory_space<vmem>>, vector<1x16x128xbf16>,
    %87 = arith.index_cast %52 : i32 to index
    %c0_49 = arith.constant 0 : index
    %88 = vector.load %arg10[%87, %c0_49] : memref<128x128xbf16, #tpu.memory_space<vmem>>, vector<16x128xbf16>
    tpu.vector_store %arg10[%87, %c0_49], %80 {strides = array<i32>} : memref<128x128xbf16, #tpu.memory_space<vmem>>, vector<16x128xbf16>,
    %c2_i32 = arith.constant 2 : i32
    %c16_i32_50 = arith.constant 16 : i32
    %89 = arith.muli %c2_i32, %c16_i32_50 : i32
    %90 = tpu.assume_multiple %89, 16 : i32
    %c0_51 = arith.constant 0 : index
    %c0_52 = arith.constant 0 : index
    %c0_53 = arith.constant 0 : index
    %91 = vector.load %arg12[%c0_51, %c0_52, %c0_53] : memref<2x16x128xbf16, #tpu.memory_space<vmem>>, vector<1x16x128xbf16>
    %92 = vector.shape_cast %91 : vector<1x16x128xbf16> to vector<16x128xbf16>
    %93 = arith.index_cast %90 : i32 to index
    %c0_54 = arith.constant 0 : index
    %94 = vector.load %arg11[%93, %c0_54] : memref<128x512xbf16, #tpu.memory_space<vmem>>, vector<16x512xbf16>
    %c0_55 = arith.constant 0 : index
    %c0_56 = arith.constant 0 : index
    %c0_57 = arith.constant 0 : index
    %95 = vector.load %arg5[%c0_55, %c0_56, %c0_57] : memref<2x128x512xbf16, #tpu.memory_space<vmem>>, vector<1x128x512xbf16>
    %96 = vector.shape_cast %95 : vector<1x128x512xbf16> to vector<128x512xbf16>
    %cst_58 = arith.constant dense<0.000000e+00> : vector<16x512xf32>
    %97 = tpu.matmul %92, %96, %cst_58 {dimension_numbers = #tpu.dot_dimension_numbers<[1], [0], [0], [1], [0, 0, 1, 1], [], []>} : vector<16x128xbf16>, vector<128x512xbf16>, vector<16x512xf32> -> vector<16x512xf32>
    %98 = arith.extf %94 : vector<16x512xbf16> to vector<16x512xf32>
    %99 = arith.addf %98, %97 : vector<16x512xf32>
    %100 = vector.extract_strided_slice %99 {offsets = [0, 0], sizes = [16, 384], strides = [1, 1]} : vector<16x512xf32> to vector<16x384xf32>
    %101 = arith.negf %100 : vector<16x384xf32>
    %102 = math.exp %101 : vector<16x384xf32>
    %cst_59 = arith.constant 1.000000e+00 : f32
    %103 = vector.broadcast %cst_59 : f32 to vector<16x384xf32>
    %104 = arith.addf %103, %102 : vector<16x384xf32>
    %105 = arith.divf %103, %104 : vector<16x384xf32>
    %106 = vector.extract_strided_slice %105 {offsets = [0, 0], sizes = [16, 128], strides = [1, 1]} : vector<16x384xf32> to vector<16x128xf32>
    %107 = vector.extract_strided_slice %105 {offsets = [0, 128], sizes = [16, 128], strides = [1, 1]} : vector<16x384xf32> to vector<16x128xf32>
    %108 = vector.extract_strided_slice %105 {offsets = [0, 256], sizes = [16, 128], strides = [1, 1]} : vector<16x384xf32> to vector<16x128xf32>
    %109 = vector.extract_strided_slice %99 {offsets = [0, 384], sizes = [16, 128], strides = [1, 1]} : vector<16x512xf32> to vector<16x128xf32>
    %110 = math.tanh %109 : vector<16x128xf32>
    %c0_60 = arith.constant 0 : index
    %c0_61 = arith.constant 0 : index
    %c0_62 = arith.constant 0 : index
    %111 = vector.load %arg13[%c0_60, %c0_61, %c0_62] : memref<2x16x128xf32, #tpu.memory_space<vmem>>, vector<1x16x128xf32>
    %112 = vector.shape_cast %111 : vector<1x16x128xf32> to vector<16x128xf32>
    %113 = arith.mulf %107, %112 : vector<16x128xf32>
    %114 = arith.mulf %106, %110 : vector<16x128xf32>
    %115 = arith.addf %113, %114 : vector<16x128xf32>
    %116 = math.tanh %115 : vector<16x128xf32>
    %117 = arith.mulf %108, %116 : vector<16x128xf32>
    %118 = arith.truncf %117 : vector<16x128xf32> to vector<16x128xbf16>
    %c0_63 = arith.constant 0 : index
    %c0_64 = arith.constant 0 : index
    %c0_65 = arith.constant 0 : index
    %119 = vector.load %arg13[%c0_63, %c0_64, %c0_65] : memref<2x16x128xf32, #tpu.memory_space<vmem>>, vector<1x16x128xf32>
    %120 = vector.shape_cast %119 : vector<1x16x128xf32> to vector<16x128xf32>
    %121 = vector.shape_cast %115 : vector<16x128xf32> to vector<1x16x128xf32>
    tpu.vector_store %arg13[%c0_63, %c0_64, %c0_65], %121 {strides = array<i32>} : memref<2x16x128xf32, #tpu.memory_space<vmem>>, vector<1x16x128xf32>,
    %c0_66 = arith.constant 0 : index
    %c0_67 = arith.constant 0 : index
    %c0_68 = arith.constant 0 : index
    %122 = vector.load %arg12[%c0_66, %c0_67, %c0_68] : memref<2x16x128xbf16, #tpu.memory_space<vmem>>, vector<1x16x128xbf16>
    %123 = vector.shape_cast %122 : vector<1x16x128xbf16> to vector<16x128xbf16>
    %124 = vector.shape_cast %118 : vector<16x128xbf16> to vector<1x16x128xbf16>
    tpu.vector_store %arg12[%c0_66, %c0_67, %c0_68], %124 {strides = array<i32>} : memref<2x16x128xbf16, #tpu.memory_space<vmem>>, vector<1x16x128xbf16>,
    %125 = arith.index_cast %90 : i32 to index
    %c0_69 = arith.constant 0 : index
    %126 = vector.load %arg10[%125, %c0_69] : memref<128x128xbf16, #tpu.memory_space<vmem>>, vector<16x128xbf16>
    tpu.vector_store %arg10[%125, %c0_69], %118 {strides = array<i32>} : memref<128x128xbf16, #tpu.memory_space<vmem>>, vector<16x128xbf16>,
    %c3_i32 = arith.constant 3 : i32
    %c16_i32_70 = arith.constant 16 : i32
    %127 = arith.muli %c3_i32, %c16_i32_70 : i32
    %128 = tpu.assume_multiple %127, 16 : i32
    %c0_71 = arith.constant 0 : index
    %c0_72 = arith.constant 0 : index
    %c0_73 = arith.constant 0 : index
    %129 = vector.load %arg12[%c0_71, %c0_72, %c0_73] : memref<2x16x128xbf16, #tpu.memory_space<vmem>>, vector<1x16x128xbf16>
    %130 = vector.shape_cast %129 : vector<1x16x128xbf16> to vector<16x128xbf16>
    %131 = arith.index_cast %128 : i32 to index
    %c0_74 = arith.constant 0 : index
    %132 = vector.load %arg11[%131, %c0_74] : memref<128x512xbf16, #tpu.memory_space<vmem>>, vector<16x512xbf16>
    %c0_75 = arith.constant 0 : index
    %c0_76 = arith.constant 0 : index
    %c0_77 = arith.constant 0 : index
    %133 = vector.load %arg5[%c0_75, %c0_76, %c0_77] : memref<2x128x512xbf16, #tpu.memory_space<vmem>>, vector<1x128x512xbf16>
    %134 = vector.shape_cast %133 : vector<1x128x512xbf16> to vector<128x512xbf16>
    %cst_78 = arith.constant dense<0.000000e+00> : vector<16x512xf32>
    %135 = tpu.matmul %130, %134, %cst_78 {dimension_numbers = #tpu.dot_dimension_numbers<[1], [0], [0], [1], [0, 0, 1, 1], [], []>} : vector<16x128xbf16>, vector<128x512xbf16>, vector<16x512xf32> -> vector<16x512xf32>
    %136 = arith.extf %132 : vector<16x512xbf16> to vector<16x512xf32>
    %137 = arith.addf %136, %135 : vector<16x512xf32>
    %138 = vector.extract_strided_slice %137 {offsets = [0, 0], sizes = [16, 384], strides = [1, 1]} : vector<16x512xf32> to vector<16x384xf32>
    %139 = arith.negf %138 : vector<16x384xf32>
    %140 = math.exp %139 : vector<16x384xf32>
    %cst_79 = arith.constant 1.000000e+00 : f32
    %141 = vector.broadcast %cst_79 : f32 to vector<16x384xf32>
    %142 = arith.addf %141, %140 : vector<16x384xf32>
    %143 = arith.divf %141, %142 : vector<16x384xf32>
    %144 = vector.extract_strided_slice %143 {offsets = [0, 0], sizes = [16, 128], strides = [1, 1]} : vector<16x384xf32> to vector<16x128xf32>
    %145 = vector.extract_strided_slice %143 {offsets = [0, 128], sizes = [16, 128], strides = [1, 1]} : vector<16x384xf32> to vector<16x128xf32>
    %146 = vector.extract_strided_slice %143 {offsets = [0, 256], sizes = [16, 128], strides = [1, 1]} : vector<16x384xf32> to vector<16x128xf32>
    %147 = vector.extract_strided_slice %137 {offsets = [0, 384], sizes = [16, 128], strides = [1, 1]} : vector<16x512xf32> to vector<16x128xf32>
    %148 = math.tanh %147 : vector<16x128xf32>
    %c0_80 = arith.constant 0 : index
    %c0_81 = arith.constant 0 : index
    %c0_82 = arith.constant 0 : index
    %149 = vector.load %arg13[%c0_80, %c0_81, %c0_82] : memref<2x16x128xf32, #tpu.memory_space<vmem>>, vector<1x16x128xf32>
    %150 = vector.shape_cast %149 : vector<1x16x128xf32> to vector<16x128xf32>
    %151 = arith.mulf %145, %150 : vector<16x128xf32>
    %152 = arith.mulf %144, %148 : vector<16x128xf32>
    %153 = arith.addf %151, %152 : vector<16x128xf32>
    %154 = math.tanh %153 : vector<16x128xf32>
    %155 = arith.mulf %146, %154 : vector<16x128xf32>
    %156 = arith.truncf %155 : vector<16x128xf32> to vector<16x128xbf16>
    %c0_83 = arith.constant 0 : index
    %c0_84 = arith.constant 0 : index
    %c0_85 = arith.constant 0 : index
    %157 = vector.load %arg13[%c0_83, %c0_84, %c0_85] : memref<2x16x128xf32, #tpu.memory_space<vmem>>, vector<1x16x128xf32>
    %158 = vector.shape_cast %157 : vector<1x16x128xf32> to vector<16x128xf32>
    %159 = vector.shape_cast %153 : vector<16x128xf32> to vector<1x16x128xf32>
    tpu.vector_store %arg13[%c0_83, %c0_84, %c0_85], %159 {strides = array<i32>} : memref<2x16x128xf32, #tpu.memory_space<vmem>>, vector<1x16x128xf32>,
    %c0_86 = arith.constant 0 : index
    %c0_87 = arith.constant 0 : index
    %c0_88 = arith.constant 0 : index
    %160 = vector.load %arg12[%c0_86, %c0_87, %c0_88] : memref<2x16x128xbf16, #tpu.memory_space<vmem>>, vector<1x16x128xbf16>
    %161 = vector.shape_cast %160 : vector<1x16x128xbf16> to vector<16x128xbf16>
    %162 = vector.shape_cast %156 : vector<16x128xbf16> to vector<1x16x128xbf16>
    tpu.vector_store %arg12[%c0_86, %c0_87, %c0_88], %162 {strides = array<i32>} : memref<2x16x128xbf16, #tpu.memory_space<vmem>>, vector<1x16x128xbf16>,
    %163 = arith.index_cast %128 : i32 to index
    %c0_89 = arith.constant 0 : index
    %164 = vector.load %arg10[%163, %c0_89] : memref<128x128xbf16, #tpu.memory_space<vmem>>, vector<16x128xbf16>
    tpu.vector_store %arg10[%163, %c0_89], %156 {strides = array<i32>} : memref<128x128xbf16, #tpu.memory_space<vmem>>, vector<16x128xbf16>,
    %c4_i32 = arith.constant 4 : i32
    %c16_i32_90 = arith.constant 16 : i32
    %165 = arith.muli %c4_i32, %c16_i32_90 : i32
    %166 = tpu.assume_multiple %165, 16 : i32
    %c0_91 = arith.constant 0 : index
    %c0_92 = arith.constant 0 : index
    %c0_93 = arith.constant 0 : index
    %167 = vector.load %arg12[%c0_91, %c0_92, %c0_93] : memref<2x16x128xbf16, #tpu.memory_space<vmem>>, vector<1x16x128xbf16>
    %168 = vector.shape_cast %167 : vector<1x16x128xbf16> to vector<16x128xbf16>
    %169 = arith.index_cast %166 : i32 to index
    %c0_94 = arith.constant 0 : index
    %170 = vector.load %arg11[%169, %c0_94] : memref<128x512xbf16, #tpu.memory_space<vmem>>, vector<16x512xbf16>
    %c0_95 = arith.constant 0 : index
    %c0_96 = arith.constant 0 : index
    %c0_97 = arith.constant 0 : index
    %171 = vector.load %arg5[%c0_95, %c0_96, %c0_97] : memref<2x128x512xbf16, #tpu.memory_space<vmem>>, vector<1x128x512xbf16>
    %172 = vector.shape_cast %171 : vector<1x128x512xbf16> to vector<128x512xbf16>
    %cst_98 = arith.constant dense<0.000000e+00> : vector<16x512xf32>
    %173 = tpu.matmul %168, %172, %cst_98 {dimension_numbers = #tpu.dot_dimension_numbers<[1], [0], [0], [1], [0, 0, 1, 1], [], []>} : vector<16x128xbf16>, vector<128x512xbf16>, vector<16x512xf32> -> vector<16x512xf32>
    %174 = arith.extf %170 : vector<16x512xbf16> to vector<16x512xf32>
    %175 = arith.addf %174, %173 : vector<16x512xf32>
    %176 = vector.extract_strided_slice %175 {offsets = [0, 0], sizes = [16, 384], strides = [1, 1]} : vector<16x512xf32> to vector<16x384xf32>
    %177 = arith.negf %176 : vector<16x384xf32>
    %178 = math.exp %177 : vector<16x384xf32>
    %cst_99 = arith.constant 1.000000e+00 : f32
    %179 = vector.broadcast %cst_99 : f32 to vector<16x384xf32>
    %180 = arith.addf %179, %178 : vector<16x384xf32>
    %181 = arith.divf %179, %180 : vector<16x384xf32>
    %182 = vector.extract_strided_slice %181 {offsets = [0, 0], sizes = [16, 128], strides = [1, 1]} : vector<16x384xf32> to vector<16x128xf32>
    %183 = vector.extract_strided_slice %181 {offsets = [0, 128], sizes = [16, 128], strides = [1, 1]} : vector<16x384xf32> to vector<16x128xf32>
    %184 = vector.extract_strided_slice %181 {offsets = [0, 256], sizes = [16, 128], strides = [1, 1]} : vector<16x384xf32> to vector<16x128xf32>
    %185 = vector.extract_strided_slice %175 {offsets = [0, 384], sizes = [16, 128], strides = [1, 1]} : vector<16x512xf32> to vector<16x128xf32>
    %186 = math.tanh %185 : vector<16x128xf32>
    %c0_100 = arith.constant 0 : index
    %c0_101 = arith.constant 0 : index
    %c0_102 = arith.constant 0 : index
    %187 = vector.load %arg13[%c0_100, %c0_101, %c0_102] : memref<2x16x128xf32, #tpu.memory_space<vmem>>, vector<1x16x128xf32>
    %188 = vector.shape_cast %187 : vector<1x16x128xf32> to vector<16x128xf32>
    %189 = arith.mulf %183, %188 : vector<16x128xf32>
    %190 = arith.mulf %182, %186 : vector<16x128xf32>
    %191 = arith.addf %189, %190 : vector<16x128xf32>
    %192 = math.tanh %191 : vector<16x128xf32>
    %193 = arith.mulf %184, %192 : vector<16x128xf32>
    %194 = arith.truncf %193 : vector<16x128xf32> to vector<16x128xbf16>
    %c0_103 = arith.constant 0 : index
    %c0_104 = arith.constant 0 : index
    %c0_105 = arith.constant 0 : index
    %195 = vector.load %arg13[%c0_103, %c0_104, %c0_105] : memref<2x16x128xf32, #tpu.memory_space<vmem>>, vector<1x16x128xf32>
    %196 = vector.shape_cast %195 : vector<1x16x128xf32> to vector<16x128xf32>
    %197 = vector.shape_cast %191 : vector<16x128xf32> to vector<1x16x128xf32>
    tpu.vector_store %arg13[%c0_103, %c0_104, %c0_105], %197 {strides = array<i32>} : memref<2x16x128xf32, #tpu.memory_space<vmem>>, vector<1x16x128xf32>,
    %c0_106 = arith.constant 0 : index
    %c0_107 = arith.constant 0 : index
    %c0_108 = arith.constant 0 : index
    %198 = vector.load %arg12[%c0_106, %c0_107, %c0_108] : memref<2x16x128xbf16, #tpu.memory_space<vmem>>, vector<1x16x128xbf16>
    %199 = vector.shape_cast %198 : vector<1x16x128xbf16> to vector<16x128xbf16>
    %200 = vector.shape_cast %194 : vector<16x128xbf16> to vector<1x16x128xbf16>
    tpu.vector_store %arg12[%c0_106, %c0_107, %c0_108], %200 {strides = array<i32>} : memref<2x16x128xbf16, #tpu.memory_space<vmem>>, vector<1x16x128xbf16>,
    %201 = arith.index_cast %166 : i32 to index
    %c0_109 = arith.constant 0 : index
    %202 = vector.load %arg10[%201, %c0_109] : memref<128x128xbf16, #tpu.memory_space<vmem>>, vector<16x128xbf16>
    tpu.vector_store %arg10[%201, %c0_109], %194 {strides = array<i32>} : memref<128x128xbf16, #tpu.memory_space<vmem>>, vector<16x128xbf16>,
    %c5_i32 = arith.constant 5 : i32
    %c16_i32_110 = arith.constant 16 : i32
    %203 = arith.muli %c5_i32, %c16_i32_110 : i32
    %204 = tpu.assume_multiple %203, 16 : i32
    %c0_111 = arith.constant 0 : index
    %c0_112 = arith.constant 0 : index
    %c0_113 = arith.constant 0 : index
    %205 = vector.load %arg12[%c0_111, %c0_112, %c0_113] : memref<2x16x128xbf16, #tpu.memory_space<vmem>>, vector<1x16x128xbf16>
    %206 = vector.shape_cast %205 : vector<1x16x128xbf16> to vector<16x128xbf16>
    %207 = arith.index_cast %204 : i32 to index
    %c0_114 = arith.constant 0 : index
    %208 = vector.load %arg11[%207, %c0_114] : memref<128x512xbf16, #tpu.memory_space<vmem>>, vector<16x512xbf16>
    %c0_115 = arith.constant 0 : index
    %c0_116 = arith.constant 0 : index
    %c0_117 = arith.constant 0 : index
    %209 = vector.load %arg5[%c0_115, %c0_116, %c0_117] : memref<2x128x512xbf16, #tpu.memory_space<vmem>>, vector<1x128x512xbf16>
    %210 = vector.shape_cast %209 : vector<1x128x512xbf16> to vector<128x512xbf16>
    %cst_118 = arith.constant dense<0.000000e+00> : vector<16x512xf32>
    %211 = tpu.matmul %206, %210, %cst_118 {dimension_numbers = #tpu.dot_dimension_numbers<[1], [0], [0], [1], [0, 0, 1, 1], [], []>} : vector<16x128xbf16>, vector<128x512xbf16>, vector<16x512xf32> -> vector<16x512xf32>
    %212 = arith.extf %208 : vector<16x512xbf16> to vector<16x512xf32>
    %213 = arith.addf %212, %211 : vector<16x512xf32>
    %214 = vector.extract_strided_slice %213 {offsets = [0, 0], sizes = [16, 384], strides = [1, 1]} : vector<16x512xf32> to vector<16x384xf32>
    %215 = arith.negf %214 : vector<16x384xf32>
    %216 = math.exp %215 : vector<16x384xf32>
    %cst_119 = arith.constant 1.000000e+00 : f32
    %217 = vector.broadcast %cst_119 : f32 to vector<16x384xf32>
    %218 = arith.addf %217, %216 : vector<16x384xf32>
    %219 = arith.divf %217, %218 : vector<16x384xf32>
    %220 = vector.extract_strided_slice %219 {offsets = [0, 0], sizes = [16, 128], strides = [1, 1]} : vector<16x384xf32> to vector<16x128xf32>
    %221 = vector.extract_strided_slice %219 {offsets = [0, 128], sizes = [16, 128], strides = [1, 1]} : vector<16x384xf32> to vector<16x128xf32>
    %222 = vector.extract_strided_slice %219 {offsets = [0, 256], sizes = [16, 128], strides = [1, 1]} : vector<16x384xf32> to vector<16x128xf32>
    %223 = vector.extract_strided_slice %213 {offsets = [0, 384], sizes = [16, 128], strides = [1, 1]} : vector<16x512xf32> to vector<16x128xf32>
    %224 = math.tanh %223 : vector<16x128xf32>
    %c0_120 = arith.constant 0 : index
    %c0_121 = arith.constant 0 : index
    %c0_122 = arith.constant 0 : index
    %225 = vector.load %arg13[%c0_120, %c0_121, %c0_122] : memref<2x16x128xf32, #tpu.memory_space<vmem>>, vector<1x16x128xf32>
    %226 = vector.shape_cast %225 : vector<1x16x128xf32> to vector<16x128xf32>
    %227 = arith.mulf %221, %226 : vector<16x128xf32>
    %228 = arith.mulf %220, %224 : vector<16x128xf32>
    %229 = arith.addf %227, %228 : vector<16x128xf32>
    %230 = math.tanh %229 : vector<16x128xf32>
    %231 = arith.mulf %222, %230 : vector<16x128xf32>
    %232 = arith.truncf %231 : vector<16x128xf32> to vector<16x128xbf16>
    %c0_123 = arith.constant 0 : index
    %c0_124 = arith.constant 0 : index
    %c0_125 = arith.constant 0 : index
    %233 = vector.load %arg13[%c0_123, %c0_124, %c0_125] : memref<2x16x128xf32, #tpu.memory_space<vmem>>, vector<1x16x128xf32>
    %234 = vector.shape_cast %233 : vector<1x16x128xf32> to vector<16x128xf32>
    %235 = vector.shape_cast %229 : vector<16x128xf32> to vector<1x16x128xf32>
    tpu.vector_store %arg13[%c0_123, %c0_124, %c0_125], %235 {strides = array<i32>} : memref<2x16x128xf32, #tpu.memory_space<vmem>>, vector<1x16x128xf32>,
    %c0_126 = arith.constant 0 : index
    %c0_127 = arith.constant 0 : index
    %c0_128 = arith.constant 0 : index
    %236 = vector.load %arg12[%c0_126, %c0_127, %c0_128] : memref<2x16x128xbf16, #tpu.memory_space<vmem>>, vector<1x16x128xbf16>
    %237 = vector.shape_cast %236 : vector<1x16x128xbf16> to vector<16x128xbf16>
    %238 = vector.shape_cast %232 : vector<16x128xbf16> to vector<1x16x128xbf16>
    tpu.vector_store %arg12[%c0_126, %c0_127, %c0_128], %238 {strides = array<i32>} : memref<2x16x128xbf16, #tpu.memory_space<vmem>>, vector<1x16x128xbf16>,
    %239 = arith.index_cast %204 : i32 to index
    %c0_129 = arith.constant 0 : index
    %240 = vector.load %arg10[%239, %c0_129] : memref<128x128xbf16, #tpu.memory_space<vmem>>, vector<16x128xbf16>
    tpu.vector_store %arg10[%239, %c0_129], %232 {strides = array<i32>} : memref<128x128xbf16, #tpu.memory_space<vmem>>, vector<16x128xbf16>,
    %c6_i32 = arith.constant 6 : i32
    %c16_i32_130 = arith.constant 16 : i32
    %241 = arith.muli %c6_i32, %c16_i32_130 : i32
    %242 = tpu.assume_multiple %241, 16 : i32
    %c0_131 = arith.constant 0 : index
    %c0_132 = arith.constant 0 : index
    %c0_133 = arith.constant 0 : index
    %243 = vector.load %arg12[%c0_131, %c0_132, %c0_133] : memref<2x16x128xbf16, #tpu.memory_space<vmem>>, vector<1x16x128xbf16>
    %244 = vector.shape_cast %243 : vector<1x16x128xbf16> to vector<16x128xbf16>
    %245 = arith.index_cast %242 : i32 to index
    %c0_134 = arith.constant 0 : index
    %246 = vector.load %arg11[%245, %c0_134] : memref<128x512xbf16, #tpu.memory_space<vmem>>, vector<16x512xbf16>
    %c0_135 = arith.constant 0 : index
    %c0_136 = arith.constant 0 : index
    %c0_137 = arith.constant 0 : index
    %247 = vector.load %arg5[%c0_135, %c0_136, %c0_137] : memref<2x128x512xbf16, #tpu.memory_space<vmem>>, vector<1x128x512xbf16>
    %248 = vector.shape_cast %247 : vector<1x128x512xbf16> to vector<128x512xbf16>
    %cst_138 = arith.constant dense<0.000000e+00> : vector<16x512xf32>
    %249 = tpu.matmul %244, %248, %cst_138 {dimension_numbers = #tpu.dot_dimension_numbers<[1], [0], [0], [1], [0, 0, 1, 1], [], []>} : vector<16x128xbf16>, vector<128x512xbf16>, vector<16x512xf32> -> vector<16x512xf32>
    %250 = arith.extf %246 : vector<16x512xbf16> to vector<16x512xf32>
    %251 = arith.addf %250, %249 : vector<16x512xf32>
    %252 = vector.extract_strided_slice %251 {offsets = [0, 0], sizes = [16, 384], strides = [1, 1]} : vector<16x512xf32> to vector<16x384xf32>
    %253 = arith.negf %252 : vector<16x384xf32>
    %254 = math.exp %253 : vector<16x384xf32>
    %cst_139 = arith.constant 1.000000e+00 : f32
    %255 = vector.broadcast %cst_139 : f32 to vector<16x384xf32>
    %256 = arith.addf %255, %254 : vector<16x384xf32>
    %257 = arith.divf %255, %256 : vector<16x384xf32>
    %258 = vector.extract_strided_slice %257 {offsets = [0, 0], sizes = [16, 128], strides = [1, 1]} : vector<16x384xf32> to vector<16x128xf32>
    %259 = vector.extract_strided_slice %257 {offsets = [0, 128], sizes = [16, 128], strides = [1, 1]} : vector<16x384xf32> to vector<16x128xf32>
    %260 = vector.extract_strided_slice %257 {offsets = [0, 256], sizes = [16, 128], strides = [1, 1]} : vector<16x384xf32> to vector<16x128xf32>
    %261 = vector.extract_strided_slice %251 {offsets = [0, 384], sizes = [16, 128], strides = [1, 1]} : vector<16x512xf32> to vector<16x128xf32>
    %262 = math.tanh %261 : vector<16x128xf32>
    %c0_140 = arith.constant 0 : index
    %c0_141 = arith.constant 0 : index
    %c0_142 = arith.constant 0 : index
    %263 = vector.load %arg13[%c0_140, %c0_141, %c0_142] : memref<2x16x128xf32, #tpu.memory_space<vmem>>, vector<1x16x128xf32>
    %264 = vector.shape_cast %263 : vector<1x16x128xf32> to vector<16x128xf32>
    %265 = arith.mulf %259, %264 : vector<16x128xf32>
    %266 = arith.mulf %258, %262 : vector<16x128xf32>
    %267 = arith.addf %265, %266 : vector<16x128xf32>
    %268 = math.tanh %267 : vector<16x128xf32>
    %269 = arith.mulf %260, %268 : vector<16x128xf32>
    %270 = arith.truncf %269 : vector<16x128xf32> to vector<16x128xbf16>
    %c0_143 = arith.constant 0 : index
    %c0_144 = arith.constant 0 : index
    %c0_145 = arith.constant 0 : index
    %271 = vector.load %arg13[%c0_143, %c0_144, %c0_145] : memref<2x16x128xf32, #tpu.memory_space<vmem>>, vector<1x16x128xf32>
    %272 = vector.shape_cast %271 : vector<1x16x128xf32> to vector<16x128xf32>
    %273 = vector.shape_cast %267 : vector<16x128xf32> to vector<1x16x128xf32>
    tpu.vector_store %arg13[%c0_143, %c0_144, %c0_145], %273 {strides = array<i32>} : memref<2x16x128xf32, #tpu.memory_space<vmem>>, vector<1x16x128xf32>,
    %c0_146 = arith.constant 0 : index
    %c0_147 = arith.constant 0 : index
    %c0_148 = arith.constant 0 : index
    %274 = vector.load %arg12[%c0_146, %c0_147, %c0_148] : memref<2x16x128xbf16, #tpu.memory_space<vmem>>, vector<1x16x128xbf16>
    %275 = vector.shape_cast %274 : vector<1x16x128xbf16> to vector<16x128xbf16>
    %276 = vector.shape_cast %270 : vector<16x128xbf16> to vector<1x16x128xbf16>
    tpu.vector_store %arg12[%c0_146, %c0_147, %c0_148], %276 {strides = array<i32>} : memref<2x16x128xbf16, #tpu.memory_space<vmem>>, vector<1x16x128xbf16>,
    %277 = arith.index_cast %242 : i32 to index
    %c0_149 = arith.constant 0 : index
    %278 = vector.load %arg10[%277, %c0_149] : memref<128x128xbf16, #tpu.memory_space<vmem>>, vector<16x128xbf16>
    tpu.vector_store %arg10[%277, %c0_149], %270 {strides = array<i32>} : memref<128x128xbf16, #tpu.memory_space<vmem>>, vector<16x128xbf16>,
    %c7_i32 = arith.constant 7 : i32
    %c16_i32_150 = arith.constant 16 : i32
    %279 = arith.muli %c7_i32, %c16_i32_150 : i32
    %280 = tpu.assume_multiple %279, 16 : i32
    %c0_151 = arith.constant 0 : index
    %c0_152 = arith.constant 0 : index
    %c0_153 = arith.constant 0 : index
    %281 = vector.load %arg12[%c0_151, %c0_152, %c0_153] : memref<2x16x128xbf16, #tpu.memory_space<vmem>>, vector<1x16x128xbf16>
    %282 = vector.shape_cast %281 : vector<1x16x128xbf16> to vector<16x128xbf16>
    %283 = arith.index_cast %280 : i32 to index
    %c0_154 = arith.constant 0 : index
    %284 = vector.load %arg11[%283, %c0_154] : memref<128x512xbf16, #tpu.memory_space<vmem>>, vector<16x512xbf16>
    %c0_155 = arith.constant 0 : index
    %c0_156 = arith.constant 0 : index
    %c0_157 = arith.constant 0 : index
    %285 = vector.load %arg5[%c0_155, %c0_156, %c0_157] : memref<2x128x512xbf16, #tpu.memory_space<vmem>>, vector<1x128x512xbf16>
    %286 = vector.shape_cast %285 : vector<1x128x512xbf16> to vector<128x512xbf16>
    %cst_158 = arith.constant dense<0.000000e+00> : vector<16x512xf32>
    %287 = tpu.matmul %282, %286, %cst_158 {dimension_numbers = #tpu.dot_dimension_numbers<[1], [0], [0], [1], [0, 0, 1, 1], [], []>} : vector<16x128xbf16>, vector<128x512xbf16>, vector<16x512xf32> -> vector<16x512xf32>
    %288 = arith.extf %284 : vector<16x512xbf16> to vector<16x512xf32>
    %289 = arith.addf %288, %287 : vector<16x512xf32>
    %290 = vector.extract_strided_slice %289 {offsets = [0, 0], sizes = [16, 384], strides = [1, 1]} : vector<16x512xf32> to vector<16x384xf32>
    %291 = arith.negf %290 : vector<16x384xf32>
    %292 = math.exp %291 : vector<16x384xf32>
    %cst_159 = arith.constant 1.000000e+00 : f32
    %293 = vector.broadcast %cst_159 : f32 to vector<16x384xf32>
    %294 = arith.addf %293, %292 : vector<16x384xf32>
    %295 = arith.divf %293, %294 : vector<16x384xf32>
    %296 = vector.extract_strided_slice %295 {offsets = [0, 0], sizes = [16, 128], strides = [1, 1]} : vector<16x384xf32> to vector<16x128xf32>
    %297 = vector.extract_strided_slice %295 {offsets = [0, 128], sizes = [16, 128], strides = [1, 1]} : vector<16x384xf32> to vector<16x128xf32>
    %298 = vector.extract_strided_slice %295 {offsets = [0, 256], sizes = [16, 128], strides = [1, 1]} : vector<16x384xf32> to vector<16x128xf32>
    %299 = vector.extract_strided_slice %289 {offsets = [0, 384], sizes = [16, 128], strides = [1, 1]} : vector<16x512xf32> to vector<16x128xf32>
    %300 = math.tanh %299 : vector<16x128xf32>
    %c0_160 = arith.constant 0 : index
    %c0_161 = arith.constant 0 : index
    %c0_162 = arith.constant 0 : index
    %301 = vector.load %arg13[%c0_160, %c0_161, %c0_162] : memref<2x16x128xf32, #tpu.memory_space<vmem>>, vector<1x16x128xf32>
    %302 = vector.shape_cast %301 : vector<1x16x128xf32> to vector<16x128xf32>
    %303 = arith.mulf %297, %302 : vector<16x128xf32>
    %304 = arith.mulf %296, %300 : vector<16x128xf32>
    %305 = arith.addf %303, %304 : vector<16x128xf32>
    %306 = math.tanh %305 : vector<16x128xf32>
    %307 = arith.mulf %298, %306 : vector<16x128xf32>
    %308 = arith.truncf %307 : vector<16x128xf32> to vector<16x128xbf16>
    %c0_163 = arith.constant 0 : index
    %c0_164 = arith.constant 0 : index
    %c0_165 = arith.constant 0 : index
    %309 = vector.load %arg13[%c0_163, %c0_164, %c0_165] : memref<2x16x128xf32, #tpu.memory_space<vmem>>, vector<1x16x128xf32>
    %310 = vector.shape_cast %309 : vector<1x16x128xf32> to vector<16x128xf32>
    %311 = vector.shape_cast %305 : vector<16x128xf32> to vector<1x16x128xf32>
    tpu.vector_store %arg13[%c0_163, %c0_164, %c0_165], %311 {strides = array<i32>} : memref<2x16x128xf32, #tpu.memory_space<vmem>>, vector<1x16x128xf32>,
    %c0_166 = arith.constant 0 : index
    %c0_167 = arith.constant 0 : index
    %c0_168 = arith.constant 0 : index
    %312 = vector.load %arg12[%c0_166, %c0_167, %c0_168] : memref<2x16x128xbf16, #tpu.memory_space<vmem>>, vector<1x16x128xbf16>
    %313 = vector.shape_cast %312 : vector<1x16x128xbf16> to vector<16x128xbf16>
    %314 = vector.shape_cast %308 : vector<16x128xbf16> to vector<1x16x128xbf16>
    tpu.vector_store %arg12[%c0_166, %c0_167, %c0_168], %314 {strides = array<i32>} : memref<2x16x128xbf16, #tpu.memory_space<vmem>>, vector<1x16x128xbf16>,
    %315 = arith.index_cast %280 : i32 to index
    %c0_169 = arith.constant 0 : index
    %316 = vector.load %arg10[%315, %c0_169] : memref<128x128xbf16, #tpu.memory_space<vmem>>, vector<16x128xbf16>
    tpu.vector_store %arg10[%315, %c0_169], %308 {strides = array<i32>} : memref<128x128xbf16, #tpu.memory_space<vmem>>, vector<16x128xbf16>,
    %c8_i32 = arith.constant 8 : i32
    %c0_170 = arith.constant 0 : index
    %c0_171 = arith.constant 0 : index
    %317 = vector.load %arg10[%c0_170, %c0_171] : memref<128x128xbf16, #tpu.memory_space<vmem>>, vector<128x128xbf16>
    %c0_172 = arith.constant 0 : index
    %c0_173 = arith.constant 0 : index
    %c0_174 = arith.constant 0 : index
    %318 = vector.load %arg4[%c0_172, %c0_173, %c0_174] : memref<1x128x512xbf16, #tpu.memory_space<vmem>>, vector<1x128x512xbf16>
    %319 = vector.shape_cast %318 : vector<1x128x512xbf16> to vector<128x512xbf16>
    %cst_175 = arith.constant dense<0.000000e+00> : vector<128x512xf32>
    %320 = tpu.matmul %317, %319, %cst_175 {dimension_numbers = #tpu.dot_dimension_numbers<[1], [0], [0], [1], [0, 0, 1, 1], [], []>} : vector<128x128xbf16>, vector<128x512xbf16>, vector<128x512xf32> -> vector<128x512xf32>
    %c1 = arith.constant 1 : index
    %c0_176 = arith.constant 0 : index
    %c0_177 = arith.constant 0 : index
    %321 = vector.load %arg6[%c1, %c0_176, %c0_177] : memref<2x1x512xf32, #tpu.memory_space<vmem>>, vector<1x1x512xf32>
    %322 = vector.shape_cast %321 : vector<1x1x512xf32> to vector<1x512xf32>
    %323 = vector.broadcast %322 : vector<1x512xf32> to vector<128x512xf32>
    %324 = arith.addf %320, %323 : vector<128x512xf32>
    %325 = arith.truncf %324 : vector<128x512xf32> to vector<128x512xbf16>
    %c0_178 = arith.constant 0 : index
    %c0_179 = arith.constant 0 : index
    %326 = vector.load %arg11[%c0_178, %c0_179] : memref<128x512xbf16, #tpu.memory_space<vmem>>, vector<128x512xbf16>
    tpu.vector_store %arg11[%c0_178, %c0_179], %325 {strides = array<i32>} : memref<128x512xbf16, #tpu.memory_space<vmem>>, vector<128x512xbf16>,
    %c0_i32_180 = arith.constant 0 : i32
    %c16_i32_181 = arith.constant 16 : i32
    %327 = arith.muli %c0_i32_180, %c16_i32_181 : i32
    %328 = tpu.assume_multiple %327, 16 : i32
    %c1_182 = arith.constant 1 : index
    %c0_183 = arith.constant 0 : index
    %c0_184 = arith.constant 0 : index
    %329 = vector.load %arg12[%c1_182, %c0_183, %c0_184] : memref<2x16x128xbf16, #tpu.memory_space<vmem>>, vector<1x16x128xbf16>
    %330 = vector.shape_cast %329 : vector<1x16x128xbf16> to vector<16x128xbf16>
    %331 = arith.index_cast %328 : i32 to index
    %c0_185 = arith.constant 0 : index
    %332 = vector.load %arg11[%331, %c0_185] : memref<128x512xbf16, #tpu.memory_space<vmem>>, vector<16x512xbf16>
    %c1_186 = arith.constant 1 : index
    %c0_187 = arith.constant 0 : index
    %c0_188 = arith.constant 0 : index
    %333 = vector.load %arg5[%c1_186, %c0_187, %c0_188] : memref<2x128x512xbf16, #tpu.memory_space<vmem>>, vector<1x128x512xbf16>
    %334 = vector.shape_cast %333 : vector<1x128x512xbf16> to vector<128x512xbf16>
    %cst_189 = arith.constant dense<0.000000e+00> : vector<16x512xf32>
    %335 = tpu.matmul %330, %334, %cst_189 {dimension_numbers = #tpu.dot_dimension_numbers<[1], [0], [0], [1], [0, 0, 1, 1], [], []>} : vector<16x128xbf16>, vector<128x512xbf16>, vector<16x512xf32> -> vector<16x512xf32>
    %336 = arith.extf %332 : vector<16x512xbf16> to vector<16x512xf32>
    %337 = arith.addf %336, %335 : vector<16x512xf32>
    %338 = vector.extract_strided_slice %337 {offsets = [0, 0], sizes = [16, 384], strides = [1, 1]} : vector<16x512xf32> to vector<16x384xf32>
    %339 = arith.negf %338 : vector<16x384xf32>
    %340 = math.exp %339 : vector<16x384xf32>
    %cst_190 = arith.constant 1.000000e+00 : f32
    %341 = vector.broadcast %cst_190 : f32 to vector<16x384xf32>
    %342 = arith.addf %341, %340 : vector<16x384xf32>
    %343 = arith.divf %341, %342 : vector<16x384xf32>
    %344 = vector.extract_strided_slice %343 {offsets = [0, 0], sizes = [16, 128], strides = [1, 1]} : vector<16x384xf32> to vector<16x128xf32>
    %345 = vector.extract_strided_slice %343 {offsets = [0, 128], sizes = [16, 128], strides = [1, 1]} : vector<16x384xf32> to vector<16x128xf32>
    %346 = vector.extract_strided_slice %343 {offsets = [0, 256], sizes = [16, 128], strides = [1, 1]} : vector<16x384xf32> to vector<16x128xf32>
    %347 = vector.extract_strided_slice %337 {offsets = [0, 384], sizes = [16, 128], strides = [1, 1]} : vector<16x512xf32> to vector<16x128xf32>
    %348 = math.tanh %347 : vector<16x128xf32>
    %c1_191 = arith.constant 1 : index
    %c0_192 = arith.constant 0 : index
    %c0_193 = arith.constant 0 : index
    %349 = vector.load %arg13[%c1_191, %c0_192, %c0_193] : memref<2x16x128xf32, #tpu.memory_space<vmem>>, vector<1x16x128xf32>
    %350 = vector.shape_cast %349 : vector<1x16x128xf32> to vector<16x128xf32>
    %351 = arith.mulf %345, %350 : vector<16x128xf32>
    %352 = arith.mulf %344, %348 : vector<16x128xf32>
    %353 = arith.addf %351, %352 : vector<16x128xf32>
    %354 = math.tanh %353 : vector<16x128xf32>
    %355 = arith.mulf %346, %354 : vector<16x128xf32>
    %356 = arith.truncf %355 : vector<16x128xf32> to vector<16x128xbf16>
    %c1_194 = arith.constant 1 : index
    %c0_195 = arith.constant 0 : index
    %c0_196 = arith.constant 0 : index
    %357 = vector.load %arg13[%c1_194, %c0_195, %c0_196] : memref<2x16x128xf32, #tpu.memory_space<vmem>>, vector<1x16x128xf32>
    %358 = vector.shape_cast %357 : vector<1x16x128xf32> to vector<16x128xf32>
    %359 = vector.shape_cast %353 : vector<16x128xf32> to vector<1x16x128xf32>
    tpu.vector_store %arg13[%c1_194, %c0_195, %c0_196], %359 {strides = array<i32>} : memref<2x16x128xf32, #tpu.memory_space<vmem>>, vector<1x16x128xf32>,
    %c1_197 = arith.constant 1 : index
    %c0_198 = arith.constant 0 : index
    %c0_199 = arith.constant 0 : index
    %360 = vector.load %arg12[%c1_197, %c0_198, %c0_199] : memref<2x16x128xbf16, #tpu.memory_space<vmem>>, vector<1x16x128xbf16>
    %361 = vector.shape_cast %360 : vector<1x16x128xbf16> to vector<16x128xbf16>
    %362 = vector.shape_cast %356 : vector<16x128xbf16> to vector<1x16x128xbf16>
    tpu.vector_store %arg12[%c1_197, %c0_198, %c0_199], %362 {strides = array<i32>} : memref<2x16x128xbf16, #tpu.memory_space<vmem>>, vector<1x16x128xbf16>,
    %c1_i32_200 = arith.constant 1 : i32
    %c16_i32_201 = arith.constant 16 : i32
    %363 = arith.muli %c1_i32_200, %c16_i32_201 : i32
    %364 = tpu.assume_multiple %363, 16 : i32
    %c1_202 = arith.constant 1 : index
    %c0_203 = arith.constant 0 : index
    %c0_204 = arith.constant 0 : index
    %365 = vector.load %arg12[%c1_202, %c0_203, %c0_204] : memref<2x16x128xbf16, #tpu.memory_space<vmem>>, vector<1x16x128xbf16>
    %366 = vector.shape_cast %365 : vector<1x16x128xbf16> to vector<16x128xbf16>
    %367 = arith.index_cast %364 : i32 to index
    %c0_205 = arith.constant 0 : index
    %368 = vector.load %arg11[%367, %c0_205] : memref<128x512xbf16, #tpu.memory_space<vmem>>, vector<16x512xbf16>
    %c1_206 = arith.constant 1 : index
    %c0_207 = arith.constant 0 : index
    %c0_208 = arith.constant 0 : index
    %369 = vector.load %arg5[%c1_206, %c0_207, %c0_208] : memref<2x128x512xbf16, #tpu.memory_space<vmem>>, vector<1x128x512xbf16>
    %370 = vector.shape_cast %369 : vector<1x128x512xbf16> to vector<128x512xbf16>
    %cst_209 = arith.constant dense<0.000000e+00> : vector<16x512xf32>
    %371 = tpu.matmul %366, %370, %cst_209 {dimension_numbers = #tpu.dot_dimension_numbers<[1], [0], [0], [1], [0, 0, 1, 1], [], []>} : vector<16x128xbf16>, vector<128x512xbf16>, vector<16x512xf32> -> vector<16x512xf32>
    %372 = arith.extf %368 : vector<16x512xbf16> to vector<16x512xf32>
    %373 = arith.addf %372, %371 : vector<16x512xf32>
    %374 = vector.extract_strided_slice %373 {offsets = [0, 0], sizes = [16, 384], strides = [1, 1]} : vector<16x512xf32> to vector<16x384xf32>
    %375 = arith.negf %374 : vector<16x384xf32>
    %376 = math.exp %375 : vector<16x384xf32>
    %cst_210 = arith.constant 1.000000e+00 : f32
    %377 = vector.broadcast %cst_210 : f32 to vector<16x384xf32>
    %378 = arith.addf %377, %376 : vector<16x384xf32>
    %379 = arith.divf %377, %378 : vector<16x384xf32>
    %380 = vector.extract_strided_slice %379 {offsets = [0, 0], sizes = [16, 128], strides = [1, 1]} : vector<16x384xf32> to vector<16x128xf32>
    %381 = vector.extract_strided_slice %379 {offsets = [0, 128], sizes = [16, 128], strides = [1, 1]} : vector<16x384xf32> to vector<16x128xf32>
    %382 = vector.extract_strided_slice %379 {offsets = [0, 256], sizes = [16, 128], strides = [1, 1]} : vector<16x384xf32> to vector<16x128xf32>
    %383 = vector.extract_strided_slice %373 {offsets = [0, 384], sizes = [16, 128], strides = [1, 1]} : vector<16x512xf32> to vector<16x128xf32>
    %384 = math.tanh %383 : vector<16x128xf32>
    %c1_211 = arith.constant 1 : index
    %c0_212 = arith.constant 0 : index
    %c0_213 = arith.constant 0 : index
    %385 = vector.load %arg13[%c1_211, %c0_212, %c0_213] : memref<2x16x128xf32, #tpu.memory_space<vmem>>, vector<1x16x128xf32>
    %386 = vector.shape_cast %385 : vector<1x16x128xf32> to vector<16x128xf32>
    %387 = arith.mulf %381, %386 : vector<16x128xf32>
    %388 = arith.mulf %380, %384 : vector<16x128xf32>
    %389 = arith.addf %387, %388 : vector<16x128xf32>
    %390 = math.tanh %389 : vector<16x128xf32>
    %391 = arith.mulf %382, %390 : vector<16x128xf32>
    %392 = arith.truncf %391 : vector<16x128xf32> to vector<16x128xbf16>
    %c1_214 = arith.constant 1 : index
    %c0_215 = arith.constant 0 : index
    %c0_216 = arith.constant 0 : index
    %393 = vector.load %arg13[%c1_214, %c0_215, %c0_216] : memref<2x16x128xf32, #tpu.memory_space<vmem>>, vector<1x16x128xf32>
    %394 = vector.shape_cast %393 : vector<1x16x128xf32> to vector<16x128xf32>
    %395 = vector.shape_cast %389 : vector<16x128xf32> to vector<1x16x128xf32>
    tpu.vector_store %arg13[%c1_214, %c0_215, %c0_216], %395 {strides = array<i32>} : memref<2x16x128xf32, #tpu.memory_space<vmem>>, vector<1x16x128xf32>,
    %c1_217 = arith.constant 1 : index
    %c0_218 = arith.constant 0 : index
    %c0_219 = arith.constant 0 : index
    %396 = vector.load %arg12[%c1_217, %c0_218, %c0_219] : memref<2x16x128xbf16, #tpu.memory_space<vmem>>, vector<1x16x128xbf16>
    %397 = vector.shape_cast %396 : vector<1x16x128xbf16> to vector<16x128xbf16>
    %398 = vector.shape_cast %392 : vector<16x128xbf16> to vector<1x16x128xbf16>
    tpu.vector_store %arg12[%c1_217, %c0_218, %c0_219], %398 {strides = array<i32>} : memref<2x16x128xbf16, #tpu.memory_space<vmem>>, vector<1x16x128xbf16>,
    %c2_i32_220 = arith.constant 2 : i32
    %c16_i32_221 = arith.constant 16 : i32
    %399 = arith.muli %c2_i32_220, %c16_i32_221 : i32
    %400 = tpu.assume_multiple %399, 16 : i32
    %c1_222 = arith.constant 1 : index
    %c0_223 = arith.constant 0 : index
    %c0_224 = arith.constant 0 : index
    %401 = vector.load %arg12[%c1_222, %c0_223, %c0_224] : memref<2x16x128xbf16, #tpu.memory_space<vmem>>, vector<1x16x128xbf16>
    %402 = vector.shape_cast %401 : vector<1x16x128xbf16> to vector<16x128xbf16>
    %403 = arith.index_cast %400 : i32 to index
    %c0_225 = arith.constant 0 : index
    %404 = vector.load %arg11[%403, %c0_225] : memref<128x512xbf16, #tpu.memory_space<vmem>>, vector<16x512xbf16>
    %c1_226 = arith.constant 1 : index
    %c0_227 = arith.constant 0 : index
    %c0_228 = arith.constant 0 : index
    %405 = vector.load %arg5[%c1_226, %c0_227, %c0_228] : memref<2x128x512xbf16, #tpu.memory_space<vmem>>, vector<1x128x512xbf16>
    %406 = vector.shape_cast %405 : vector<1x128x512xbf16> to vector<128x512xbf16>
    %cst_229 = arith.constant dense<0.000000e+00> : vector<16x512xf32>
    %407 = tpu.matmul %402, %406, %cst_229 {dimension_numbers = #tpu.dot_dimension_numbers<[1], [0], [0], [1], [0, 0, 1, 1], [], []>} : vector<16x128xbf16>, vector<128x512xbf16>, vector<16x512xf32> -> vector<16x512xf32>
    %408 = arith.extf %404 : vector<16x512xbf16> to vector<16x512xf32>
    %409 = arith.addf %408, %407 : vector<16x512xf32>
    %410 = vector.extract_strided_slice %409 {offsets = [0, 0], sizes = [16, 384], strides = [1, 1]} : vector<16x512xf32> to vector<16x384xf32>
    %411 = arith.negf %410 : vector<16x384xf32>
    %412 = math.exp %411 : vector<16x384xf32>
    %cst_230 = arith.constant 1.000000e+00 : f32
    %413 = vector.broadcast %cst_230 : f32 to vector<16x384xf32>
    %414 = arith.addf %413, %412 : vector<16x384xf32>
    %415 = arith.divf %413, %414 : vector<16x384xf32>
    %416 = vector.extract_strided_slice %415 {offsets = [0, 0], sizes = [16, 128], strides = [1, 1]} : vector<16x384xf32> to vector<16x128xf32>
    %417 = vector.extract_strided_slice %415 {offsets = [0, 128], sizes = [16, 128], strides = [1, 1]} : vector<16x384xf32> to vector<16x128xf32>
    %418 = vector.extract_strided_slice %415 {offsets = [0, 256], sizes = [16, 128], strides = [1, 1]} : vector<16x384xf32> to vector<16x128xf32>
    %419 = vector.extract_strided_slice %409 {offsets = [0, 384], sizes = [16, 128], strides = [1, 1]} : vector<16x512xf32> to vector<16x128xf32>
    %420 = math.tanh %419 : vector<16x128xf32>
    %c1_231 = arith.constant 1 : index
    %c0_232 = arith.constant 0 : index
    %c0_233 = arith.constant 0 : index
    %421 = vector.load %arg13[%c1_231, %c0_232, %c0_233] : memref<2x16x128xf32, #tpu.memory_space<vmem>>, vector<1x16x128xf32>
    %422 = vector.shape_cast %421 : vector<1x16x128xf32> to vector<16x128xf32>
    %423 = arith.mulf %417, %422 : vector<16x128xf32>
    %424 = arith.mulf %416, %420 : vector<16x128xf32>
    %425 = arith.addf %423, %424 : vector<16x128xf32>
    %426 = math.tanh %425 : vector<16x128xf32>
    %427 = arith.mulf %418, %426 : vector<16x128xf32>
    %428 = arith.truncf %427 : vector<16x128xf32> to vector<16x128xbf16>
    %c1_234 = arith.constant 1 : index
    %c0_235 = arith.constant 0 : index
    %c0_236 = arith.constant 0 : index
    %429 = vector.load %arg13[%c1_234, %c0_235, %c0_236] : memref<2x16x128xf32, #tpu.memory_space<vmem>>, vector<1x16x128xf32>
    %430 = vector.shape_cast %429 : vector<1x16x128xf32> to vector<16x128xf32>
    %431 = vector.shape_cast %425 : vector<16x128xf32> to vector<1x16x128xf32>
    tpu.vector_store %arg13[%c1_234, %c0_235, %c0_236], %431 {strides = array<i32>} : memref<2x16x128xf32, #tpu.memory_space<vmem>>, vector<1x16x128xf32>,
    %c1_237 = arith.constant 1 : index
    %c0_238 = arith.constant 0 : index
    %c0_239 = arith.constant 0 : index
    %432 = vector.load %arg12[%c1_237, %c0_238, %c0_239] : memref<2x16x128xbf16, #tpu.memory_space<vmem>>, vector<1x16x128xbf16>
    %433 = vector.shape_cast %432 : vector<1x16x128xbf16> to vector<16x128xbf16>
    %434 = vector.shape_cast %428 : vector<16x128xbf16> to vector<1x16x128xbf16>
    tpu.vector_store %arg12[%c1_237, %c0_238, %c0_239], %434 {strides = array<i32>} : memref<2x16x128xbf16, #tpu.memory_space<vmem>>, vector<1x16x128xbf16>,
    %c3_i32_240 = arith.constant 3 : i32
    %c16_i32_241 = arith.constant 16 : i32
    %435 = arith.muli %c3_i32_240, %c16_i32_241 : i32
    %436 = tpu.assume_multiple %435, 16 : i32
    %c1_242 = arith.constant 1 : index
    %c0_243 = arith.constant 0 : index
    %c0_244 = arith.constant 0 : index
    %437 = vector.load %arg12[%c1_242, %c0_243, %c0_244] : memref<2x16x128xbf16, #tpu.memory_space<vmem>>, vector<1x16x128xbf16>
    %438 = vector.shape_cast %437 : vector<1x16x128xbf16> to vector<16x128xbf16>
    %439 = arith.index_cast %436 : i32 to index
    %c0_245 = arith.constant 0 : index
    %440 = vector.load %arg11[%439, %c0_245] : memref<128x512xbf16, #tpu.memory_space<vmem>>, vector<16x512xbf16>
    %c1_246 = arith.constant 1 : index
    %c0_247 = arith.constant 0 : index
    %c0_248 = arith.constant 0 : index
    %441 = vector.load %arg5[%c1_246, %c0_247, %c0_248] : memref<2x128x512xbf16, #tpu.memory_space<vmem>>, vector<1x128x512xbf16>
    %442 = vector.shape_cast %441 : vector<1x128x512xbf16> to vector<128x512xbf16>
    %cst_249 = arith.constant dense<0.000000e+00> : vector<16x512xf32>
    %443 = tpu.matmul %438, %442, %cst_249 {dimension_numbers = #tpu.dot_dimension_numbers<[1], [0], [0], [1], [0, 0, 1, 1], [], []>} : vector<16x128xbf16>, vector<128x512xbf16>, vector<16x512xf32> -> vector<16x512xf32>
    %444 = arith.extf %440 : vector<16x512xbf16> to vector<16x512xf32>
    %445 = arith.addf %444, %443 : vector<16x512xf32>
    %446 = vector.extract_strided_slice %445 {offsets = [0, 0], sizes = [16, 384], strides = [1, 1]} : vector<16x512xf32> to vector<16x384xf32>
    %447 = arith.negf %446 : vector<16x384xf32>
    %448 = math.exp %447 : vector<16x384xf32>
    %cst_250 = arith.constant 1.000000e+00 : f32
    %449 = vector.broadcast %cst_250 : f32 to vector<16x384xf32>
    %450 = arith.addf %449, %448 : vector<16x384xf32>
    %451 = arith.divf %449, %450 : vector<16x384xf32>
    %452 = vector.extract_strided_slice %451 {offsets = [0, 0], sizes = [16, 128], strides = [1, 1]} : vector<16x384xf32> to vector<16x128xf32>
    %453 = vector.extract_strided_slice %451 {offsets = [0, 128], sizes = [16, 128], strides = [1, 1]} : vector<16x384xf32> to vector<16x128xf32>
    %454 = vector.extract_strided_slice %451 {offsets = [0, 256], sizes = [16, 128], strides = [1, 1]} : vector<16x384xf32> to vector<16x128xf32>
    %455 = vector.extract_strided_slice %445 {offsets = [0, 384], sizes = [16, 128], strides = [1, 1]} : vector<16x512xf32> to vector<16x128xf32>
    %456 = math.tanh %455 : vector<16x128xf32>
    %c1_251 = arith.constant 1 : index
    %c0_252 = arith.constant 0 : index
    %c0_253 = arith.constant 0 : index
    %457 = vector.load %arg13[%c1_251, %c0_252, %c0_253] : memref<2x16x128xf32, #tpu.memory_space<vmem>>, vector<1x16x128xf32>
    %458 = vector.shape_cast %457 : vector<1x16x128xf32> to vector<16x128xf32>
    %459 = arith.mulf %453, %458 : vector<16x128xf32>
    %460 = arith.mulf %452, %456 : vector<16x128xf32>
    %461 = arith.addf %459, %460 : vector<16x128xf32>
    %462 = math.tanh %461 : vector<16x128xf32>
    %463 = arith.mulf %454, %462 : vector<16x128xf32>
    %464 = arith.truncf %463 : vector<16x128xf32> to vector<16x128xbf16>
    %c1_254 = arith.constant 1 : index
    %c0_255 = arith.constant 0 : index
    %c0_256 = arith.constant 0 : index
    %465 = vector.load %arg13[%c1_254, %c0_255, %c0_256] : memref<2x16x128xf32, #tpu.memory_space<vmem>>, vector<1x16x128xf32>
    %466 = vector.shape_cast %465 : vector<1x16x128xf32> to vector<16x128xf32>
    %467 = vector.shape_cast %461 : vector<16x128xf32> to vector<1x16x128xf32>
    tpu.vector_store %arg13[%c1_254, %c0_255, %c0_256], %467 {strides = array<i32>} : memref<2x16x128xf32, #tpu.memory_space<vmem>>, vector<1x16x128xf32>,
    %c1_257 = arith.constant 1 : index
    %c0_258 = arith.constant 0 : index
    %c0_259 = arith.constant 0 : index
    %468 = vector.load %arg12[%c1_257, %c0_258, %c0_259] : memref<2x16x128xbf16, #tpu.memory_space<vmem>>, vector<1x16x128xbf16>
    %469 = vector.shape_cast %468 : vector<1x16x128xbf16> to vector<16x128xbf16>
    %470 = vector.shape_cast %464 : vector<16x128xbf16> to vector<1x16x128xbf16>
    tpu.vector_store %arg12[%c1_257, %c0_258, %c0_259], %470 {strides = array<i32>} : memref<2x16x128xbf16, #tpu.memory_space<vmem>>, vector<1x16x128xbf16>,
    %c4_i32_260 = arith.constant 4 : i32
    %c16_i32_261 = arith.constant 16 : i32
    %471 = arith.muli %c4_i32_260, %c16_i32_261 : i32
    %472 = tpu.assume_multiple %471, 16 : i32
    %c1_262 = arith.constant 1 : index
    %c0_263 = arith.constant 0 : index
    %c0_264 = arith.constant 0 : index
    %473 = vector.load %arg12[%c1_262, %c0_263, %c0_264] : memref<2x16x128xbf16, #tpu.memory_space<vmem>>, vector<1x16x128xbf16>
    %474 = vector.shape_cast %473 : vector<1x16x128xbf16> to vector<16x128xbf16>
    %475 = arith.index_cast %472 : i32 to index
    %c0_265 = arith.constant 0 : index
    %476 = vector.load %arg11[%475, %c0_265] : memref<128x512xbf16, #tpu.memory_space<vmem>>, vector<16x512xbf16>
    %c1_266 = arith.constant 1 : index
    %c0_267 = arith.constant 0 : index
    %c0_268 = arith.constant 0 : index
    %477 = vector.load %arg5[%c1_266, %c0_267, %c0_268] : memref<2x128x512xbf16, #tpu.memory_space<vmem>>, vector<1x128x512xbf16>
    %478 = vector.shape_cast %477 : vector<1x128x512xbf16> to vector<128x512xbf16>
    %cst_269 = arith.constant dense<0.000000e+00> : vector<16x512xf32>
    %479 = tpu.matmul %474, %478, %cst_269 {dimension_numbers = #tpu.dot_dimension_numbers<[1], [0], [0], [1], [0, 0, 1, 1], [], []>} : vector<16x128xbf16>, vector<128x512xbf16>, vector<16x512xf32> -> vector<16x512xf32>
    %480 = arith.extf %476 : vector<16x512xbf16> to vector<16x512xf32>
    %481 = arith.addf %480, %479 : vector<16x512xf32>
    %482 = vector.extract_strided_slice %481 {offsets = [0, 0], sizes = [16, 384], strides = [1, 1]} : vector<16x512xf32> to vector<16x384xf32>
    %483 = arith.negf %482 : vector<16x384xf32>
    %484 = math.exp %483 : vector<16x384xf32>
    %cst_270 = arith.constant 1.000000e+00 : f32
    %485 = vector.broadcast %cst_270 : f32 to vector<16x384xf32>
    %486 = arith.addf %485, %484 : vector<16x384xf32>
    %487 = arith.divf %485, %486 : vector<16x384xf32>
    %488 = vector.extract_strided_slice %487 {offsets = [0, 0], sizes = [16, 128], strides = [1, 1]} : vector<16x384xf32> to vector<16x128xf32>
    %489 = vector.extract_strided_slice %487 {offsets = [0, 128], sizes = [16, 128], strides = [1, 1]} : vector<16x384xf32> to vector<16x128xf32>
    %490 = vector.extract_strided_slice %487 {offsets = [0, 256], sizes = [16, 128], strides = [1, 1]} : vector<16x384xf32> to vector<16x128xf32>
    %491 = vector.extract_strided_slice %481 {offsets = [0, 384], sizes = [16, 128], strides = [1, 1]} : vector<16x512xf32> to vector<16x128xf32>
    %492 = math.tanh %491 : vector<16x128xf32>
    %c1_271 = arith.constant 1 : index
    %c0_272 = arith.constant 0 : index
    %c0_273 = arith.constant 0 : index
    %493 = vector.load %arg13[%c1_271, %c0_272, %c0_273] : memref<2x16x128xf32, #tpu.memory_space<vmem>>, vector<1x16x128xf32>
    %494 = vector.shape_cast %493 : vector<1x16x128xf32> to vector<16x128xf32>
    %495 = arith.mulf %489, %494 : vector<16x128xf32>
    %496 = arith.mulf %488, %492 : vector<16x128xf32>
    %497 = arith.addf %495, %496 : vector<16x128xf32>
    %498 = math.tanh %497 : vector<16x128xf32>
    %499 = arith.mulf %490, %498 : vector<16x128xf32>
    %500 = arith.truncf %499 : vector<16x128xf32> to vector<16x128xbf16>
    %c1_274 = arith.constant 1 : index
    %c0_275 = arith.constant 0 : index
    %c0_276 = arith.constant 0 : index
    %501 = vector.load %arg13[%c1_274, %c0_275, %c0_276] : memref<2x16x128xf32, #tpu.memory_space<vmem>>, vector<1x16x128xf32>
    %502 = vector.shape_cast %501 : vector<1x16x128xf32> to vector<16x128xf32>
    %503 = vector.shape_cast %497 : vector<16x128xf32> to vector<1x16x128xf32>
    tpu.vector_store %arg13[%c1_274, %c0_275, %c0_276], %503 {strides = array<i32>} : memref<2x16x128xf32, #tpu.memory_space<vmem>>, vector<1x16x128xf32>,
    %c1_277 = arith.constant 1 : index
    %c0_278 = arith.constant 0 : index
    %c0_279 = arith.constant 0 : index
    %504 = vector.load %arg12[%c1_277, %c0_278, %c0_279] : memref<2x16x128xbf16, #tpu.memory_space<vmem>>, vector<1x16x128xbf16>
    %505 = vector.shape_cast %504 : vector<1x16x128xbf16> to vector<16x128xbf16>
    %506 = vector.shape_cast %500 : vector<16x128xbf16> to vector<1x16x128xbf16>
    tpu.vector_store %arg12[%c1_277, %c0_278, %c0_279], %506 {strides = array<i32>} : memref<2x16x128xbf16, #tpu.memory_space<vmem>>, vector<1x16x128xbf16>,
    %c5_i32_280 = arith.constant 5 : i32
    %c16_i32_281 = arith.constant 16 : i32
    %507 = arith.muli %c5_i32_280, %c16_i32_281 : i32
    %508 = tpu.assume_multiple %507, 16 : i32
    %c1_282 = arith.constant 1 : index
    %c0_283 = arith.constant 0 : index
    %c0_284 = arith.constant 0 : index
    %509 = vector.load %arg12[%c1_282, %c0_283, %c0_284] : memref<2x16x128xbf16, #tpu.memory_space<vmem>>, vector<1x16x128xbf16>
    %510 = vector.shape_cast %509 : vector<1x16x128xbf16> to vector<16x128xbf16>
    %511 = arith.index_cast %508 : i32 to index
    %c0_285 = arith.constant 0 : index
    %512 = vector.load %arg11[%511, %c0_285] : memref<128x512xbf16, #tpu.memory_space<vmem>>, vector<16x512xbf16>
    %c1_286 = arith.constant 1 : index
    %c0_287 = arith.constant 0 : index
    %c0_288 = arith.constant 0 : index
    %513 = vector.load %arg5[%c1_286, %c0_287, %c0_288] : memref<2x128x512xbf16, #tpu.memory_space<vmem>>, vector<1x128x512xbf16>
    %514 = vector.shape_cast %513 : vector<1x128x512xbf16> to vector<128x512xbf16>
    %cst_289 = arith.constant dense<0.000000e+00> : vector<16x512xf32>
    %515 = tpu.matmul %510, %514, %cst_289 {dimension_numbers = #tpu.dot_dimension_numbers<[1], [0], [0], [1], [0, 0, 1, 1], [], []>} : vector<16x128xbf16>, vector<128x512xbf16>, vector<16x512xf32> -> vector<16x512xf32>
    %516 = arith.extf %512 : vector<16x512xbf16> to vector<16x512xf32>
    %517 = arith.addf %516, %515 : vector<16x512xf32>
    %518 = vector.extract_strided_slice %517 {offsets = [0, 0], sizes = [16, 384], strides = [1, 1]} : vector<16x512xf32> to vector<16x384xf32>
    %519 = arith.negf %518 : vector<16x384xf32>
    %520 = math.exp %519 : vector<16x384xf32>
    %cst_290 = arith.constant 1.000000e+00 : f32
    %521 = vector.broadcast %cst_290 : f32 to vector<16x384xf32>
    %522 = arith.addf %521, %520 : vector<16x384xf32>
    %523 = arith.divf %521, %522 : vector<16x384xf32>
    %524 = vector.extract_strided_slice %523 {offsets = [0, 0], sizes = [16, 128], strides = [1, 1]} : vector<16x384xf32> to vector<16x128xf32>
    %525 = vector.extract_strided_slice %523 {offsets = [0, 128], sizes = [16, 128], strides = [1, 1]} : vector<16x384xf32> to vector<16x128xf32>
    %526 = vector.extract_strided_slice %523 {offsets = [0, 256], sizes = [16, 128], strides = [1, 1]} : vector<16x384xf32> to vector<16x128xf32>
    %527 = vector.extract_strided_slice %517 {offsets = [0, 384], sizes = [16, 128], strides = [1, 1]} : vector<16x512xf32> to vector<16x128xf32>
    %528 = math.tanh %527 : vector<16x128xf32>
    %c1_291 = arith.constant 1 : index
    %c0_292 = arith.constant 0 : index
    %c0_293 = arith.constant 0 : index
    %529 = vector.load %arg13[%c1_291, %c0_292, %c0_293] : memref<2x16x128xf32, #tpu.memory_space<vmem>>, vector<1x16x128xf32>
    %530 = vector.shape_cast %529 : vector<1x16x128xf32> to vector<16x128xf32>
    %531 = arith.mulf %525, %530 : vector<16x128xf32>
    %532 = arith.mulf %524, %528 : vector<16x128xf32>
    %533 = arith.addf %531, %532 : vector<16x128xf32>
    %534 = math.tanh %533 : vector<16x128xf32>
    %535 = arith.mulf %526, %534 : vector<16x128xf32>
    %536 = arith.truncf %535 : vector<16x128xf32> to vector<16x128xbf16>
    %c1_294 = arith.constant 1 : index
    %c0_295 = arith.constant 0 : index
    %c0_296 = arith.constant 0 : index
    %537 = vector.load %arg13[%c1_294, %c0_295, %c0_296] : memref<2x16x128xf32, #tpu.memory_space<vmem>>, vector<1x16x128xf32>
    %538 = vector.shape_cast %537 : vector<1x16x128xf32> to vector<16x128xf32>
    %539 = vector.shape_cast %533 : vector<16x128xf32> to vector<1x16x128xf32>
    tpu.vector_store %arg13[%c1_294, %c0_295, %c0_296], %539 {strides = array<i32>} : memref<2x16x128xf32, #tpu.memory_space<vmem>>, vector<1x16x128xf32>,
    %c1_297 = arith.constant 1 : index
    %c0_298 = arith.constant 0 : index
    %c0_299 = arith.constant 0 : index
    %540 = vector.load %arg12[%c1_297, %c0_298, %c0_299] : memref<2x16x128xbf16, #tpu.memory_space<vmem>>, vector<1x16x128xbf16>
    %541 = vector.shape_cast %540 : vector<1x16x128xbf16> to vector<16x128xbf16>
    %542 = vector.shape_cast %536 : vector<16x128xbf16> to vector<1x16x128xbf16>
    tpu.vector_store %arg12[%c1_297, %c0_298, %c0_299], %542 {strides = array<i32>} : memref<2x16x128xbf16, #tpu.memory_space<vmem>>, vector<1x16x128xbf16>,
    %c6_i32_300 = arith.constant 6 : i32
    %c16_i32_301 = arith.constant 16 : i32
    %543 = arith.muli %c6_i32_300, %c16_i32_301 : i32
    %544 = tpu.assume_multiple %543, 16 : i32
    %c1_302 = arith.constant 1 : index
    %c0_303 = arith.constant 0 : index
    %c0_304 = arith.constant 0 : index
    %545 = vector.load %arg12[%c1_302, %c0_303, %c0_304] : memref<2x16x128xbf16, #tpu.memory_space<vmem>>, vector<1x16x128xbf16>
    %546 = vector.shape_cast %545 : vector<1x16x128xbf16> to vector<16x128xbf16>
    %547 = arith.index_cast %544 : i32 to index
    %c0_305 = arith.constant 0 : index
    %548 = vector.load %arg11[%547, %c0_305] : memref<128x512xbf16, #tpu.memory_space<vmem>>, vector<16x512xbf16>
    %c1_306 = arith.constant 1 : index
    %c0_307 = arith.constant 0 : index
    %c0_308 = arith.constant 0 : index
    %549 = vector.load %arg5[%c1_306, %c0_307, %c0_308] : memref<2x128x512xbf16, #tpu.memory_space<vmem>>, vector<1x128x512xbf16>
    %550 = vector.shape_cast %549 : vector<1x128x512xbf16> to vector<128x512xbf16>
    %cst_309 = arith.constant dense<0.000000e+00> : vector<16x512xf32>
    %551 = tpu.matmul %546, %550, %cst_309 {dimension_numbers = #tpu.dot_dimension_numbers<[1], [0], [0], [1], [0, 0, 1, 1], [], []>} : vector<16x128xbf16>, vector<128x512xbf16>, vector<16x512xf32> -> vector<16x512xf32>
    %552 = arith.extf %548 : vector<16x512xbf16> to vector<16x512xf32>
    %553 = arith.addf %552, %551 : vector<16x512xf32>
    %554 = vector.extract_strided_slice %553 {offsets = [0, 0], sizes = [16, 384], strides = [1, 1]} : vector<16x512xf32> to vector<16x384xf32>
    %555 = arith.negf %554 : vector<16x384xf32>
    %556 = math.exp %555 : vector<16x384xf32>
    %cst_310 = arith.constant 1.000000e+00 : f32
    %557 = vector.broadcast %cst_310 : f32 to vector<16x384xf32>
    %558 = arith.addf %557, %556 : vector<16x384xf32>
    %559 = arith.divf %557, %558 : vector<16x384xf32>
    %560 = vector.extract_strided_slice %559 {offsets = [0, 0], sizes = [16, 128], strides = [1, 1]} : vector<16x384xf32> to vector<16x128xf32>
    %561 = vector.extract_strided_slice %559 {offsets = [0, 128], sizes = [16, 128], strides = [1, 1]} : vector<16x384xf32> to vector<16x128xf32>
    %562 = vector.extract_strided_slice %559 {offsets = [0, 256], sizes = [16, 128], strides = [1, 1]} : vector<16x384xf32> to vector<16x128xf32>
    %563 = vector.extract_strided_slice %553 {offsets = [0, 384], sizes = [16, 128], strides = [1, 1]} : vector<16x512xf32> to vector<16x128xf32>
    %564 = math.tanh %563 : vector<16x128xf32>
    %c1_311 = arith.constant 1 : index
    %c0_312 = arith.constant 0 : index
    %c0_313 = arith.constant 0 : index
    %565 = vector.load %arg13[%c1_311, %c0_312, %c0_313] : memref<2x16x128xf32, #tpu.memory_space<vmem>>, vector<1x16x128xf32>
    %566 = vector.shape_cast %565 : vector<1x16x128xf32> to vector<16x128xf32>
    %567 = arith.mulf %561, %566 : vector<16x128xf32>
    %568 = arith.mulf %560, %564 : vector<16x128xf32>
    %569 = arith.addf %567, %568 : vector<16x128xf32>
    %570 = math.tanh %569 : vector<16x128xf32>
    %571 = arith.mulf %562, %570 : vector<16x128xf32>
    %572 = arith.truncf %571 : vector<16x128xf32> to vector<16x128xbf16>
    %c1_314 = arith.constant 1 : index
    %c0_315 = arith.constant 0 : index
    %c0_316 = arith.constant 0 : index
    %573 = vector.load %arg13[%c1_314, %c0_315, %c0_316] : memref<2x16x128xf32, #tpu.memory_space<vmem>>, vector<1x16x128xf32>
    %574 = vector.shape_cast %573 : vector<1x16x128xf32> to vector<16x128xf32>
    %575 = vector.shape_cast %569 : vector<16x128xf32> to vector<1x16x128xf32>
    tpu.vector_store %arg13[%c1_314, %c0_315, %c0_316], %575 {strides = array<i32>} : memref<2x16x128xf32, #tpu.memory_space<vmem>>, vector<1x16x128xf32>,
    %c1_317 = arith.constant 1 : index
    %c0_318 = arith.constant 0 : index
    %c0_319 = arith.constant 0 : index
    %576 = vector.load %arg12[%c1_317, %c0_318, %c0_319] : memref<2x16x128xbf16, #tpu.memory_space<vmem>>, vector<1x16x128xbf16>
    %577 = vector.shape_cast %576 : vector<1x16x128xbf16> to vector<16x128xbf16>
    %578 = vector.shape_cast %572 : vector<16x128xbf16> to vector<1x16x128xbf16>
    tpu.vector_store %arg12[%c1_317, %c0_318, %c0_319], %578 {strides = array<i32>} : memref<2x16x128xbf16, #tpu.memory_space<vmem>>, vector<1x16x128xbf16>,
    %c7_i32_320 = arith.constant 7 : i32
    %c16_i32_321 = arith.constant 16 : i32
    %579 = arith.muli %c7_i32_320, %c16_i32_321 : i32
    %580 = tpu.assume_multiple %579, 16 : i32
    %c1_322 = arith.constant 1 : index
    %c0_323 = arith.constant 0 : index
    %c0_324 = arith.constant 0 : index
    %581 = vector.load %arg12[%c1_322, %c0_323, %c0_324] : memref<2x16x128xbf16, #tpu.memory_space<vmem>>, vector<1x16x128xbf16>
    %582 = vector.shape_cast %581 : vector<1x16x128xbf16> to vector<16x128xbf16>
    %583 = arith.index_cast %580 : i32 to index
    %c0_325 = arith.constant 0 : index
    %584 = vector.load %arg11[%583, %c0_325] : memref<128x512xbf16, #tpu.memory_space<vmem>>, vector<16x512xbf16>
    %c1_326 = arith.constant 1 : index
    %c0_327 = arith.constant 0 : index
    %c0_328 = arith.constant 0 : index
    %585 = vector.load %arg5[%c1_326, %c0_327, %c0_328] : memref<2x128x512xbf16, #tpu.memory_space<vmem>>, vector<1x128x512xbf16>
    %586 = vector.shape_cast %585 : vector<1x128x512xbf16> to vector<128x512xbf16>
    %cst_329 = arith.constant dense<0.000000e+00> : vector<16x512xf32>
    %587 = tpu.matmul %582, %586, %cst_329 {dimension_numbers = #tpu.dot_dimension_numbers<[1], [0], [0], [1], [0, 0, 1, 1], [], []>} : vector<16x128xbf16>, vector<128x512xbf16>, vector<16x512xf32> -> vector<16x512xf32>
    %588 = arith.extf %584 : vector<16x512xbf16> to vector<16x512xf32>
    %589 = arith.addf %588, %587 : vector<16x512xf32>
    %590 = vector.extract_strided_slice %589 {offsets = [0, 0], sizes = [16, 384], strides = [1, 1]} : vector<16x512xf32> to vector<16x384xf32>
    %591 = arith.negf %590 : vector<16x384xf32>
    %592 = math.exp %591 : vector<16x384xf32>
    %cst_330 = arith.constant 1.000000e+00 : f32
    %593 = vector.broadcast %cst_330 : f32 to vector<16x384xf32>
    %594 = arith.addf %593, %592 : vector<16x384xf32>
    %595 = arith.divf %593, %594 : vector<16x384xf32>
    %596 = vector.extract_strided_slice %595 {offsets = [0, 0], sizes = [16, 128], strides = [1, 1]} : vector<16x384xf32> to vector<16x128xf32>
    %597 = vector.extract_strided_slice %595 {offsets = [0, 128], sizes = [16, 128], strides = [1, 1]} : vector<16x384xf32> to vector<16x128xf32>
    %598 = vector.extract_strided_slice %595 {offsets = [0, 256], sizes = [16, 128], strides = [1, 1]} : vector<16x384xf32> to vector<16x128xf32>
    %599 = vector.extract_strided_slice %589 {offsets = [0, 384], sizes = [16, 128], strides = [1, 1]} : vector<16x512xf32> to vector<16x128xf32>
    %600 = math.tanh %599 : vector<16x128xf32>
    %c1_331 = arith.constant 1 : index
    %c0_332 = arith.constant 0 : index
    %c0_333 = arith.constant 0 : index
    %601 = vector.load %arg13[%c1_331, %c0_332, %c0_333] : memref<2x16x128xf32, #tpu.memory_space<vmem>>, vector<1x16x128xf32>
    %602 = vector.shape_cast %601 : vector<1x16x128xf32> to vector<16x128xf32>
    %603 = arith.mulf %597, %602 : vector<16x128xf32>
    %604 = arith.mulf %596, %600 : vector<16x128xf32>
    %605 = arith.addf %603, %604 : vector<16x128xf32>
    %606 = math.tanh %605 : vector<16x128xf32>
    %607 = arith.mulf %598, %606 : vector<16x128xf32>
    %608 = arith.truncf %607 : vector<16x128xf32> to vector<16x128xbf16>
    %c1_334 = arith.constant 1 : index
    %c0_335 = arith.constant 0 : index
    %c0_336 = arith.constant 0 : index
    %609 = vector.load %arg13[%c1_334, %c0_335, %c0_336] : memref<2x16x128xf32, #tpu.memory_space<vmem>>, vector<1x16x128xf32>
    %610 = vector.shape_cast %609 : vector<1x16x128xf32> to vector<16x128xf32>
    %611 = vector.shape_cast %605 : vector<16x128xf32> to vector<1x16x128xf32>
    tpu.vector_store %arg13[%c1_334, %c0_335, %c0_336], %611 {strides = array<i32>} : memref<2x16x128xf32, #tpu.memory_space<vmem>>, vector<1x16x128xf32>,
    %c1_337 = arith.constant 1 : index
    %c0_338 = arith.constant 0 : index
    %c0_339 = arith.constant 0 : index
    %612 = vector.load %arg12[%c1_337, %c0_338, %c0_339] : memref<2x16x128xbf16, #tpu.memory_space<vmem>>, vector<1x16x128xbf16>
    %613 = vector.shape_cast %612 : vector<1x16x128xbf16> to vector<16x128xbf16>
    %614 = vector.shape_cast %608 : vector<16x128xbf16> to vector<1x16x128xbf16>
    tpu.vector_store %arg12[%c1_337, %c0_338, %c0_339], %614 {strides = array<i32>} : memref<2x16x128xbf16, #tpu.memory_space<vmem>>, vector<1x16x128xbf16>,
    %c8_i32_340 = arith.constant 8 : i32
    %c0_i32_341 = arith.constant 0 : i32
    %615 = arith.cmpi eq, %arg1, %c0_i32_341 : i32
    %616 = arith.extui %615 : i1 to i32
    %c0_i32_342 = arith.constant 0 : i32
    %617 = arith.cmpi ne, %616, %c0_i32_342 : i32
    scf.if %617 {
      %c1_343 = arith.constant 1 : index
      %c0_344 = arith.constant 0 : index
      %c0_345 = arith.constant 0 : index
      %618 = vector.load %arg12[%c1_343, %c0_344, %c0_345] : memref<2x16x128xbf16, #tpu.memory_space<vmem>>, vector<1x16x128xbf16>
      %619 = vector.shape_cast %618 : vector<1x16x128xbf16> to vector<16x128xbf16>
      %c0_346 = arith.constant 0 : index
      %c0_347 = arith.constant 0 : index
      %620 = vector.load %arg7[%c0_346, %c0_347] : memref<128x1xbf16, #tpu.memory_space<vmem>>, vector<128x1xbf16>
      %cst_348 = arith.constant dense<0.000000e+00> : vector<16x1xf32>
      %621 = tpu.matmul %619, %620, %cst_348 {dimension_numbers = #tpu.dot_dimension_numbers<[1], [0], [0], [1], [0, 0, 1, 1], [], []>} : vector<16x128xbf16>, vector<128x1xbf16>, vector<16x1xf32> -> vector<16x1xf32>
      %c0_349 = arith.constant 0 : index
      %c0_350 = arith.constant 0 : index
      %622 = vector.load %arg8[%c0_349, %c0_350] : memref<1x1xf32, #tpu.memory_space<vmem>>, vector<1x1xf32>
      %623 = vector.broadcast %622 : vector<1x1xf32> to vector<16x1xf32>
      %624 = arith.addf %621, %623 : vector<16x1xf32>
      %c0_351 = arith.constant 0 : index
      %c0_352 = arith.constant 0 : index
      %625 = vector.load %arg9[%c0_351, %c0_352] : memref<16x1xf32, #tpu.memory_space<vmem>>, vector<16x1xf32>
      tpu.vector_store %arg9[%c0_351, %c0_352], %624 {strides = array<i32>} : memref<16x1xf32, #tpu.memory_space<vmem>>, vector<16x1xf32>,
    } else {
    }
    return
  }
  func.func @transform_0(%arg0: i32, %arg1: i32) -> (i32, i32, i32) {
    %c0_i32 = arith.constant 0 : i32
    %c0_i32_0 = arith.constant 0 : i32
    return %arg0, %arg1, %c0_i32 : i32, i32, i32
  }
  func.func @transform_1(%arg0: i32, %arg1: i32) -> (i32, i32) {
    %c0_i32 = arith.constant 0 : i32
    %c0_i32_0 = arith.constant 0 : i32
    %c0_i32_1 = arith.constant 0 : i32
    return %c0_i32, %c0_i32_0 : i32, i32
  }
  func.func @transform_2(%arg0: i32, %arg1: i32) -> (i32, i32, i32) {
    %c0_i32 = arith.constant 0 : i32
    %c0_i32_0 = arith.constant 0 : i32
    %c0_i32_1 = arith.constant 0 : i32
    %c0_i32_2 = arith.constant 0 : i32
    return %c0_i32, %c0_i32_0, %c0_i32_1 : i32, i32, i32
  }
  func.func @transform_3(%arg0: i32, %arg1: i32) -> (i32, i32, i32) {
    %c0_i32 = arith.constant 0 : i32
    %c0_i32_0 = arith.constant 0 : i32
    %c0_i32_1 = arith.constant 0 : i32
    %c0_i32_2 = arith.constant 0 : i32
    return %c0_i32, %c0_i32_0, %c0_i32_1 : i32, i32, i32
  }
  func.func @transform_4(%arg0: i32, %arg1: i32) -> (i32, i32, i32) {
    %c0_i32 = arith.constant 0 : i32
    %c0_i32_0 = arith.constant 0 : i32
    %c0_i32_1 = arith.constant 0 : i32
    %c0_i32_2 = arith.constant 0 : i32
    return %c0_i32, %c0_i32_0, %c0_i32_1 : i32, i32, i32
  }
  func.func @transform_5(%arg0: i32, %arg1: i32) -> (i32, i32) {
    %c0_i32 = arith.constant 0 : i32
    %c0_i32_0 = arith.constant 0 : i32
    %c0_i32_1 = arith.constant 0 : i32
    return %c0_i32, %c0_i32_0 : i32, i32
  }
  func.func @transform_6(%arg0: i32, %arg1: i32) -> (i32, i32) {
    %c0_i32 = arith.constant 0 : i32
    %c0_i32_0 = arith.constant 0 : i32
    %c0_i32_1 = arith.constant 0 : i32
    return %c0_i32, %c0_i32_0 : i32, i32
  }
  func.func @transform_7(%arg0: i32, %arg1: i32) -> (i32, i32) {
    %c0_i32 = arith.constant 0 : i32
    %c0_i32_0 = arith.constant 0 : i32
    return %arg0, %c0_i32 : i32, i32
  }
}

</mosaic_0001>

<bundles_post_ra>
// kernel: discriminator_forward.1
= control target key start
LH: loop header
LB: loop body
LE: loop exit
PB: predicated region body
PF: predicated region fallthrough
CT: control target
= control target key end

     0   :  { %v11146_v1 = vmov 0   ;;  %vm8848_vm0 = vmmov 0   ;;  %vm6927_vm1 = vcmask 7168   ;;  %s11134_s1 = inlined_call_operand.vmem [shape: bf16[128,512], index: 1, kind: input, shape index: {}]   ;;  %s11135_s0 = inlined_call_operand.vmem [shape: bf16[1,128,128], index: 0, kind: input, shape index: {}]   ;;  %s11136_s3 = inlined_call_operand.vmem [shape: bf16[2,128,512], index: 3, kind: input, shape index: {}]   ;;  %s11137_s4 = inlined_call_operand.vmem [shape: f32[2,1,512], index: 4, kind: input, shape index: {}]   ;;  %s11138_s2 = inlined_call_operand.vmem [shape: bf16[1,128,512], index: 2, kind: input, shape index: {}]   ;;  %s11139_s5 = inlined_call_operand.vmem [shape: bf16[128,1], index: 5, kind: input, shape index: {}]   ;;  %s11140_s6 = inlined_call_operand.<no memory space> [shape: f32[1,1], index: 6, kind: input, shape index: {}]   ;;  %s11141_s7 = inlined_call_operand.vmem [shape: f32[16,1], index: 7, kind: output, shape index: {}]  }
   0x1   :  { %v7919_v0 = vld [vmem:[%s11134_s1 + $0x4] ss:$16 sps:$4 sm:$0xff]   ;;  %350 = vmatprep.mubr.bf16.mxu0 %v11146_v1  ;;  %463 = vmatprep.mubr.bf16.mxu1 %v11146_v1  ;;  %v7921_v2 = vld [vmem:[%s11134_s1 + $0xc] ss:$16 sps:$4 sm:$0xff]   ;;  %v7923_v3 = vld [vmem:[%s11134_s1] ss:$16 sps:$4 sm:$0xff]  }
   0x2   :  { %318 = vmatprep.subr.bf16.mxu0 %v7919_v0  ;;  %v7924_v4 = vld [vmem:[%s11134_s1 + $0x8] ss:$16 sps:$4 sm:$0xff]   ;;  %431 = vmatprep.subr.bf16.mxu1 %v7921_v2  ;;  %v7925_v5 = vld [vmem:[%s11134_s1 + $0x24] ss:$16 sps:$4 sm:$0xff]   ;;  %v7927_v6 = vld [vmem:[%s11134_s1 + $0x2c] ss:$16 sps:$4 sm:$0xff]  }
   0x3   :  { %319 = vmatpush1.bf16.msra.mxu0 %v7923_v3  ;;  %432 = vmatpush1.bf16.msra.mxu1 %v7924_v4  ;;  %v7929_v7 = vld [vmem:[%s11134_s1 + $0x20] ss:$16 sps:$4 sm:$0xff]   ;;  %v7930_v8 = vld [vmem:[%s11134_s1 + $0x28] ss:$16 sps:$4 sm:$0xff]   ;;  %v7931_v9 = vld [vmem:[%s11134_s1 + $0x44] ss:$16 sps:$4 sm:$0xff]  }
   0x4   :  { %320 = vmatprep.subr.bf16.mxu0 %v7925_v5  ;;  %433 = vmatprep.subr.bf16.mxu1 %v7927_v6  ;;  %v7933_v10 = vld [vmem:[%s11134_s1 + $0x4c] ss:$16 sps:$4 sm:$0xff]   ;;  %v7935_v11 = vld [vmem:[%s11134_s1 + $0x40] ss:$16 sps:$4 sm:$0xff]   ;;  %v7936_v12 = vld [vmem:[%s11134_s1 + $0x48] ss:$16 sps:$4 sm:$0xff]  }
   0x5   :  { %v7937_v13 = vld [vmem:[%s11134_s1 + $0x64] ss:$16 sps:$4 sm:$0xff]   ;;  %v7939_v14 = vld [vmem:[%s11134_s1 + $0x6c] ss:$16 sps:$4 sm:$0xff]   ;;  %v7941_v15 = vld [vmem:[%s11134_s1 + $0x60] ss:$16 sps:$4 sm:$0xff]  }
   0x6   :  { %v7942_v16 = vld [vmem:[%s11134_s1 + $0x68] ss:$16 sps:$4 sm:$0xff]   ;;  %v7943_v17 = vld [vmem:[%s11134_s1 + $0x84] ss:$16 sps:$4 sm:$0xff]   ;;  %v7945_v18 = vld [vmem:[%s11134_s1 + $0x8c] ss:$16 sps:$4 sm:$0xff]  }
   0x7   :  { %321 = vmatpush1.bf16.msra.mxu0 %v7929_v7  ;;  %434 = vmatpush1.bf16.msra.mxu1 %v7930_v8  ;;  %v7947_v19 = vld [vmem:[%s11134_s1 + $0x80] ss:$16 sps:$4 sm:$0xff]   ;;  %v7948_v20 = vld [vmem:[%s11134_s1 + $0x88] ss:$16 sps:$4 sm:$0xff]   ;;  %v7949_v21 = vld [vmem:[%s11134_s1 + $0xa4] ss:$16 sps:$4 sm:$0xff]  }
   0x8   :  { %322 = vmatprep.subr.bf16.mxu0 %v7931_v9  ;;  %435 = vmatprep.subr.bf16.mxu1 %v7933_v10  ;;  %v7951_v22 = vld [vmem:[%s11134_s1 + $0xac] ss:$16 sps:$4 sm:$0xff]   ;;  %v7953_v23 = vld [vmem:[%s11134_s1 + $0xa0] ss:$16 sps:$4 sm:$0xff]   ;;  %v7954_v24 = vld [vmem:[%s11134_s1 + $0xa8] ss:$16 sps:$4 sm:$0xff]   ;;  %v90_v10 = vlaneseq }
   0x9   :  { %v7955_v25 = vld [vmem:[%s11134_s1 + $0xc4] ss:$16 sps:$4 sm:$0xff]   ;;  %v7957_v26 = vld [vmem:[%s11134_s1 + $0xcc] ss:$16 sps:$4 sm:$0xff]   ;;  %v7959_v27 = vld [vmem:[%s11134_s1 + $0xc0] ss:$16 sps:$4 sm:$0xff]  }
   0xa   :  { %v7960_v28 = vld [vmem:[%s11134_s1 + $0xc8] ss:$16 sps:$4 sm:$0xff]   ;;  %v7961_v29 = vld [vmem:[%s11134_s1 + $0xe4] ss:$16 sps:$4 sm:$0xff]   ;;  %v7963_v30 = vld [vmem:[%s11134_s1 + $0xec] ss:$16 sps:$4 sm:$0xff]  }
   0xb   :  { %323 = vmatpush1.bf16.msra.mxu0 %v7935_v11  ;;  %436 = vmatpush1.bf16.msra.mxu1 %v7936_v12  ;;  %v7965_v31 = vld [vmem:[%s11134_s1 + $0xe0] ss:$16 sps:$4 sm:$0xff]   ;;  %v7966_v32 = vld [vmem:[%s11134_s1 + $0xe8] ss:$16 sps:$4 sm:$0xff]   ;;  %v8990_v33 = vld [vmem:[%s11136_s3 + $0x4] ss:$16 sps:$4 sm:$0xff]  }
   0xc   :  { %324 = vmatprep.subr.bf16.mxu0 %v7937_v13  ;;  %437 = vmatprep.subr.bf16.mxu1 %v7939_v14  ;;  %v8995_v34 = vld [vmem:[%s11136_s3 + $0xc] ss:$16 sps:$4 sm:$0xff]   ;;  %v7967_v35 = vld [vmem:[%s11135_s0] sm:$0xff]   ;;  %v9015_v38 = vld [vmem:[%s11136_s3 + $0x8] ss:$16 sps:$4 sm:$0xff]   ;;  %v9255_v11 = vshrl.u32 %v90_v10, 7 }
   0xd   :  { %v9003_v36 = vld [vmem:[%s11136_s3] ss:$16 sps:$4 sm:$0xff]   ;;  %v9009_v37 = vld [vmem:[%s11136_s3 + $0x24] ss:$16 sps:$4 sm:$0xff]   ;;  %v9020_v39 = vld [vmem:[%s11136_s3 + $0x2c] ss:$16 sps:$4 sm:$0xff]  }
   0xe   :  { %v9027_v40 = vld [vmem:[%s11136_s3 + $0x20] ss:$16 sps:$4 sm:$0xff]   ;;  %v9034_v41 = vld [vmem:[%s11136_s3 + $0x44] ss:$16 sps:$4 sm:$0xff]   ;;  %v9040_v42 = vld [vmem:[%s11136_s3 + $0x28] ss:$16 sps:$4 sm:$0xff]  }
   0xf   :  { %325 = vmatpush1.bf16.msra.mxu0 %v7941_v15  ;;  %438 = vmatpush1.bf16.msra.mxu1 %v7942_v16  ;;  %v7971_v43 = vld [vmem:[%s11135_s0 + $0x8] sm:$0xff]   ;;  %v9050_v44 = vld [vmem:[%s11136_s3 + $0x40] ss:$16 sps:$4 sm:$0xff]   ;;  %v9056_v45 = vld [vmem:[%s11136_s3 + $0x64] ss:$16 sps:$4 sm:$0xff]   ;;  %11194 = vst [vmem:[#allocation8_spill] sm:$0xff] %v9255_v11 }
  0x10   :  { %326 = vmatprep.subr.bf16.mxu0 %v7943_v17  ;;  %439 = vmatprep.subr.bf16.mxu1 %v7945_v18  ;;  %v9061_v46 = vld [vmem:[%s11136_s3 + $0x4c] ss:$16 sps:$4 sm:$0xff]   ;;  %v9067_v47 = vld [vmem:[%s11136_s3 + $0x48] ss:$16 sps:$4 sm:$0xff]   ;;  %v9080_v49 = vld [vmem:[%s11136_s3 + $0x60] ss:$16 sps:$4 sm:$0xff]  }
  0x11   :  { %v9072_v48 = vld [vmem:[%s11136_s3 + $0x6c] ss:$16 sps:$4 sm:$0xff]   ;;  %v9086_v50 = vld [vmem:[%s11136_s3 + $0x84] ss:$16 sps:$4 sm:$0xff]   ;;  %v9093_v51 = vld [vmem:[%s11136_s3 + $0x68] ss:$16 sps:$4 sm:$0xff]  }
  0x12   :  { %v7978_v52 = vld [vmem:[%s11135_s0 + $0x10] sm:$0xff]   ;;  %v9108_v54 = vld [vmem:[%s11136_s3 + $0x8c] ss:$16 sps:$4 sm:$0xff]   ;;  %v9120_v56 = vld [vmem:[%s11136_s3 + $0x88] ss:$16 sps:$4 sm:$0xff]   ;;  %v11144_v12 = vsub.s32 2, %v9255_v11 }
  0x13   :  { %327 = vmatpush1.bf16.msra.mxu0 %v7947_v19  ;;  %440 = vmatpush1.bf16.msra.mxu1 %v7948_v20  ;;  %v9102_v53 = vld [vmem:[%s11136_s3 + $0x80] ss:$16 sps:$4 sm:$0xff]   ;;  %v9114_v55 = vld [vmem:[%s11136_s3 + $0xa4] ss:$16 sps:$4 sm:$0xff]   ;;  %v9125_v57 = vld [vmem:[%s11136_s3 + $0xac] ss:$16 sps:$4 sm:$0xff]  }
  0x14   :  { %328 = vmatprep.subr.bf16.mxu0 %v7949_v21  ;;  %441 = vmatprep.subr.bf16.mxu1 %v7951_v22  ;;  %v9130_v58 = vld [vmem:[%s11136_s3 + $0xa0] ss:$16 sps:$4 sm:$0xff]   ;;  %v9137_v59 = vld [vmem:[%s11136_s3 + $0xc4] ss:$16 sps:$4 sm:$0xff]   ;;  %v9142_v60 = vld [vmem:[%s11136_s3 + $0xa8] ss:$16 sps:$4 sm:$0xff]  }
  0x15   :  { %v7985_v61 = vld [vmem:[%s11135_s0 + $0x18] sm:$0xff]   ;;  %v9154_v62 = vld [vmem:[%s11136_s3 + $0xc0] ss:$16 sps:$4 sm:$0xff]   ;;  %v9165_v0 = vld [vmem:[%s11136_s3 + $0xe4] ss:$16 sps:$4 sm:$0xff]   ;;  %v11142_v13 = vsub.s32 3, %v9255_v11 }
  0x16   :  { %v9160_v63 = vld [vmem:[%s11136_s3 + $0xcc] ss:$16 sps:$4 sm:$0xff]   ;;  %v9170_v2 = vld [vmem:[%s11136_s3 + $0xc8] ss:$16 sps:$4 sm:$0xff]   ;;  %v9183_v4 = vld [vmem:[%s11136_s3 + $0xe0] ss:$16 sps:$4 sm:$0xff]  }
  0x17   :  { %329 = vmatpush1.bf16.msra.mxu0 %v7953_v23  ;;  %442 = vmatpush1.bf16.msra.mxu1 %v7954_v24  ;;  %v9176_v3 = vld [vmem:[%s11136_s3 + $0xec] ss:$16 sps:$4 sm:$0xff]   ;;  %v9190_v5 = vld [vmem:[%s11136_s3 + $0xe8] ss:$16 sps:$4 sm:$0xff]   ;;  %v7992_v6 = vld [vmem:[%s11135_s0 + $0x20] sm:$0xff]   ;;  %v11145_v14 = vsub.s32 0, %v9255_v11 }
  0x18   :  { %330 = vmatprep.subr.bf16.mxu0 %v7955_v25  ;;  %443 = vmatprep.subr.bf16.mxu1 %v7957_v26  ;;  %v7999_v7 = vld [vmem:[%s11135_s0 + $0x28] sm:$0xff]   ;;  %v8006_v8 = vld [vmem:[%s11135_s0 + $0x30] sm:$0xff]   ;;  %v8013_v9 = vld [vmem:[%s11135_s0 + $0x38] sm:$0xff]   ;;  %v11143_v16 = vsub.s32 1, %v9255_v11 }
  0x19   :  { %v88_v15 = vld [vmem:[%s11137_s4] sm:$0xf] }
  0x1a   :  { %v9266_v17 = vrot.slane %v88_v15, %v11144_v12  ;;  %v9270_v18 = vrot.slane %v88_v15, %v11142_v13  ;;  %v9274_v19 = vrot.slane %v88_v15, %v11145_v14  ;;  %v9278_v21 = vrot.slane %v88_v15, %v11143_v16 }
  0x1b   :  { %331 = vmatpush1.bf16.msra.mxu0 %v7959_v27  ;;  %444 = vmatpush1.bf16.msra.mxu1 %v7960_v28 }
  0x1c   :  { %332 = vmatprep.subr.bf16.mxu0 %v7961_v29  ;;  %445 = vmatprep.subr.bf16.mxu1 %v7963_v30 }
  0x1f   :  { %333 = vmatpush1.bf16.msra.mxu0 %v7965_v31  ;;  %446 = vmatpush1.bf16.msra.mxu1 %v7966_v32 }
  0x20   :  { %808 = vmatprep.subr.bf16.mxu0 %v8990_v33  ;;  %851 = vmatprep.subr.bf16.mxu1 %v8995_v34 }
  0x22   :  { %351 = vmatmul.mubr.bf16.vlgmr.msra.gmra.mrb[0].mxu0 %v7967_v35  ;;  %464 = vmatmul.mubr.bf16.vlgmr.msra.gmra.mrb[0].mxu1 %v7967_v35 }
  0x23   :  { %809 = vmatpush1.bf16.msra.mxu0 %v9003_v36  ;;  %360 = vmatprep.mubr.bf16.mxu0 %v11146_v1 }
  0x24   :  { %473 = vmatprep.mubr.bf16.mxu1 %v11146_v1  ;;  %810 = vmatprep.subr.bf16.mxu0 %v9009_v37 }
  0x25   :  { %852 = vmatpush1.bf16.msra.mxu1 %v9015_v38 }
  0x26   :  { %853 = vmatprep.subr.bf16.mxu1 %v9020_v39 }
  0x27   :  { %811 = vmatpush1.bf16.msra.mxu0 %v9027_v40 }
  0x28   :  { %812 = vmatprep.subr.bf16.mxu0 %v9034_v41 }
  0x29   :  { %854 = vmatpush1.bf16.msra.mxu1 %v9040_v42 }
  0x2a   :  { %361 = vmatmul.mubr.bf16.gmra.mrb[4].mxu0 %v7971_v43  ;;  %474 = vmatmul.mubr.bf16.gmra.mrb[4].mxu1 %v7971_v43 }
  0x2b   :  { %370 = vmatprep.mubr.bf16.mxu0 %v11146_v1  ;;  %483 = vmatprep.mubr.bf16.mxu1 %v11146_v1 }
  0x2c   :  { %813 = vmatpush1.bf16.msra.mxu0 %v9050_v44  ;;  %855 = vmatprep.subr.bf16.mxu1 %v9061_v46 }
  0x2d   :  { %814 = vmatprep.subr.bf16.mxu0 %v9056_v45  ;;  %856 = vmatpush1.bf16.msra.mxu1 %v9067_v47 }
  0x2e   :  { %857 = vmatprep.subr.bf16.mxu1 %v9072_v48 }
  0x30   :  { %815 = vmatpush1.bf16.msra.mxu0 %v9080_v49 }
  0x31   :  { %816 = vmatprep.subr.bf16.mxu0 %v9086_v50  ;;  %858 = vmatpush1.bf16.msra.mxu1 %v9093_v51 }
  0x32   :  { %371 = vmatmul.mubr.bf16.gmra.mrb[8].mxu0 %v7978_v52  ;;  %484 = vmatmul.mubr.bf16.gmra.mrb[8].mxu1 %v7978_v52 }
  0x33   :  { %380 = vmatprep.mubr.bf16.mxu0 %v11146_v1  ;;  %493 = vmatprep.mubr.bf16.mxu1 %v11146_v1 }
  0x34   :  { %817 = vmatpush1.bf16.msra.mxu0 %v9102_v53  ;;  %859 = vmatprep.subr.bf16.mxu1 %v9108_v54 }
  0x35   :  { %818 = vmatprep.subr.bf16.mxu0 %v9114_v55  ;;  %860 = vmatpush1.bf16.msra.mxu1 %v9120_v56 }
  0x36   :  { %861 = vmatprep.subr.bf16.mxu1 %v9125_v57 }
  0x38   :  { %819 = vmatpush1.bf16.msra.mxu0 %v9130_v58 }
  0x39   :  { %820 = vmatprep.subr.bf16.mxu0 %v9137_v59  ;;  %862 = vmatpush1.bf16.msra.mxu1 %v9142_v60 }
  0x3a   :  { %381 = vmatmul.mubr.bf16.gmra.mrb[12].mxu0 %v7985_v61  ;;  %494 = vmatmul.mubr.bf16.gmra.mrb[12].mxu1 %v7985_v61 }
  0x3b   :  { %390 = vmatprep.mubr.bf16.mxu0 %v11146_v1  ;;  %503 = vmatprep.mubr.bf16.mxu1 %v11146_v1 }
  0x3c   :  { %821 = vmatpush1.bf16.msra.mxu0 %v9154_v62  ;;  %863 = vmatprep.subr.bf16.mxu1 %v9160_v63 }
  0x3d   :  { %822 = vmatprep.subr.bf16.mxu0 %v9165_v0  ;;  %864 = vmatpush1.bf16.msra.mxu1 %v9170_v2 }
  0x3e   :  { %865 = vmatprep.subr.bf16.mxu1 %v9176_v3 }
  0x40   :  { %823 = vmatpush1.bf16.msra.mxu0 %v9183_v4 }
  0x41   :  { %866 = vmatpush1.bf16.msra.mxu1 %v9190_v5  ;;  %1165 = vmatprep.subr.bf16.mxu0 %v8990_v33 }
  0x42   :  { %391 = vmatmul.mubr.bf16.gmra.mrb[16].mxu0 %v7992_v6  ;;  %504 = vmatmul.mubr.bf16.gmra.mrb[16].mxu1 %v7992_v6 }
  0x43   :  { %400 = vmatprep.mubr.bf16.mxu0 %v11146_v1  ;;  %513 = vmatprep.mubr.bf16.mxu1 %v11146_v1 }
  0x44   :  { %1208 = vmatprep.subr.bf16.mxu1 %v8995_v34 }
  0x4a   :  { %401 = vmatmul.mubr.bf16.gmra.mrb[20].mxu0 %v7999_v7  ;;  %514 = vmatmul.mubr.bf16.gmra.mrb[20].mxu1 %v7999_v7 }
  0x4b   :  { %410 = vmatprep.mubr.bf16.mxu0 %v11146_v1  ;;  %523 = vmatprep.mubr.bf16.mxu1 %v11146_v1 }
  0x52   :  { %411 = vmatmul.mubr.bf16.gmra.mrb[24].mxu0 %v8006_v8  ;;  %524 = vmatmul.mubr.bf16.gmra.mrb[24].mxu1 %v8006_v8 }
  0x53   :  { %420 = vmatprep.mubr.bf16.mxu0 %v11146_v1  ;;  %533 = vmatprep.mubr.bf16.mxu1 %v11146_v1 }
  0x5a   :  { %421 = vmatmul.mubr.bf16.gmra.mrb[28].mxu0 %v8013_v9  ;;  %534 = vmatmul.mubr.bf16.gmra.mrb[28].mxu1 %v8013_v9 }
  0x5b   :  { %840 = vmatprep.mubr.bf16.mxu0 %v11146_v1  ;;  %883 = vmatprep.mubr.bf16.mxu1 %v11146_v1 }
  0x62   :  { %841 = vmatmul.mubr.bf16.vlgmr.msra.gmra.mrb[32].mxu0 %v11146_v1  ;;  %884 = vmatmul.mubr.bf16.vlgmr.msra.gmra.mrb[32].mxu1 %v11146_v1 }
  0x63   :  { %1166 = vmatpush1.bf16.msra.mxu0 %v9003_v36  ;;  %1209 = vmatpush1.bf16.msra.mxu1 %v9015_v38 }
  0x64   :  { %1167 = vmatprep.subr.bf16.mxu0 %v9009_v37  ;;  %1210 = vmatprep.subr.bf16.mxu1 %v9020_v39 }
  0x65   :  { %1197 = vmatprep.mubr.bf16.mxu0 %v11146_v1  ;;  %1240 = vmatprep.mubr.bf16.mxu1 %v11146_v1 }
  0x67   :  { %1168 = vmatpush1.bf16.msra.mxu0 %v9027_v40  ;;  %1211 = vmatpush1.bf16.msra.mxu1 %v9040_v42 }
  0x68   :  { %1169 = vmatprep.subr.bf16.mxu0 %v9034_v41  ;;  %1212 = vmatprep.subr.bf16.mxu1 %v9061_v46 }
  0x6b   :  { %1170 = vmatpush1.bf16.msra.mxu0 %v9050_v44  ;;  %1213 = vmatpush1.bf16.msra.mxu1 %v9067_v47 }
  0x6c   :  { %1171 = vmatprep.subr.bf16.mxu0 %v9056_v45  ;;  %1214 = vmatprep.subr.bf16.mxu1 %v9072_v48 }
  0x6f   :  { %1172 = vmatpush1.bf16.msra.mxu0 %v9080_v49  ;;  %1215 = vmatpush1.bf16.msra.mxu1 %v9093_v51 }
  0x70   :  { %1173 = vmatprep.subr.bf16.mxu0 %v9086_v50  ;;  %1216 = vmatprep.subr.bf16.mxu1 %v9108_v54 }
  0x73   :  { %1174 = vmatpush1.bf16.msra.mxu0 %v9102_v53  ;;  %1217 = vmatpush1.bf16.msra.mxu1 %v9120_v56 }
  0x74   :  { %1175 = vmatprep.subr.bf16.mxu0 %v9114_v55  ;;  %1218 = vmatprep.subr.bf16.mxu1 %v9125_v57 }
  0x77   :  { %1176 = vmatpush1.bf16.msra.mxu0 %v9130_v58  ;;  %1219 = vmatpush1.bf16.msra.mxu1 %v9142_v60 }
  0x78   :  { %1177 = vmatprep.subr.bf16.mxu0 %v9137_v59  ;;  %1220 = vmatprep.subr.bf16.mxu1 %v9160_v63 }
  0x7b   :  { %1178 = vmatpush1.bf16.msra.mxu0 %v9154_v62  ;;  %1221 = vmatpush1.bf16.msra.mxu1 %v9170_v2 }
  0x7c   :  { %1179 = vmatprep.subr.bf16.mxu0 %v9165_v0  ;;  %1222 = vmatprep.subr.bf16.mxu1 %v9176_v3 }
  0x7f   :  { %1180 = vmatpush1.bf16.msra.mxu0 %v9183_v4  ;;  %1223 = vmatpush1.bf16.msra.mxu1 %v9190_v5 }
  0xf5   :  { %v352_v20 = vpop.f32.mrb[0].mxu0  ;;  %v465_v22 = vpop.f32.mrb[0].mxu1 }
  0xf6   :  { %v354_v23 = vpop.f32.mrb[1].mxu0  ;;  %v466_v24 = vadd.f32 %v465_v22, %v9266_v17  ;;  %v467_v25 = vpop.f32.mrb[1].mxu1  ;;  %v353_v29 = vadd.f32 %v352_v20, %v9274_v19 }
  0xf7   :  { %v356_v26 = vpop.f32.mrb[2].mxu0  ;;  %v468_v27 = vadd.f32 %v467_v25, %v9270_v18  ;;  %v469_v28 = vpop.f32.mrb[2].mxu1  ;;  %v355_v34 = vadd.f32 %v354_v23, %v9278_v21 }
  0xf8   :  { %v357_v30 = vadd.f32 %v356_v26, %v9274_v19  ;;  %v358_v31 = vpop.f32.mrb[3].mxu0  ;;  %v470_v32 = vadd.f32 %v469_v28, %v9266_v17  ;;  %v471_v33 = vpop.f32.mrb[3].mxu1 }
  0xf9   :  { %v359_v35 = vadd.f32 %v358_v31, %v9278_v21  ;;  %v472_v36 = vadd.f32 %v471_v33, %v9270_v18 }
  0xfa   :  { %v9288_v37 = vpack.c.bf16 %v357_v30, %v353_v29  ;;  %v9290_v38 = vpack.c.bf16 %v470_v32, %v466_v24 }
  0xfb   :  { %v9292_v39 = vpack.c.bf16 %v359_v35, %v355_v34  ;;  %v9294_v40 = vpack.c.bf16 %v472_v36, %v468_v27 }
  0xfd   :  { %v362_v41 = vpop.f32.mrb[4].mxu0  ;;  %v475_v42 = vpop.f32.mrb[4].mxu1 }
  0xfe   :  { %v363_v43 = vadd.f32 %v362_v41, %v9274_v19  ;;  %v364_v44 = vpop.f32.mrb[5].mxu0  ;;  %v476_v45 = vadd.f32 %v475_v42, %v9266_v17  ;;  %v477_v46 = vpop.f32.mrb[5].mxu1 }
  0xff   :  { %v365_v47 = vadd.f32 %v364_v44, %v9278_v21  ;;  %v366_v48 = vpop.f32.mrb[6].mxu0  ;;  %v478_v49 = vadd.f32 %v477_v46, %v9270_v18  ;;  %v479_v50 = vpop.f32.mrb[6].mxu1 }
 0x100   :  { %v367_v51 = vadd.f32 %v366_v48, %v9274_v19  ;;  %v368_v52 = vpop.f32.mrb[7].mxu0  ;;  %v480_v53 = vadd.f32 %v479_v50, %v9266_v17  ;;  %v481_v54 = vpop.f32.mrb[7].mxu1 }
 0x101   :  { %v369_v55 = vadd.f32 %v368_v52, %v9278_v21  ;;  %v482_v56 = vadd.f32 %v481_v54, %v9270_v18 }
 0x102   :  { %v9304_v57 = vpack.c.bf16 %v367_v51, %v363_v43  ;;  %v9306_v58 = vpack.c.bf16 %v480_v53, %v476_v45 }
 0x103   :  { %v9308_v59 = vpack.c.bf16 %v369_v55, %v365_v47  ;;  %v9310_v60 = vpack.c.bf16 %v482_v56, %v478_v49 }
 0x105   :  { %v372_v61 = vpop.f32.mrb[8].mxu0  ;;  %v485_v62 = vpop.f32.mrb[8].mxu1  ;;  %v1256_v14 = vunpack.c.h.bf16 %v9308_v59 }
 0x106   :  { %v373_v63 = vadd.f32 %v372_v61, %v9274_v19  ;;  %v374_v0 = vpop.f32.mrb[9].mxu0  ;;  %v486_v2 = vadd.f32 %v485_v62, %v9266_v17  ;;  %v487_v6 = vpop.f32.mrb[9].mxu1 }
 0x107   :  { %v375_v7 = vadd.f32 %v374_v0, %v9278_v21  ;;  %v376_v8 = vpop.f32.mrb[10].mxu0  ;;  %v488_v9 = vadd.f32 %v487_v6, %v9270_v18  ;;  %v489_v10 = vpop.f32.mrb[10].mxu1 }
 0x108   :  { %v377_v15 = vadd.f32 %v376_v8, %v9274_v19  ;;  %v378_v20 = vpop.f32.mrb[11].mxu0  ;;  %v490_v22 = vadd.f32 %v489_v10, %v9266_v17  ;;  %v491_v23 = vpop.f32.mrb[11].mxu1 }
 0x109   :  { %v379_v24 = vadd.f32 %v378_v20, %v9278_v21  ;;  %v492_v25 = vadd.f32 %v491_v23, %v9270_v18 }
 0x10a   :  { %v9320_v26 = vpack.c.bf16 %v377_v15, %v373_v63  ;;  %v9322_v27 = vpack.c.bf16 %v490_v22, %v486_v2 }
 0x10b   :  { %v9324_v28 = vpack.c.bf16 %v379_v24, %v375_v7  ;;  %v9326_v29 = vpack.c.bf16 %v492_v25, %v488_v9 }
 0x10d   :  { %v382_v30 = vpop.f32.mrb[12].mxu0  ;;  %v495_v31 = vpop.f32.mrb[12].mxu1 }
 0x10e   :  { %v383_v32 = vadd.f32 %v382_v30, %v9274_v19  ;;  %v384_v33 = vpop.f32.mrb[13].mxu0  ;;  %v496_v34 = vadd.f32 %v495_v31, %v9266_v17  ;;  %v497_v35 = vpop.f32.mrb[13].mxu1 }
 0x10f   :  { %v385_v36 = vadd.f32 %v384_v33, %v9278_v21  ;;  %v386_v41 = vpop.f32.mrb[14].mxu0  ;;  %v498_v42 = vadd.f32 %v497_v35, %v9270_v18  ;;  %v499_v43 = vpop.f32.mrb[14].mxu1 }
 0x110   :  { %v387_v44 = vadd.f32 %v386_v41, %v9274_v19  ;;  %v388_v45 = vpop.f32.mrb[15].mxu0  ;;  %v500_v46 = vadd.f32 %v499_v43, %v9266_v17  ;;  %v501_v47 = vpop.f32.mrb[15].mxu1 }
 0x111   :  { %v389_v48 = vadd.f32 %v388_v45, %v9278_v21  ;;  %v502_v49 = vadd.f32 %v501_v47, %v9270_v18 }
 0x112   :  { %v9336_v50 = vpack.c.bf16 %v387_v44, %v383_v32  ;;  %v9338_v51 = vpack.c.bf16 %v500_v46, %v496_v34 }
 0x113   :  { %v9340_v52 = vpack.c.bf16 %v389_v48, %v385_v36  ;;  %v9342_v53 = vpack.c.bf16 %v502_v49, %v498_v42 }
 0x115   :  { %11195 = vst [vmem:[#allocation9_spill] sm:$0xff] %v9340_v52  ;;  %11196 = vst [vmem:[#allocation10_spill] sm:$0xff] %v9342_v53  ;;  %v392_v54 = vpop.f32.mrb[16].mxu0  ;;  %v505_v55 = vpop.f32.mrb[16].mxu1 }
 0x116   :  { %v393_v56 = vadd.f32 %v392_v54, %v9274_v19  ;;  %v394_v61 = vpop.f32.mrb[17].mxu0  ;;  %v506_v62 = vadd.f32 %v505_v55, %v9266_v17  ;;  %v507_v63 = vpop.f32.mrb[17].mxu1 }
 0x117   :  { %v395_v0 = vadd.f32 %v394_v61, %v9278_v21  ;;  %v396_v2 = vpop.f32.mrb[18].mxu0  ;;  %v508_v6 = vadd.f32 %v507_v63, %v9270_v18  ;;  %v509_v7 = vpop.f32.mrb[18].mxu1 }
 0x118   :  { %v397_v8 = vadd.f32 %v396_v2, %v9274_v19  ;;  %v398_v9 = vpop.f32.mrb[19].mxu0  ;;  %v510_v10 = vadd.f32 %v509_v7, %v9266_v17  ;;  %v511_v15 = vpop.f32.mrb[19].mxu1 }
 0x119   :  { %v399_v20 = vadd.f32 %v398_v9, %v9278_v21  ;;  %v512_v22 = vadd.f32 %v511_v15, %v9270_v18 }
 0x11a   :  { %v9352_v23 = vpack.c.bf16 %v397_v8, %v393_v56  ;;  %v9354_v24 = vpack.c.bf16 %v510_v10, %v506_v62 }
 0x11b   :  { %v9356_v25 = vpack.c.bf16 %v399_v20, %v395_v0  ;;  %v9358_v30 = vpack.c.bf16 %v512_v22, %v508_v6 }
 0x11c   :  { %11197 = vst [vmem:[#allocation11_spill] sm:$0xff] %v9352_v23  ;;  %11198 = vst [vmem:[#allocation12_spill] sm:$0xff] %v9354_v24 }
 0x11d   :  { %11199 = vst [vmem:[#allocation13_spill] sm:$0xff] %v9356_v25  ;;  %11200 = vst [vmem:[#allocation14_spill] sm:$0xff] %v9358_v30  ;;  %v402_v31 = vpop.f32.mrb[20].mxu0  ;;  %v515_v32 = vpop.f32.mrb[20].mxu1  ;;  %v1616_v30 = vunpack.c.h.bf16 %v9326_v29 }
 0x11e   :  { %v403_v33 = vadd.f32 %v402_v31, %v9274_v19  ;;  %v404_v34 = vpop.f32.mrb[21].mxu0  ;;  %v516_v35 = vadd.f32 %v515_v32, %v9266_v17  ;;  %v517_v36 = vpop.f32.mrb[21].mxu1 }
 0x11f   :  { %v405_v41 = vadd.f32 %v404_v34, %v9278_v21  ;;  %v406_v42 = vpop.f32.mrb[22].mxu0  ;;  %v518_v43 = vadd.f32 %v517_v36, %v9270_v18  ;;  %v519_v44 = vpop.f32.mrb[22].mxu1 }
 0x120   :  { %v407_v45 = vadd.f32 %v406_v42, %v9274_v19  ;;  %v408_v46 = vpop.f32.mrb[23].mxu0  ;;  %v520_v47 = vadd.f32 %v519_v44, %v9266_v17  ;;  %v521_v48 = vpop.f32.mrb[23].mxu1 }
 0x121   :  { %v409_v49 = vadd.f32 %v408_v46, %v9278_v21  ;;  %v522_v54 = vadd.f32 %v521_v48, %v9270_v18 }
 0x122   :  { %v9368_v55 = vpack.c.bf16 %v407_v45, %v403_v33  ;;  %v9370_v56 = vpack.c.bf16 %v520_v47, %v516_v35 }
 0x123   :  { %v9372_v61 = vpack.c.bf16 %v409_v49, %v405_v41  ;;  %v9374_v62 = vpack.c.bf16 %v522_v54, %v518_v43 }
 0x124   :  { %11201 = vst [vmem:[#allocation15_spill] sm:$0xff] %v9368_v55  ;;  %11202 = vst [vmem:[#allocation16_spill] sm:$0xff] %v9370_v56  ;;  %v1614_v55 = vunpack.c.h.bf16 %v9324_v28 }
 0x125   :  { %11203 = vst [vmem:[#allocation17_spill] sm:$0xff] %v9372_v61  ;;  %11204 = vst [vmem:[#allocation18_spill] sm:$0xff] %v9374_v62  ;;  %v412_v63 = vpop.f32.mrb[24].mxu0  ;;  %v525_v0 = vpop.f32.mrb[24].mxu1 }
 0x126   :  { %v413_v2 = vadd.f32 %v412_v63, %v9274_v19  ;;  %v414_v6 = vpop.f32.mrb[25].mxu0  ;;  %v526_v7 = vadd.f32 %v525_v0, %v9266_v17  ;;  %v527_v8 = vpop.f32.mrb[25].mxu1 }
 0x127   :  { %v415_v9 = vadd.f32 %v414_v6, %v9278_v21  ;;  %v416_v10 = vpop.f32.mrb[26].mxu0  ;;  %v528_v15 = vadd.f32 %v527_v8, %v9270_v18  ;;  %v529_v20 = vpop.f32.mrb[26].mxu1 }
 0x128   :  { %v417_v22 = vadd.f32 %v416_v10, %v9274_v19  ;;  %v418_v31 = vpop.f32.mrb[27].mxu0  ;;  %v530_v32 = vadd.f32 %v529_v20, %v9266_v17  ;;  %v531_v33 = vpop.f32.mrb[27].mxu1 }
 0x129   :  { %v419_v34 = vadd.f32 %v418_v31, %v9278_v21  ;;  %v532_v35 = vadd.f32 %v531_v33, %v9270_v18  ;;  %v894_v33 = vunpack.c.l.bf16 %v9288_v37 }
 0x12a   :  { %v9384_v36 = vpack.c.bf16 %v417_v22, %v413_v2  ;;  %v9386_v41 = vpack.c.bf16 %v530_v32, %v526_v7 }
 0x12b   :  { %v9388_v42 = vpack.c.bf16 %v419_v34, %v415_v9  ;;  %v9390_v43 = vpack.c.bf16 %v532_v35, %v528_v15 }
 0x12c   :  { %11205 = vst [vmem:[#allocation19_spill] sm:$0xff] %v9384_v36  ;;  %11206 = vst [vmem:[#allocation20_spill] sm:$0xff] %v9386_v41  ;;  %v1615_v41 = vunpack.c.h.bf16 %v9322_v27 }
 0x12d   :  { %11207 = vst [vmem:[#allocation21_spill] sm:$0xff] %v9388_v42  ;;  %11208 = vst [vmem:[#allocation22_spill] sm:$0xff] %v9390_v43  ;;  %v422_v44 = vpop.f32.mrb[28].mxu0  ;;  %v535_v45 = vpop.f32.mrb[28].mxu1  ;;  %v1613_v42 = vunpack.c.h.bf16 %v9320_v26 }
 0x12e   :  { %v423_v46 = vadd.f32 %v422_v44, %v9274_v19  ;;  %v424_v47 = vpop.f32.mrb[29].mxu0  ;;  %v536_v48 = vadd.f32 %v535_v45, %v9266_v17  ;;  %v537_v49 = vpop.f32.mrb[29].mxu1 }
 0x12f   :  { %v425_v54 = vadd.f32 %v424_v47, %v9278_v21  ;;  %v426_v63 = vpop.f32.mrb[30].mxu0  ;;  %v538_v0 = vadd.f32 %v537_v49, %v9270_v18  ;;  %v539_v2 = vpop.f32.mrb[30].mxu1  ;;  %v898_v47 = vunpack.c.h.bf16 %v9288_v37 }
 0x130   :  { %v427_v6 = vadd.f32 %v426_v63, %v9274_v19  ;;  %v428_v7 = vpop.f32.mrb[31].mxu0  ;;  %v540_v8 = vadd.f32 %v539_v2, %v9266_v17  ;;  %v541_v9 = vpop.f32.mrb[31].mxu1  ;;  %v896_v19 = vunpack.c.l.bf16 %v9290_v38  ;;  %v895_v17 = vunpack.c.l.bf16 %v9292_v39 }
 0x131   :  { %v429_v10 = vadd.f32 %v428_v7, %v9278_v21  ;;  %v542_v15 = vadd.f32 %v541_v9, %v9270_v18  ;;  %v897_v21 = vunpack.c.l.bf16 %v9294_v40  ;;  %v899_v2 = vunpack.c.h.bf16 %v9292_v39 }
 0x132   :  { %v9400_v20 = vpack.c.bf16 %v427_v6, %v423_v46  ;;  %v9402_v22 = vpack.c.bf16 %v540_v8, %v536_v48  ;;  %v900_v48 = vunpack.c.h.bf16 %v9290_v38  ;;  %v901_v6 = vunpack.c.h.bf16 %v9294_v40 }
 0x133   :  { %v9404_v31 = vpack.c.bf16 %v429_v10, %v425_v54  ;;  %v9406_v32 = vpack.c.bf16 %v542_v15, %v538_v0 }
 0x134   :  { %11209 = vst [vmem:[#allocation23_spill] sm:$0xff] %v9400_v20  ;;  %11210 = vst [vmem:[#allocation24_spill] sm:$0xff] %v9402_v22 }
 0x135   :  { %11211 = vst [vmem:[#allocation25_spill] sm:$0xff] %v9404_v31  ;;  %11212 = vst [vmem:[#allocation26_spill] sm:$0xff] %v9406_v32  ;;  %v842_v34 = vpop.f32.mrb[32].mxu0  ;;  %v885_v35 = vpop.f32.mrb[32].mxu1 }
 0x136   :  { %v902_v44 = vadd.f32 %v894_v33, %v842_v34  ;;  %v904_v18 = vadd.f32 %v896_v19, %v885_v35  ;;  %v844_v45 = vpop.f32.mrb[33].mxu0  ;;  %v887_v46 = vpop.f32.mrb[33].mxu1 }
 0x137   :  { %v903_v49 = vadd.f32 %v895_v17, %v844_v45  ;;  %v905_v54 = vadd.f32 %v897_v21, %v887_v46  ;;  %v846_v63 = vpop.f32.mrb[34].mxu0  ;;  %v889_v0 = vpop.f32.mrb[34].mxu1 }
 0x138   :  { %v7013_v7 = vmul.f32 -1.442695, %v902_v44  ;;  %v906_v8 = vadd.f32 %v898_v47, %v846_v63  ;;  %v908_v9 = vadd.f32 %v900_v48, %v889_v0  ;;  %v848_v10 = vpop.f32.mrb[35].mxu0  ;;  %v891_v15 = vpop.f32.mrb[35].mxu1  ;;  %v7015_v38 = vmul.f32 -1.442695, %v904_v18 }
 0x139   :  { %v7014_v33 = vmul.f32 -1.442695, %v903_v49  ;;  %v907_v19 = vadd.f32 %v899_v2, %v848_v10  ;;  %v909_v34 = vadd.f32 %v901_v6, %v891_v15 }
 0x13a   :  { %8319 = vpow2.f32 %v7013_v7  ;;  %v7016_v37 = vmul.f32 -1.442695, %v906_v8  ;;  %v7018_v17 = vmul.f32 -1.442695, %v908_v9 }
 0x13b   :  { %v7017_v35 = vmul.f32 -1.442695, %v907_v19  ;;  %8321 = vpow2.f32 %v7014_v33 }
 0x13c   :  { %8323 = vpow2.f32 %v7016_v37 }
 0x13d   :  { %8325 = vpow2.f32 %v7017_v35 }
 0x13e   :  { %8327 = vtanh.f32 %v905_v54 }
 0x13f   :  { %8329 = vpow2.f32 %v7015_v38 }
 0x140   :  { %8331 = vpow2.f32 %v7018_v17 }
 0x144   :  { %v8320_v21 = vpop.eup %8319 }
 0x145   :  { %v928_v39 = vadd.f32 1.0, %v8320_v21  ;;  %v8322_v40 = vpop.eup %8321 }
 0x146   :  { %v8324_v44 = vpop.eup %8323  ;;  %v929_v45 = vadd.f32 1.0, %v8322_v40 }
 0x147   :  { %8333 = vrcp.f32 %v928_v39  ;;  %v931_v46 = vadd.f32 1.0, %v8324_v44  ;;  %v8326_v47 = vpop.eup %8325 }
 0x148   :  { %8335 = vtanh.f32 %v909_v34  ;;  %v932_v48 = vadd.f32 1.0, %v8326_v47  ;;  %v8328_v49 = vpop.eup %8327  ;;  %v9441_v47 = vld [vmem:[%s11136_s3] ss:$16 sps:$4 sm:$0xff]  }
 0x149   :  { %8337 = vrcp.f32 %v929_v45  ;;  %v8330_v63 = vpop.eup %8329  ;;  %v9431_v45 = vld [vmem:[%s11136_s3 + $0x4] ss:$16 sps:$4 sm:$0xff]  }
 0x14a   :  { %8339 = vrcp.f32 %v931_v46  ;;  %v8332_v18 = vpop.eup %8331  ;;  %v930_v8 = vadd.f32 1.0, %v8330_v63  ;;  %v9436_v46 = vld [vmem:[%s11136_s3 + $0xc] ss:$16 sps:$4 sm:$0xff]   ;;  %1523 = vmatprep.subr.bf16.mxu0 %v9431_v45 }
 0x14b   :  { %8341 = vrcp.f32 %v932_v48  ;;  %v933_v19 = vadd.f32 1.0, %v8332_v18  ;;  %v9446_v48 = vld [vmem:[%s11136_s3 + $0x8] ss:$16 sps:$4 sm:$0xff]   ;;  %1566 = vmatprep.subr.bf16.mxu1 %v9436_v46  ;;  %v9460_v63 = vld [vmem:[%s11136_s3 + $0x2c] ss:$16 sps:$4 sm:$0xff]  }
 0x14c   :  { %8343 = vrcp.f32 %v930_v8  ;;  %v9465_v18 = vld [vmem:[%s11136_s3 + $0x20] ss:$16 sps:$4 sm:$0xff]   ;;  %v9497_v8 = vld [vmem:[%s11136_s3 + $0x64] ss:$16 sps:$4 sm:$0xff]  }
 0x151   :  { %v8334_v0 = vpop.eup %8333 }
 0x152   :  { %v8336_v2 = vpop.eup %8335  ;;  %v952_v54 = vmul.f32 %v8334_v0, %v8328_v49  ;;  %v9455_v49 = vld [vmem:[%s11136_s3 + $0x24] ss:$16 sps:$4 sm:$0xff]   ;;  %v9470_v0 = vld [vmem:[%s11136_s3 + $0x28] ss:$16 sps:$4 sm:$0xff]  }
 0x153   :  { %v8338_v6 = vpop.eup %8337 }
 0x154   :  { %v8340_v7 = vpop.eup %8339  ;;  %v950_v9 = vmul.f32 0.0, %v8338_v6  ;;  %v9487_v6 = vld [vmem:[%s11136_s3 + $0x40] ss:$16 sps:$4 sm:$0xff]  }
 0x155   :  { %v953_v10 = vmul.f32 %v8340_v7, %v8336_v2  ;;  %v8342_v15 = vpop.eup %8341  ;;  %v9479_v2 = vld [vmem:[%s11136_s3 + $0x44] ss:$16 sps:$4 sm:$0xff]   ;;  %v8832_v7 = vld [vmem:[%s11136_s3 + $0x48] ss:$16 sps:$4 sm:$0xff]  }
 0x156   :  { %v9416_v33 = vadd.f32 %v952_v54, %v950_v9  ;;  %v951_v34 = vmul.f32 0.0, %v8342_v15  ;;  %v8344_v35 = vpop.eup %8343  ;;  %v8831_v54 = vld [vmem:[%s11136_s3 + $0x4c] ss:$16 sps:$4 sm:$0xff]   ;;  %v8834_v15 = vld [vmem:[%s11136_s3 + $0x68] ss:$16 sps:$4 sm:$0xff]  }
 0x157   :  { %v8833_v9 = vld [vmem:[%s11136_s3 + $0x6c] ss:$16 sps:$4 sm:$0xff]  }
 0x158   :  { %8345 = vtanh.f32 %v9416_v33  ;;  %v9419_v37 = vadd.f32 %v953_v10, %v951_v34  ;;  %v9505_v10 = vld [vmem:[%s11136_s3 + $0x60] ss:$16 sps:$4 sm:$0xff]   ;;  %v9520_v34 = vld [vmem:[%s11136_s3 + $0x84] ss:$16 sps:$4 sm:$0xff]  }
 0x159   :  { %8347 = vrcp.f32 %v933_v19  ;;  %v9515_v19 = vld [vmem:[%s11136_s3 + $0x80] ss:$16 sps:$4 sm:$0xff]  }
 0x15a   :  { %8349 = vtanh.f32 %v9419_v37 }
 0x162   :  { %v8346_v38 = vpop.eup %8345 }
 0x163   :  { %v8348_v17 = vpop.eup %8347  ;;  %v958_v39 = vmul.f32 %v8346_v38, %v8344_v35  ;;  %v8835_v35 = vld [vmem:[%s11136_s3 + $0x8c] ss:$16 sps:$4 sm:$0xff]   ;;  %v8836_v38 = vld [vmem:[%s11136_s3 + $0x88] ss:$16 sps:$4 sm:$0xff]  }
 0x164   :  { %v8350_v21 = vpop.eup %8349 }
 0x165   :  { %v959_v40 = vmul.f32 %v8350_v21, %v8348_v17  ;;  %v8837_v17 = vld [vmem:[%s11136_s3 + $0xa4] ss:$16 sps:$4 sm:$0xff]   ;;  %v8838_v21 = vld [vmem:[%s11136_s3 + $0xac] ss:$16 sps:$4 sm:$0xff]  }
 0x167   :  { %v9422_v44 = vpack.c.bf16 %v959_v40, %v958_v39  ;;  %v8839_v39 = vld [vmem:[%s11136_s3 + $0xa0] ss:$16 sps:$4 sm:$0xff]   ;;  %v8840_v40 = vld [vmem:[%s11136_s3 + $0xa8] ss:$16 sps:$4 sm:$0xff]  }
 0x169   :  { %11213 = vst [vmem:[#allocation27_spill] sm:$0xff] %v9422_v44  ;;  %1198 = vmatmul.mubr.bf16.vlgmr.msra.gmra.mrb[36].mxu0 %v9422_v44  ;;  %1241 = vmatmul.mubr.bf16.vlgmr.msra.gmra.mrb[36].mxu1 %v9422_v44 }
 0x16a   :  { %1555 = vmatprep.mubr.bf16.mxu0 %v11146_v1  ;;  %1598 = vmatprep.mubr.bf16.mxu1 %v11146_v1  ;;  %v1258_v1 = vunpack.c.h.bf16 %v9310_v60 }
 0x16b   :  { %1524 = vmatpush1.bf16.msra.mxu0 %v9441_v47  ;;  %1567 = vmatpush1.bf16.msra.mxu1 %v9446_v48 }
 0x16c   :  { %1525 = vmatprep.subr.bf16.mxu0 %v9455_v49  ;;  %1568 = vmatprep.subr.bf16.mxu1 %v9460_v63 }
 0x16f   :  { %1526 = vmatpush1.bf16.msra.mxu0 %v9465_v18  ;;  %1569 = vmatpush1.bf16.msra.mxu1 %v9470_v0 }
 0x170   :  { %1570 = vmatprep.subr.bf16.mxu1 %v8831_v54  ;;  %1527 = vmatprep.subr.bf16.mxu0 %v9479_v2  ;;  %v8841_v54 = vld [vmem:[%s11136_s3 + $0xc4] ss:$16 sps:$4 sm:$0xff]  }
 0x173   :  { %1528 = vmatpush1.bf16.msra.mxu0 %v9487_v6  ;;  %1571 = vmatpush1.bf16.msra.mxu1 %v8832_v7  ;;  %v8842_v7 = vld [vmem:[%s11136_s3 + $0xcc] ss:$16 sps:$4 sm:$0xff]  }
 0x174   :  { %1572 = vmatprep.subr.bf16.mxu1 %v8833_v9  ;;  %1529 = vmatprep.subr.bf16.mxu0 %v9497_v8  ;;  %v8843_v9 = vld [vmem:[%s11136_s3 + $0xc0] ss:$16 sps:$4 sm:$0xff]  }
 0x177   :  { %1530 = vmatpush1.bf16.msra.mxu0 %v9505_v10  ;;  %1573 = vmatpush1.bf16.msra.mxu1 %v8834_v15  ;;  %v8844_v15 = vld [vmem:[%s11136_s3 + $0xc8] ss:$16 sps:$4 sm:$0xff]  }
 0x178   :  { %1574 = vmatprep.subr.bf16.mxu1 %v8835_v35  ;;  %1531 = vmatprep.subr.bf16.mxu0 %v9520_v34  ;;  %v8845_v35 = vld [vmem:[%s11136_s3 + $0xe4] ss:$16 sps:$4 sm:$0xff]  }
 0x17b   :  { %1532 = vmatpush1.bf16.msra.mxu0 %v9515_v19  ;;  %1575 = vmatpush1.bf16.msra.mxu1 %v8836_v38  ;;  %v1251_v38 = vunpack.c.l.bf16 %v9304_v57 }
 0x17c   :  { %1533 = vmatprep.subr.bf16.mxu0 %v8837_v17  ;;  %1576 = vmatprep.subr.bf16.mxu1 %v8838_v21  ;;  %v1253_v17 = vunpack.c.l.bf16 %v9306_v58 }
 0x17f   :  { %1534 = vmatpush1.bf16.msra.mxu0 %v8839_v39  ;;  %1577 = vmatpush1.bf16.msra.mxu1 %v8840_v40  ;;  %v1252_v40 = vunpack.c.l.bf16 %v9308_v59 }
 0x180   :  { %1535 = vmatprep.subr.bf16.mxu0 %v8841_v54  ;;  %1578 = vmatprep.subr.bf16.mxu1 %v8842_v7  ;;  %v1254_v54 = vunpack.c.l.bf16 %v9310_v60 }
 0x183   :  { %1536 = vmatpush1.bf16.msra.mxu0 %v8843_v9  ;;  %1579 = vmatpush1.bf16.msra.mxu1 %v8844_v15  ;;  %v1257_v15 = vunpack.c.h.bf16 %v9306_v58 }
 0x184   :  { %1537 = vmatprep.subr.bf16.mxu0 %v8845_v35  ;;  %1580 = vmatprep.subr.bf16.mxu1 %v9176_v3 }
 0x187   :  { %1538 = vmatpush1.bf16.msra.mxu0 %v9183_v4  ;;  %1581 = vmatpush1.bf16.msra.mxu1 %v9190_v5  ;;  %v1255_v5 = vunpack.c.h.bf16 %v9304_v57 }
 0x188   :  { %1881 = vmatprep.subr.bf16.mxu0 %v9431_v45  ;;  %1924 = vmatprep.subr.bf16.mxu1 %v9436_v46 }
 0x23c   :  { %v1199_v21 = vpop.f32.mrb[36].mxu0  ;;  %v1242_v39 = vpop.f32.mrb[36].mxu1 }
 0x23d   :  { %v1259_v7 = vadd.f32 %v1251_v38, %v1199_v21  ;;  %v1261_v3 = vadd.f32 %v1253_v17, %v1242_v39  ;;  %v1201_v9 = vpop.f32.mrb[37].mxu0  ;;  %v1244_v4 = vpop.f32.mrb[37].mxu1 }
 0x23e   :  { %v1260_v35 = vadd.f32 %v1252_v40, %v1201_v9  ;;  %v1262_v13 = vadd.f32 %v1254_v54, %v1244_v4  ;;  %v1203_v16 = vpop.f32.mrb[38].mxu0  ;;  %v1246_v12 = vpop.f32.mrb[38].mxu1 }
 0x23f   :  { %v7051_v11 = vmul.f32 -1.442695, %v1259_v7  ;;  %v1263_v32 = vadd.f32 %v1255_v5, %v1203_v16  ;;  %v1265_v31 = vadd.f32 %v1257_v15, %v1246_v12  ;;  %v1205_v22 = vpop.f32.mrb[39].mxu0  ;;  %v1248_v38 = vpop.f32.mrb[39].mxu1  ;;  %v7053_v58 = vmul.f32 -1.442695, %v1261_v3 }
 0x240   :  { %v7052_v17 = vmul.f32 -1.442695, %v1260_v35  ;;  %v1264_v21 = vadd.f32 %v1256_v14, %v1205_v22  ;;  %v1266_v39 = vadd.f32 %v1258_v1, %v1248_v38 }
 0x241   :  { %8351 = vpow2.f32 %v7051_v11  ;;  %v7054_v57 = vmul.f32 -1.442695, %v1263_v32  ;;  %v7056_v40 = vmul.f32 -1.442695, %v1265_v31 }
 0x242   :  { %v7055_v20 = vmul.f32 -1.442695, %v1264_v21  ;;  %8353 = vpow2.f32 %v7052_v17 }
 0x243   :  { %8355 = vpow2.f32 %v7054_v57 }
 0x244   :  { %8357 = vpow2.f32 %v7055_v20 }
 0x245   :  { %8359 = vtanh.f32 %v1262_v13 }
 0x246   :  { %8361 = vpow2.f32 %v7053_v58 }
 0x247   :  { %8363 = vpow2.f32 %v7056_v40 }
 0x24b   :  { %v8352_v54 = vpop.eup %8351 }
 0x24c   :  { %v1285_v59 = vadd.f32 1.0, %v8352_v54  ;;  %v8354_v60 = vpop.eup %8353 }
 0x24d   :  { %v8356_v12 = vpop.eup %8355  ;;  %v1286_v16 = vadd.f32 1.0, %v8354_v60 }
 0x24e   :  { %8365 = vrcp.f32 %v1285_v59  ;;  %v1288_v7 = vadd.f32 1.0, %v8356_v12  ;;  %v8358_v1 = vpop.eup %8357  ;;  %v9599_v12 = vld [vmem:[%s11136_s3 + $0x4c] ss:$16 sps:$4 sm:$0xff]  }
 0x24f   :  { %8367 = vtanh.f32 %v1266_v39  ;;  %v1289_v11 = vadd.f32 1.0, %v8358_v1  ;;  %v8360_v14 = vpop.eup %8359  ;;  %v9616_v1 = vld [vmem:[%s11136_s3 + $0x68] ss:$16 sps:$4 sm:$0xff]  }
 0x250   :  { %8369 = vrcp.f32 %v1286_v16  ;;  %v8362_v20 = vpop.eup %8361  ;;  %v9604_v16 = vld [vmem:[%s11136_s3 + $0x48] ss:$16 sps:$4 sm:$0xff]  }
 0x251   :  { %8371 = vrcp.f32 %v1288_v7  ;;  %v8364_v22 = vpop.eup %8363  ;;  %v1287_v4 = vadd.f32 1.0, %v8362_v20  ;;  %v9611_v7 = vld [vmem:[%s11136_s3 + $0x6c] ss:$16 sps:$4 sm:$0xff]   ;;  %v9633_v20 = vld [vmem:[%s11136_s3 + $0xa0] ss:$16 sps:$4 sm:$0xff]  }
 0x252   :  { %8373 = vrcp.f32 %v1289_v11  ;;  %v1290_v17 = vadd.f32 1.0, %v8364_v22  ;;  %v9623_v11 = vld [vmem:[%s11136_s3 + $0x88] ss:$16 sps:$4 sm:$0xff]   ;;  %v9638_v22 = vld [vmem:[%s11136_s3 + $0xa4] ss:$16 sps:$4 sm:$0xff]  }
 0x253   :  { %8375 = vrcp.f32 %v1287_v4  ;;  %v9674_v4 = vld [vmem:[%s11136_s3 + $0xe4] ss:$16 sps:$4 sm:$0xff]  }
 0x258   :  { %v8366_v31 = vpop.eup %8365 }
 0x259   :  { %v8368_v32 = vpop.eup %8367  ;;  %v1309_v13 = vmul.f32 %v8366_v31, %v8360_v14  ;;  %v9628_v14 = vld [vmem:[%s11136_s3 + $0x8c] ss:$16 sps:$4 sm:$0xff]  }
 0x25a   :  { %v8370_v3 = vpop.eup %8369  ;;  %v9643_v31 = vld [vmem:[%s11136_s3 + $0xac] ss:$16 sps:$4 sm:$0xff]  }
 0x25b   :  { %v8372_v9 = vpop.eup %8371  ;;  %v1307_v5 = vmul.f32 %v8370_v3, %v9416_v33  ;;  %v9663_v3 = vld [vmem:[%s11136_s3 + $0xc0] ss:$16 sps:$4 sm:$0xff]  }
 0x25c   :  { %v1310_v15 = vmul.f32 %v8372_v9, %v8368_v32  ;;  %v8374_v35 = vpop.eup %8373  ;;  %v9649_v32 = vld [vmem:[%s11136_s3 + $0xc4] ss:$16 sps:$4 sm:$0xff]   ;;  %v9668_v9 = vld [vmem:[%s11136_s3 + $0xcc] ss:$16 sps:$4 sm:$0xff]  }
 0x25d   :  { %v9571_v38 = vadd.f32 %v1309_v13, %v1307_v5  ;;  %v1308_v21 = vmul.f32 %v8374_v35, %v9419_v37  ;;  %v8376_v57 = vpop.eup %8375  ;;  %v11215_v37 = vmov 0   ;;  %v9656_v13 = vld [vmem:[%s11136_s3 + $0xa8] ss:$16 sps:$4 sm:$0xff]   ;;  %v9692_v35 = vld [vmem:[%s11136_s3 + $0xec] ss:$16 sps:$4 sm:$0xff]  }
 0x25e   :  { %v9680_v5 = vld [vmem:[%s11136_s3 + $0xc8] ss:$16 sps:$4 sm:$0xff]  }
 0x25f   :  { %8377 = vtanh.f32 %v9571_v38  ;;  %v9575_v39 = vadd.f32 %v1310_v15, %v1308_v21  ;;  %v9687_v15 = vld [vmem:[%s11136_s3 + $0xe0] ss:$16 sps:$4 sm:$0xff]   ;;  %v1609_v21 = vunpack.c.l.bf16 %v9320_v26 }
 0x260   :  { %8379 = vrcp.f32 %v1290_v17  ;;  %v9699_v17 = vld [vmem:[%s11136_s3 + $0xe8] ss:$16 sps:$4 sm:$0xff]  }
 0x261   :  { %8381 = vtanh.f32 %v9575_v39 }
 0x269   :  { %v8378_v58 = vpop.eup %8377 }
 0x26a   :  { %v8380_v40 = vpop.eup %8379  ;;  %v1315_v33 = vmul.f32 %v8378_v58, %v8376_v57  ;;  %v1611_v57 = vunpack.c.l.bf16 %v9322_v27 }
 0x26b   :  { %v8382_v54 = vpop.eup %8381 }
 0x26c   :  { %v1316_v59 = vmul.f32 %v8382_v54, %v8380_v40  ;;  %v1610_v54 = vunpack.c.l.bf16 %v9324_v28 }
 0x26e   :  { %v9578_v60 = vpack.c.bf16 %v1316_v59, %v1315_v33  ;;  %v1612_v33 = vunpack.c.l.bf16 %v9326_v29 }
 0x270   :  { %11214 = vst [vmem:[#allocation28_spill] sm:$0xff] %v9578_v60  ;;  %1556 = vmatmul.mubr.bf16.vlgmr.msra.gmra.mrb[40].mxu0 %v9578_v60  ;;  %1599 = vmatmul.mubr.bf16.vlgmr.msra.gmra.mrb[40].mxu1 %v9578_v60 }
 0x271   :  { %1882 = vmatpush1.bf16.msra.mxu0 %v9441_v47  ;;  %1925 = vmatpush1.bf16.msra.mxu1 %v9446_v48 }
 0x272   :  { %1883 = vmatprep.subr.bf16.mxu0 %v9455_v49  ;;  %1926 = vmatprep.subr.bf16.mxu1 %v9460_v63 }
 0x273   :  { %1913 = vmatprep.mubr.bf16.mxu0 %v11215_v37  ;;  %1956 = vmatprep.mubr.bf16.mxu1 %v11215_v37 }
 0x275   :  { %1884 = vmatpush1.bf16.msra.mxu0 %v9465_v18  ;;  %1927 = vmatpush1.bf16.msra.mxu1 %v9470_v0 }
 0x276   :  { %1885 = vmatprep.subr.bf16.mxu0 %v9479_v2  ;;  %1928 = vmatprep.subr.bf16.mxu1 %v9599_v12 }
 0x279   :  { %1886 = vmatpush1.bf16.msra.mxu0 %v9487_v6  ;;  %1929 = vmatpush1.bf16.msra.mxu1 %v9604_v16 }
 0x27a   :  { %1887 = vmatprep.subr.bf16.mxu0 %v9497_v8  ;;  %1930 = vmatprep.subr.bf16.mxu1 %v9611_v7 }
 0x27d   :  { %1888 = vmatpush1.bf16.msra.mxu0 %v9505_v10  ;;  %1931 = vmatpush1.bf16.msra.mxu1 %v9616_v1 }
 0x27e   :  { %1889 = vmatprep.subr.bf16.mxu0 %v9520_v34  ;;  %1932 = vmatprep.subr.bf16.mxu1 %v9628_v14 }
 0x281   :  { %1890 = vmatpush1.bf16.msra.mxu0 %v9515_v19  ;;  %1933 = vmatpush1.bf16.msra.mxu1 %v9623_v11 }
 0x282   :  { %1891 = vmatprep.subr.bf16.mxu0 %v9638_v22  ;;  %1934 = vmatprep.subr.bf16.mxu1 %v9643_v31 }
 0x285   :  { %1892 = vmatpush1.bf16.msra.mxu0 %v9633_v20  ;;  %1935 = vmatpush1.bf16.msra.mxu1 %v9656_v13 }
 0x286   :  { %1893 = vmatprep.subr.bf16.mxu0 %v9649_v32  ;;  %1936 = vmatprep.subr.bf16.mxu1 %v9668_v9 }
 0x289   :  { %1894 = vmatpush1.bf16.msra.mxu0 %v9663_v3  ;;  %1937 = vmatpush1.bf16.msra.mxu1 %v9680_v5 }
 0x28a   :  { %1895 = vmatprep.subr.bf16.mxu0 %v9674_v4  ;;  %1938 = vmatprep.subr.bf16.mxu1 %v9692_v35 }
 0x28d   :  { %1896 = vmatpush1.bf16.msra.mxu0 %v9687_v15  ;;  %1939 = vmatpush1.bf16.msra.mxu1 %v9699_v17 }
 0x28e   :  { %2239 = vmatprep.subr.bf16.mxu0 %v9431_v45  ;;  %2282 = vmatprep.subr.bf16.mxu1 %v9436_v46 }
 0x343   :  { %v1557_v58 = vpop.f32.mrb[40].mxu0  ;;  %v1600_v40 = vpop.f32.mrb[40].mxu1 }
 0x344   :  { %v1617_v59 = vadd.f32 %v1609_v21, %v1557_v58  ;;  %v1619_v60 = vadd.f32 %v1611_v57, %v1600_v40  ;;  %v1559_v44 = vpop.f32.mrb[41].mxu0  ;;  %v1602_v43 = vpop.f32.mrb[41].mxu1 }
 0x345   :  { %v1618_v36 = vadd.f32 %v1610_v54, %v1559_v44  ;;  %v1620_v62 = vadd.f32 %v1612_v33, %v1602_v43  ;;  %v1561_v61 = vpop.f32.mrb[42].mxu0  ;;  %v1604_v56 = vpop.f32.mrb[42].mxu1 }
 0x346   :  { %v7089_v25 = vmul.f32 -1.442695, %v1617_v59  ;;  %v1621_v24 = vadd.f32 %v1613_v42, %v1561_v61  ;;  %v1623_v23 = vadd.f32 %v1615_v41, %v1604_v56  ;;  %v1563_v53 = vpop.f32.mrb[43].mxu0  ;;  %v1606_v21 = vpop.f32.mrb[43].mxu1  ;;  %v7091_v27 = vmul.f32 -1.442695, %v1619_v60 }
 0x347   :  { %v7090_v57 = vmul.f32 -1.442695, %v1618_v36  ;;  %v1622_v58 = vadd.f32 %v1614_v55, %v1563_v53  ;;  %v1624_v40 = vadd.f32 %v1616_v30, %v1606_v21 }
 0x348   :  { %8383 = vpow2.f32 %v7089_v25  ;;  %v7092_v26 = vmul.f32 -1.442695, %v1621_v24  ;;  %v7094_v43 = vmul.f32 -1.442695, %v1623_v23 }
 0x349   :  { %v7093_v52 = vmul.f32 -1.442695, %v1622_v58  ;;  %8385 = vpow2.f32 %v7090_v57 }
 0x34a   :  { %8387 = vpow2.f32 %v7092_v26 }
 0x34b   :  { %8389 = vpow2.f32 %v7093_v52 }
 0x34c   :  { %8391 = vtanh.f32 %v1620_v62 }
 0x34d   :  { %8393 = vpow2.f32 %v7091_v27 }
 0x34e   :  { %8395 = vpow2.f32 %v7094_v43 }
 0x352   :  { %v8384_v44 = vpop.eup %8383 }
 0x353   :  { %v1643_v28 = vadd.f32 1.0, %v8384_v44  ;;  %v8386_v29 = vpop.eup %8385 }
 0x354   :  { %v8388_v56 = vpop.eup %8387  ;;  %v1644_v61 = vadd.f32 1.0, %v8386_v29 }
 0x355   :  { %8397 = vrcp.f32 %v1643_v28  ;;  %v1646_v36 = vadd.f32 1.0, %v8388_v56  ;;  %v8390_v53 = vpop.eup %8389  ;;  %v1969_v56 = vunpack.c.l.bf16 %v9338_v51 }
 0x356   :  { %8399 = vtanh.f32 %v1624_v40  ;;  %v1647_v24 = vadd.f32 1.0, %v8390_v53  ;;  %v8392_v25 = vpop.eup %8391  ;;  %v11216_v53 = vld [vmem:[#allocation9_spill] sm:$0xff] }
 0x357   :  { %8401 = vrcp.f32 %v1644_v61  ;;  %v8394_v52 = vpop.eup %8393 }
 0x358   :  { %8403 = vrcp.f32 %v1646_v36  ;;  %v8396_v30 = vpop.eup %8395  ;;  %v1645_v60 = vadd.f32 1.0, %v8394_v52 }
 0x359   :  { %8405 = vrcp.f32 %v1647_v24  ;;  %v1648_v57 = vadd.f32 1.0, %v8396_v30  ;;  %v1968_v24 = vunpack.c.l.bf16 %v11216_v53 }
 0x35a   :  { %8407 = vrcp.f32 %v1645_v60 }
 0x35f   :  { %v8398_v23 = vpop.eup %8397 }
 0x360   :  { %v8400_v55 = vpop.eup %8399  ;;  %v1667_v62 = vmul.f32 %v8398_v23, %v8392_v25  ;;  %v11217_v25 = vld [vmem:[#allocation10_spill] sm:$0xff] }
 0x361   :  { %v8402_v41 = vpop.eup %8401  ;;  %v1970_v52 = vunpack.c.l.bf16 %v11217_v25 }
 0x362   :  { %v8404_v42 = vpop.eup %8403  ;;  %v1665_v54 = vmul.f32 %v8402_v41, %v9571_v38  ;;  %v1971_v41 = vunpack.c.h.bf16 %v9336_v50 }
 0x363   :  { %v1668_v33 = vmul.f32 %v8404_v42, %v8400_v55  ;;  %v8406_v59 = vpop.eup %8405 }
 0x364   :  { %v9715_v21 = vadd.f32 %v1667_v62, %v1665_v54  ;;  %v1666_v58 = vmul.f32 %v8406_v59, %v9575_v39  ;;  %v8408_v26 = vpop.eup %8407  ;;  %v1967_v39 = vunpack.c.l.bf16 %v9336_v50  ;;  %v1974_v59 = vunpack.c.h.bf16 %v11217_v25 }
 0x366   :  { %8409 = vtanh.f32 %v9715_v21  ;;  %v9719_v40 = vadd.f32 %v1668_v33, %v1666_v58  ;;  %v1972_v33 = vunpack.c.h.bf16 %v11216_v53 }
 0x367   :  { %8411 = vrcp.f32 %v1648_v57 }
 0x368   :  { %8413 = vtanh.f32 %v9719_v40 }
 0x370   :  { %v8410_v27 = vpop.eup %8409 }
 0x371   :  { %v8412_v43 = vpop.eup %8411  ;;  %v1673_v38 = vmul.f32 %v8410_v27, %v8408_v26 }
 0x372   :  { %v8414_v44 = vpop.eup %8413 }
 0x373   :  { %v1674_v28 = vmul.f32 %v8414_v44, %v8412_v43 }
 0x375   :  { %v9722_v29 = vpack.c.bf16 %v1674_v28, %v1673_v38 }
 0x377   :  { %1914 = vmatmul.mubr.bf16.vlgmr.msra.gmra.mrb[44].mxu0 %v9722_v29  ;;  %1957 = vmatmul.mubr.bf16.vlgmr.msra.gmra.mrb[44].mxu1 %v9722_v29 }
 0x378   :  { %2240 = vmatpush1.bf16.msra.mxu0 %v9441_v47  ;;  %2283 = vmatpush1.bf16.msra.mxu1 %v9446_v48 }
 0x379   :  { %2241 = vmatprep.subr.bf16.mxu0 %v9455_v49  ;;  %2284 = vmatprep.subr.bf16.mxu1 %v9460_v63 }
 0x37a   :  { %2271 = vmatprep.mubr.bf16.mxu0 %v11215_v37  ;;  %2314 = vmatprep.mubr.bf16.mxu1 %v11215_v37 }
 0x37c   :  { %2242 = vmatpush1.bf16.msra.mxu0 %v9465_v18  ;;  %2285 = vmatpush1.bf16.msra.mxu1 %v9470_v0 }
 0x37d   :  { %2243 = vmatprep.subr.bf16.mxu0 %v9479_v2  ;;  %2286 = vmatprep.subr.bf16.mxu1 %v9599_v12 }
 0x380   :  { %2244 = vmatpush1.bf16.msra.mxu0 %v9487_v6  ;;  %2287 = vmatpush1.bf16.msra.mxu1 %v9604_v16 }
 0x381   :  { %2245 = vmatprep.subr.bf16.mxu0 %v9497_v8  ;;  %2288 = vmatprep.subr.bf16.mxu1 %v9611_v7 }
 0x384   :  { %2246 = vmatpush1.bf16.msra.mxu0 %v9505_v10  ;;  %2289 = vmatpush1.bf16.msra.mxu1 %v9616_v1 }
 0x385   :  { %2247 = vmatprep.subr.bf16.mxu0 %v9520_v34  ;;  %2290 = vmatprep.subr.bf16.mxu1 %v9628_v14 }
 0x388   :  { %2248 = vmatpush1.bf16.msra.mxu0 %v9515_v19  ;;  %2291 = vmatpush1.bf16.msra.mxu1 %v9623_v11 }
 0x389   :  { %2249 = vmatprep.subr.bf16.mxu0 %v9638_v22  ;;  %2292 = vmatprep.subr.bf16.mxu1 %v9643_v31 }
 0x38c   :  { %2250 = vmatpush1.bf16.msra.mxu0 %v9633_v20  ;;  %2293 = vmatpush1.bf16.msra.mxu1 %v9656_v13 }
 0x38d   :  { %2251 = vmatprep.subr.bf16.mxu0 %v9649_v32  ;;  %2294 = vmatprep.subr.bf16.mxu1 %v9668_v9 }
 0x390   :  { %2252 = vmatpush1.bf16.msra.mxu0 %v9663_v3  ;;  %2295 = vmatpush1.bf16.msra.mxu1 %v9680_v5 }
 0x391   :  { %2253 = vmatprep.subr.bf16.mxu0 %v9674_v4  ;;  %2296 = vmatprep.subr.bf16.mxu1 %v9692_v35 }
 0x394   :  { %2254 = vmatpush1.bf16.msra.mxu0 %v9687_v15  ;;  %2297 = vmatpush1.bf16.msra.mxu1 %v9699_v17 }
 0x395   :  { %2597 = vmatprep.subr.bf16.mxu0 %v9431_v45  ;;  %2640 = vmatprep.subr.bf16.mxu1 %v9436_v46  ;;  %v1973_v45 = vunpack.c.h.bf16 %v9338_v51 }
 0x44a   :  { %v1915_v61 = vpop.f32.mrb[44].mxu0  ;;  %v1958_v36 = vpop.f32.mrb[44].mxu1 }
 0x44b   :  { %v1975_v30 = vadd.f32 %v1967_v39, %v1915_v61  ;;  %v1977_v23 = vadd.f32 %v1969_v56, %v1958_v36  ;;  %v1917_v55 = vpop.f32.mrb[45].mxu0  ;;  %v1960_v62 = vpop.f32.mrb[45].mxu1 }
 0x44c   :  { %v1976_v42 = vadd.f32 %v1968_v24, %v1917_v55  ;;  %v1978_v46 = vadd.f32 %v1970_v52, %v1960_v62  ;;  %v1919_v60 = vpop.f32.mrb[46].mxu0  ;;  %v1962_v54 = vpop.f32.mrb[46].mxu1 }
 0x44d   :  { %v7127_v57 = vmul.f32 -1.442695, %v1975_v30  ;;  %v1979_v58 = vadd.f32 %v1971_v41, %v1919_v60  ;;  %v1981_v26 = vadd.f32 %v1973_v45, %v1962_v54  ;;  %v1921_v27 = vpop.f32.mrb[47].mxu0  ;;  %v1964_v43 = vpop.f32.mrb[47].mxu1  ;;  %v7129_v51 = vmul.f32 -1.442695, %v1977_v23 }
 0x44e   :  { %v7128_v44 = vmul.f32 -1.442695, %v1976_v42  ;;  %v1980_v38 = vadd.f32 %v1972_v33, %v1921_v27  ;;  %v1982_v28 = vadd.f32 %v1974_v59, %v1964_v43 }
 0x44f   :  { %8415 = vpow2.f32 %v7127_v57  ;;  %v7130_v50 = vmul.f32 -1.442695, %v1979_v58  ;;  %v7132_v56 = vmul.f32 -1.442695, %v1981_v26 }
 0x450   :  { %v7131_v39 = vmul.f32 -1.442695, %v1980_v38  ;;  %8417 = vpow2.f32 %v7128_v44 }
 0x451   :  { %8419 = vpow2.f32 %v7130_v50 }
 0x452   :  { %8421 = vpow2.f32 %v7131_v39 }
 0x453   :  { %8423 = vtanh.f32 %v1978_v46 }
 0x454   :  { %8425 = vpow2.f32 %v7129_v51 }
 0x455   :  { %8427 = vpow2.f32 %v7132_v56 }
 0x459   :  { %v8416_v61 = vpop.eup %8415 }
 0x45a   :  { %v2001_v36 = vadd.f32 1.0, %v8416_v61  ;;  %v8418_v53 = vpop.eup %8417 }
 0x45b   :  { %v8420_v24 = vpop.eup %8419  ;;  %v2002_v25 = vadd.f32 1.0, %v8418_v53 }
 0x45c   :  { %8429 = vrcp.f32 %v2001_v36  ;;  %v2004_v52 = vadd.f32 1.0, %v8420_v24  ;;  %v8422_v30 = vpop.eup %8421 }
 0x45d   :  { %8431 = vtanh.f32 %v1982_v28  ;;  %v2005_v55 = vadd.f32 1.0, %v8422_v30  ;;  %v8424_v62 = vpop.eup %8423 }
 0x45e   :  { %8433 = vrcp.f32 %v2002_v25  ;;  %v8426_v41 = vpop.eup %8425 }
 0x45f   :  { %8435 = vrcp.f32 %v2004_v52  ;;  %v8428_v23 = vpop.eup %8427  ;;  %v2003_v33 = vadd.f32 1.0, %v8426_v41 }
 0x460   :  { %8437 = vrcp.f32 %v2005_v55  ;;  %v2006_v27 = vadd.f32 1.0, %v8428_v23 }
 0x461   :  { %8439 = vrcp.f32 %v2003_v33 }
 0x466   :  { %v8430_v45 = vpop.eup %8429 }
 0x467   :  { %v8432_v42 = vpop.eup %8431  ;;  %v2025_v46 = vmul.f32 %v8430_v45, %v8424_v62 }
 0x468   :  { %v8434_v60 = vpop.eup %8433 }
 0x469   :  { %v8436_v54 = vpop.eup %8435  ;;  %v2023_v59 = vmul.f32 %v8434_v60, %v9715_v21 }
 0x46a   :  { %v2026_v57 = vmul.f32 %v8436_v54, %v8432_v42  ;;  %v8438_v58 = vpop.eup %8437 }
 0x46b   :  { %v9769_v26 = vadd.f32 %v2025_v46, %v2023_v59  ;;  %v2024_v43 = vmul.f32 %v8438_v58, %v9719_v40  ;;  %v8440_v38 = vpop.eup %8439 }
 0x46d   :  { %8441 = vtanh.f32 %v9769_v26  ;;  %v9773_v44 = vadd.f32 %v2026_v57, %v2024_v43 }
 0x46e   :  { %8443 = vrcp.f32 %v2006_v27 }
 0x46f   :  { %8445 = vtanh.f32 %v9773_v44 }
 0x477   :  { %v8442_v28 = vpop.eup %8441 }
 0x478   :  { %v8444_v50 = vpop.eup %8443  ;;  %v2031_v21 = vmul.f32 %v8442_v28, %v8440_v38 }
 0x479   :  { %v8446_v39 = vpop.eup %8445 }
 0x47a   :  { %v2032_v51 = vmul.f32 %v8446_v39, %v8444_v50 }
 0x47c   :  { %v9776_v56 = vpack.c.bf16 %v2032_v51, %v2031_v21 }
 0x47e   :  { %2272 = vmatmul.mubr.bf16.vlgmr.msra.gmra.mrb[48].mxu0 %v9776_v56  ;;  %2315 = vmatmul.mubr.bf16.vlgmr.msra.gmra.mrb[48].mxu1 %v9776_v56 }
 0x47f   :  { %2598 = vmatpush1.bf16.msra.mxu0 %v9441_v47  ;;  %2641 = vmatpush1.bf16.msra.mxu1 %v9446_v48  ;;  %v11218_v47 = vld [vmem:[#allocation11_spill] sm:$0xff] }
 0x480   :  { %2599 = vmatprep.subr.bf16.mxu0 %v9455_v49  ;;  %2642 = vmatprep.subr.bf16.mxu1 %v9460_v63  ;;  %v2325_v48 = vunpack.c.l.bf16 %v11218_v47  ;;  %v11219_v49 = vld [vmem:[#allocation12_spill] sm:$0xff]  ;;  %v2329_v36 = vunpack.c.h.bf16 %v11218_v47 }
 0x481   :  { %2629 = vmatprep.mubr.bf16.mxu0 %v11215_v37  ;;  %2672 = vmatprep.mubr.bf16.mxu1 %v11215_v37  ;;  %v2327_v63 = vunpack.c.l.bf16 %v11219_v49  ;;  %v2331_v53 = vunpack.c.h.bf16 %v11219_v49 }
 0x483   :  { %2600 = vmatpush1.bf16.msra.mxu0 %v9465_v18  ;;  %2643 = vmatpush1.bf16.msra.mxu1 %v9470_v0 }
 0x484   :  { %2601 = vmatprep.subr.bf16.mxu0 %v9479_v2  ;;  %2644 = vmatprep.subr.bf16.mxu1 %v9599_v12  ;;  %v11220_v2 = vld [vmem:[#allocation13_spill] sm:$0xff] }
 0x485   :  { %v2330_v55 = vunpack.c.h.bf16 %v11220_v2 }
 0x487   :  { %2602 = vmatpush1.bf16.msra.mxu0 %v9487_v6  ;;  %2645 = vmatpush1.bf16.msra.mxu1 %v9604_v16  ;;  %v2326_v6 = vunpack.c.l.bf16 %v11220_v2 }
 0x488   :  { %2603 = vmatprep.subr.bf16.mxu0 %v9497_v8  ;;  %2646 = vmatprep.subr.bf16.mxu1 %v9611_v7  ;;  %v11221_v8 = vld [vmem:[#allocation14_spill] sm:$0xff] }
 0x489   :  { %v2332_v62 = vunpack.c.h.bf16 %v11221_v8 }
 0x48b   :  { %2604 = vmatpush1.bf16.msra.mxu0 %v9505_v10  ;;  %2647 = vmatpush1.bf16.msra.mxu1 %v9616_v1  ;;  %v2328_v10 = vunpack.c.l.bf16 %v11221_v8 }
 0x48c   :  { %2605 = vmatprep.subr.bf16.mxu0 %v9520_v34  ;;  %2648 = vmatprep.subr.bf16.mxu1 %v9628_v14 }
 0x48f   :  { %2606 = vmatpush1.bf16.msra.mxu0 %v9515_v19  ;;  %2649 = vmatpush1.bf16.msra.mxu1 %v9623_v11 }
 0x490   :  { %2607 = vmatprep.subr.bf16.mxu0 %v9638_v22  ;;  %2650 = vmatprep.subr.bf16.mxu1 %v9643_v31 }
 0x493   :  { %2608 = vmatpush1.bf16.msra.mxu0 %v9633_v20  ;;  %2651 = vmatpush1.bf16.msra.mxu1 %v9656_v13 }
 0x494   :  { %2609 = vmatprep.subr.bf16.mxu0 %v9649_v32  ;;  %2652 = vmatprep.subr.bf16.mxu1 %v9668_v9 }
 0x497   :  { %2610 = vmatpush1.bf16.msra.mxu0 %v9663_v3  ;;  %2653 = vmatpush1.bf16.msra.mxu1 %v9680_v5 }
 0x498   :  { %2611 = vmatprep.subr.bf16.mxu0 %v9674_v4  ;;  %2654 = vmatprep.subr.bf16.mxu1 %v9692_v35 }
 0x49b   :  { %2612 = vmatpush1.bf16.msra.mxu0 %v9687_v15  ;;  %2655 = vmatpush1.bf16.msra.mxu1 %v9699_v17 }
 0x551   :  { %v2273_v18 = vpop.f32.mrb[48].mxu0  ;;  %v2316_v0 = vpop.f32.mrb[48].mxu1 }
 0x552   :  { %v2333_v19 = vadd.f32 %v2325_v48, %v2273_v18  ;;  %v2335_v34 = vadd.f32 %v2327_v63, %v2316_v0  ;;  %v2275_v40 = vpop.f32.mrb[49].mxu0  ;;  %v2318_v61 = vpop.f32.mrb[49].mxu1 }
 0x553   :  { %v2334_v24 = vadd.f32 %v2326_v6, %v2275_v40  ;;  %v2336_v25 = vadd.f32 %v2328_v10, %v2318_v61  ;;  %v2277_v52 = vpop.f32.mrb[50].mxu0  ;;  %v2320_v30 = vpop.f32.mrb[50].mxu1 }
 0x554   :  { %v7165_v41 = vmul.f32 -1.442695, %v2333_v19  ;;  %v2337_v23 = vadd.f32 %v2329_v36, %v2277_v52  ;;  %v2339_v45 = vadd.f32 %v2331_v53, %v2320_v30  ;;  %v2279_v42 = vpop.f32.mrb[51].mxu0  ;;  %v2322_v46 = vpop.f32.mrb[51].mxu1  ;;  %v7167_v58 = vmul.f32 -1.442695, %v2335_v34 }
 0x555   :  { %v7166_v60 = vmul.f32 -1.442695, %v2334_v24  ;;  %v2338_v54 = vadd.f32 %v2330_v55, %v2279_v42  ;;  %v2340_v33 = vadd.f32 %v2332_v62, %v2322_v46  ;;  %v9848_v42 = vld [vmem:[%s11136_s3 + $0x8] ss:$16 sps:$4 sm:$0xff]   ;;  %v9855_v46 = vld [vmem:[%s11136_s3 + $0x24] ss:$16 sps:$4 sm:$0xff]  }
 0x556   :  { %8447 = vpow2.f32 %v7165_v41  ;;  %v7168_v59 = vmul.f32 -1.442695, %v2337_v23  ;;  %v7170_v27 = vmul.f32 -1.442695, %v2339_v45  ;;  %v8076_v23 = vld [vmem:[%s11136_s3 + $0xc] ss:$16 sps:$4 sm:$0xff]  }
 0x557   :  { %v7169_v57 = vmul.f32 -1.442695, %v2338_v54  ;;  %8449 = vpow2.f32 %v7166_v60  ;;  %v9843_v45 = vld [vmem:[%s11136_s3] ss:$16 sps:$4 sm:$0xff]   ;;  %2998 = vmatprep.subr.bf16.mxu1 %v8076_v23  ;;  %v9860_v60 = vld [vmem:[%s11136_s3 + $0x2c] ss:$16 sps:$4 sm:$0xff]  }
 0x558   :  { %8451 = vpow2.f32 %v7168_v59  ;;  %v9865_v54 = vld [vmem:[%s11136_s3 + $0x20] ss:$16 sps:$4 sm:$0xff]   ;;  %v9879_v59 = vld [vmem:[%s11136_s3 + $0x44] ss:$16 sps:$4 sm:$0xff]  }
 0x559   :  { %8453 = vpow2.f32 %v7169_v57  ;;  %v9885_v57 = vld [vmem:[%s11136_s3 + $0x40] ss:$16 sps:$4 sm:$0xff]  }
 0x55a   :  { %8455 = vtanh.f32 %v2336_v25 }
 0x55b   :  { %8457 = vpow2.f32 %v7167_v58  ;;  %v9893_v58 = vld [vmem:[%s11136_s3 + $0x64] ss:$16 sps:$4 sm:$0xff]  }
 0x55c   :  { %8459 = vpow2.f32 %v7170_v27 }
 0x560   :  { %v8448_v43 = vpop.eup %8447 }
 0x561   :  { %v2359_v38 = vadd.f32 1.0, %v8448_v43  ;;  %v8450_v28 = vpop.eup %8449 }
 0x562   :  { %v8452_v50 = vpop.eup %8451  ;;  %v2360_v39 = vadd.f32 1.0, %v8450_v28 }
 0x563   :  { %8461 = vrcp.f32 %v2359_v38  ;;  %v2362_v21 = vadd.f32 1.0, %v8452_v50  ;;  %v8454_v51 = vpop.eup %8453 }
 0x564   :  { %8463 = vtanh.f32 %v2340_v33  ;;  %v2363_v47 = vadd.f32 1.0, %v8454_v51  ;;  %v8456_v48 = vpop.eup %8455  ;;  %v9870_v33 = vld [vmem:[%s11136_s3 + $0x28] ss:$16 sps:$4 sm:$0xff]  }
 0x565   :  { %8465 = vrcp.f32 %v2360_v39  ;;  %v8458_v49 = vpop.eup %8457 }
 0x566   :  { %8467 = vrcp.f32 %v2362_v21  ;;  %v8460_v63 = vpop.eup %8459  ;;  %v2361_v10 = vadd.f32 1.0, %v8458_v49 }
 0x567   :  { %8469 = vrcp.f32 %v2363_v47  ;;  %v2364_v36 = vadd.f32 1.0, %v8460_v63 }
 0x568   :  { %8471 = vrcp.f32 %v2361_v10 }
 0x56d   :  { %v8462_v18 = vpop.eup %8461 }
 0x56e   :  { %v8464_v0 = vpop.eup %8463  ;;  %v2383_v2 = vmul.f32 %v8462_v18, %v8456_v48 }
 0x56f   :  { %v8466_v6 = vpop.eup %8465 }
 0x570   :  { %v8468_v8 = vpop.eup %8467  ;;  %v2381_v19 = vmul.f32 %v8466_v6, %v9769_v26 }
 0x571   :  { %v2384_v34 = vmul.f32 %v8468_v8, %v8464_v0  ;;  %v8470_v40 = vpop.eup %8469 }
 0x572   :  { %v9821_v61 = vadd.f32 %v2383_v2, %v2381_v19  ;;  %v2382_v53 = vmul.f32 %v8470_v40, %v9773_v44  ;;  %v8472_v25 = vpop.eup %8471  ;;  %v8073_v44 = vld [vmem:[%s11136_s3 + $0x4] ss:$16 sps:$4 sm:$0xff]  }
 0x573   :  { %2955 = vmatprep.subr.bf16.mxu0 %v8073_v44 }
 0x574   :  { %8473 = vtanh.f32 %v9821_v61  ;;  %v9825_v24 = vadd.f32 %v2384_v34, %v2382_v53 }
 0x575   :  { %8475 = vrcp.f32 %v2364_v36 }
 0x576   :  { %8477 = vtanh.f32 %v9825_v24 }
 0x57e   :  { %v8474_v52 = vpop.eup %8473 }
 0x57f   :  { %v8476_v30 = vpop.eup %8475  ;;  %v2389_v26 = vmul.f32 %v8474_v52, %v8472_v25 }
 0x580   :  { %v8478_v55 = vpop.eup %8477 }
 0x581   :  { %v2390_v62 = vmul.f32 %v8478_v55, %v8476_v30 }
 0x583   :  { %v9828_v41 = vpack.c.bf16 %v2390_v62, %v2389_v26 }
 0x585   :  { %2630 = vmatmul.mubr.bf16.vlgmr.msra.gmra.mrb[52].mxu0 %v9828_v41  ;;  %2673 = vmatmul.mubr.bf16.vlgmr.msra.gmra.mrb[52].mxu1 %v9828_v41 }
 0x586   :  { %2987 = vmatprep.mubr.bf16.mxu0 %v11215_v37  ;;  %3030 = vmatprep.mubr.bf16.mxu1 %v11215_v37 }
 0x587   :  { %2956 = vmatpush1.bf16.msra.mxu0 %v9843_v45  ;;  %2999 = vmatpush1.bf16.msra.mxu1 %v9848_v42 }
 0x588   :  { %2957 = vmatprep.subr.bf16.mxu0 %v9855_v46  ;;  %3000 = vmatprep.subr.bf16.mxu1 %v9860_v60 }
 0x58b   :  { %2958 = vmatpush1.bf16.msra.mxu0 %v9865_v54  ;;  %3001 = vmatpush1.bf16.msra.mxu1 %v9870_v33 }
 0x58c   :  { %3002 = vmatprep.subr.bf16.mxu1 %v9599_v12  ;;  %2959 = vmatprep.subr.bf16.mxu0 %v9879_v59  ;;  %v9899_v12 = vld [vmem:[%s11136_s3 + $0x60] ss:$16 sps:$4 sm:$0xff]  }
 0x58f   :  { %2960 = vmatpush1.bf16.msra.mxu0 %v9885_v57  ;;  %3003 = vmatpush1.bf16.msra.mxu1 %v9604_v16  ;;  %v9907_v16 = vld [vmem:[%s11136_s3 + $0x80] ss:$16 sps:$4 sm:$0xff]  }
 0x590   :  { %3004 = vmatprep.subr.bf16.mxu1 %v9611_v7  ;;  %2961 = vmatprep.subr.bf16.mxu0 %v9893_v58  ;;  %v9912_v7 = vld [vmem:[%s11136_s3 + $0x84] ss:$16 sps:$4 sm:$0xff]  }
 0x593   :  { %2962 = vmatpush1.bf16.msra.mxu0 %v9899_v12  ;;  %3005 = vmatpush1.bf16.msra.mxu1 %v9616_v1  ;;  %v11222_v1 = vld [vmem:[#allocation15_spill] sm:$0xff] }
 0x594   :  { %3006 = vmatprep.subr.bf16.mxu1 %v9628_v14  ;;  %2963 = vmatprep.subr.bf16.mxu0 %v9912_v7  ;;  %v11223_v14 = vld [vmem:[#allocation16_spill] sm:$0xff] }
 0x597   :  { %2964 = vmatpush1.bf16.msra.mxu0 %v9907_v16  ;;  %3007 = vmatpush1.bf16.msra.mxu1 %v9623_v11  ;;  %v2683_v11 = vunpack.c.l.bf16 %v11222_v1 }
 0x598   :  { %2965 = vmatprep.subr.bf16.mxu0 %v9638_v22  ;;  %3008 = vmatprep.subr.bf16.mxu1 %v9643_v31 }
 0x59b   :  { %2966 = vmatpush1.bf16.msra.mxu0 %v9633_v20  ;;  %3009 = vmatpush1.bf16.msra.mxu1 %v9656_v13  ;;  %v2685_v20 = vunpack.c.l.bf16 %v11223_v14 }
 0x59c   :  { %2967 = vmatprep.subr.bf16.mxu0 %v9649_v32  ;;  %3010 = vmatprep.subr.bf16.mxu1 %v9668_v9  ;;  %v11224_v32 = vld [vmem:[#allocation17_spill] sm:$0xff] }
 0x59d   :  { %v2684_v13 = vunpack.c.l.bf16 %v11224_v32  ;;  %v2688_v39 = vunpack.c.h.bf16 %v11224_v32 }
 0x59f   :  { %2968 = vmatpush1.bf16.msra.mxu0 %v9663_v3  ;;  %3011 = vmatpush1.bf16.msra.mxu1 %v9680_v5  ;;  %v11225_v3 = vld [vmem:[#allocation18_spill] sm:$0xff] }
 0x5a0   :  { %2969 = vmatprep.subr.bf16.mxu0 %v9674_v4  ;;  %3012 = vmatprep.subr.bf16.mxu1 %v9692_v35  ;;  %v2686_v9 = vunpack.c.l.bf16 %v11225_v3  ;;  %v2690_v21 = vunpack.c.h.bf16 %v11225_v3 }
 0x5a3   :  { %2970 = vmatpush1.bf16.msra.mxu0 %v9687_v15  ;;  %3013 = vmatpush1.bf16.msra.mxu1 %v9699_v17  ;;  %v2687_v15 = vunpack.c.h.bf16 %v11222_v1  ;;  %v2689_v17 = vunpack.c.h.bf16 %v11223_v14 }
 0x5a4   :  { %3313 = vmatprep.subr.bf16.mxu0 %v8073_v44  ;;  %3356 = vmatprep.subr.bf16.mxu1 %v8076_v23 }
 0x658   :  { %v2631_v22 = vpop.f32.mrb[52].mxu0  ;;  %v2674_v31 = vpop.f32.mrb[52].mxu1 }
 0x659   :  { %v2691_v5 = vadd.f32 %v2683_v11, %v2631_v22  ;;  %v2693_v4 = vadd.f32 %v2685_v20, %v2674_v31  ;;  %v2633_v27 = vpop.f32.mrb[53].mxu0  ;;  %v2676_v35 = vpop.f32.mrb[53].mxu1 }
 0x65a   :  { %v2692_v43 = vadd.f32 %v2684_v13, %v2633_v27  ;;  %v2694_v38 = vadd.f32 %v2686_v9, %v2676_v35  ;;  %v2635_v28 = vpop.f32.mrb[54].mxu0  ;;  %v2678_v50 = vpop.f32.mrb[54].mxu1 }
 0x65b   :  { %v7203_v51 = vmul.f32 -1.442695, %v2691_v5  ;;  %v2695_v47 = vadd.f32 %v2687_v15, %v2635_v28  ;;  %v2697_v48 = vadd.f32 %v2689_v17, %v2678_v50  ;;  %v2637_v49 = vpop.f32.mrb[55].mxu0  ;;  %v2680_v63 = vpop.f32.mrb[55].mxu1  ;;  %v7205_v10 = vmul.f32 -1.442695, %v2693_v4 }
 0x65c   :  { %v7204_v18 = vmul.f32 -1.442695, %v2692_v43  ;;  %v2696_v0 = vadd.f32 %v2688_v39, %v2637_v49  ;;  %v2698_v2 = vadd.f32 %v2690_v21, %v2680_v63  ;;  %v8115_v28 = vld [vmem:[%s11136_s3 + $0xe4] ss:$16 sps:$4 sm:$0xff]   ;;  %v8110_v50 = vld [vmem:[%s11136_s3 + $0xc8] ss:$16 sps:$4 sm:$0xff]  }
 0x65d   :  { %8479 = vpow2.f32 %v7203_v51  ;;  %v7206_v6 = vmul.f32 -1.442695, %v2695_v47  ;;  %v7208_v19 = vmul.f32 -1.442695, %v2697_v48  ;;  %v8113_v39 = vld [vmem:[%s11136_s3 + $0xe0] ss:$16 sps:$4 sm:$0xff]  }
 0x65e   :  { %v7207_v8 = vmul.f32 -1.442695, %v2696_v0  ;;  %8481 = vpow2.f32 %v7204_v18  ;;  %v8118_v21 = vld [vmem:[%s11136_s3 + $0xec] ss:$16 sps:$4 sm:$0xff]   ;;  %v8121_v51 = vld [vmem:[%s11138_s2 + $0x4] ss:$16 sps:$4 sm:$0xff]  }
 0x65f   :  { %8483 = vpow2.f32 %v7206_v6  ;;  %v8116_v47 = vld [vmem:[%s11136_s3 + $0xe8] ss:$16 sps:$4 sm:$0xff]   ;;  %v8124_v48 = vld [vmem:[%s11138_s2 + $0xc] ss:$16 sps:$4 sm:$0xff]  }
 0x660   :  { %8485 = vpow2.f32 %v7207_v8  ;;  %v11226_v49 = vld [vmem:[#allocation19_spill] sm:$0xff]  ;;  %v11227_v18 = vld [vmem:[#allocation20_spill] sm:$0xff]  ;;  %v11228_v8 = vld [vmem:[#allocation21_spill] sm:$0xff] }
 0x661   :  { %8487 = vtanh.f32 %v2694_v38  ;;  %v3041_v63 = vunpack.c.l.bf16 %v11226_v49  ;;  %v3043_v0 = vunpack.c.l.bf16 %v11227_v18 }
 0x662   :  { %8489 = vpow2.f32 %v7205_v10  ;;  %v3042_v10 = vunpack.c.l.bf16 %v11228_v8 }
 0x663   :  { %8491 = vpow2.f32 %v7208_v19  ;;  %v11229_v19 = vld [vmem:[#allocation22_spill] sm:$0xff] }
 0x667   :  { %v8480_v34 = vpop.eup %8479 }
 0x668   :  { %v2717_v40 = vadd.f32 1.0, %v8480_v34  ;;  %v8482_v36 = vpop.eup %8481  ;;  %v3044_v34 = vunpack.c.l.bf16 %v11229_v19 }
 0x669   :  { %v8484_v53 = vpop.eup %8483  ;;  %v2718_v25 = vadd.f32 1.0, %v8482_v36 }
 0x66a   :  { %8493 = vrcp.f32 %v2717_v40  ;;  %v2720_v52 = vadd.f32 1.0, %v8484_v53  ;;  %v8486_v30 = vpop.eup %8485 }
 0x66b   :  { %8495 = vtanh.f32 %v2698_v2  ;;  %v2721_v55 = vadd.f32 1.0, %v8486_v30  ;;  %v8488_v26 = vpop.eup %8487  ;;  %v3047_v30 = vunpack.c.h.bf16 %v11227_v18 }
 0x66c   :  { %8497 = vrcp.f32 %v2718_v25  ;;  %v8490_v62 = vpop.eup %8489 }
 0x66d   :  { %8499 = vrcp.f32 %v2720_v52  ;;  %v8492_v44 = vpop.eup %8491  ;;  %v2719_v22 = vadd.f32 1.0, %v8490_v62  ;;  %v3045_v52 = vunpack.c.h.bf16 %v11226_v49 }
 0x66e   :  { %8501 = vrcp.f32 %v2721_v55  ;;  %v2722_v9 = vadd.f32 1.0, %v8492_v44 }
 0x66f   :  { %8503 = vrcp.f32 %v2719_v22 }
 0x674   :  { %v8494_v23 = vpop.eup %8493 }
 0x675   :  { %v8496_v1 = vpop.eup %8495  ;;  %v2741_v11 = vmul.f32 %v8494_v23, %v8488_v26  ;;  %v3046_v23 = vunpack.c.h.bf16 %v11228_v8  ;;  %v8119_v8 = vld [vmem:[%s11138_s2] ss:$16 sps:$4 sm:$0xff]  }
 0x676   :  { %v8498_v14 = vpop.eup %8497 }
 0x677   :  { %v8500_v20 = vpop.eup %8499  ;;  %v2739_v31 = vmul.f32 %v8498_v14, %v9821_v61 }
 0x678   :  { %v2742_v32 = vmul.f32 %v8500_v20, %v8496_v1  ;;  %v8502_v13 = vpop.eup %8501  ;;  %v3048_v1 = vunpack.c.h.bf16 %v11229_v19  ;;  %v8127_v19 = vld [vmem:[%s11138_s2 + $0x24] ss:$16 sps:$4 sm:$0xff]  }
 0x679   :  { %v9939_v3 = vadd.f32 %v2741_v11, %v2739_v31  ;;  %v2740_v5 = vmul.f32 %v8502_v13, %v9825_v24  ;;  %v8504_v27 = vpop.eup %8503  ;;  %v8094_v24 = vld [vmem:[%s11136_s3 + $0x4c] ss:$16 sps:$4 sm:$0xff]  }
 0x67b   :  { %8505 = vtanh.f32 %v9939_v3  ;;  %v9943_v4 = vadd.f32 %v2742_v32, %v2740_v5 }
 0x67c   :  { %8507 = vrcp.f32 %v2722_v9 }
 0x67d   :  { %8509 = vtanh.f32 %v9943_v4 }
 0x685   :  { %v8506_v35 = vpop.eup %8505 }
 0x686   :  { %v8508_v15 = vpop.eup %8507  ;;  %v2747_v61 = vmul.f32 %v8506_v35, %v8504_v27 }
 0x687   :  { %v8510_v17 = vpop.eup %8509 }
 0x688   :  { %v2748_v43 = vmul.f32 %v8510_v17, %v8508_v15 }
 0x68a   :  { %v9946_v38 = vpack.c.bf16 %v2748_v43, %v2747_v61 }
 0x68c   :  { %2988 = vmatmul.mubr.bf16.vlgmr.msra.gmra.mrb[56].mxu0 %v9946_v38  ;;  %3031 = vmatmul.mubr.bf16.vlgmr.msra.gmra.mrb[56].mxu1 %v9946_v38 }
 0x68d   :  { %3314 = vmatpush1.bf16.msra.mxu0 %v9843_v45  ;;  %3357 = vmatpush1.bf16.msra.mxu1 %v9848_v42  ;;  %v8092_v45 = vld [vmem:[%s11136_s3 + $0x48] ss:$16 sps:$4 sm:$0xff]   ;;  %v8097_v42 = vld [vmem:[%s11136_s3 + $0x6c] ss:$16 sps:$4 sm:$0xff]  }
 0x68e   :  { %3315 = vmatprep.subr.bf16.mxu0 %v9855_v46  ;;  %3358 = vmatprep.subr.bf16.mxu1 %v9860_v60  ;;  %v8095_v46 = vld [vmem:[%s11136_s3 + $0x68] ss:$16 sps:$4 sm:$0xff]   ;;  %v8100_v60 = vld [vmem:[%s11136_s3 + $0x8c] ss:$16 sps:$4 sm:$0xff]  }
 0x68f   :  { %3345 = vmatprep.mubr.bf16.mxu0 %v11215_v37  ;;  %3388 = vmatprep.mubr.bf16.mxu1 %v11215_v37 }
 0x691   :  { %3316 = vmatpush1.bf16.msra.mxu0 %v9865_v54  ;;  %3359 = vmatpush1.bf16.msra.mxu1 %v9870_v33  ;;  %v8098_v54 = vld [vmem:[%s11136_s3 + $0x88] ss:$16 sps:$4 sm:$0xff]   ;;  %v8101_v33 = vld [vmem:[%s11136_s3 + $0xa0] ss:$16 sps:$4 sm:$0xff]  }
 0x692   :  { %3317 = vmatprep.subr.bf16.mxu0 %v9879_v59  ;;  %3360 = vmatprep.subr.bf16.mxu1 %v8094_v24  ;;  %v8103_v59 = vld [vmem:[%s11136_s3 + $0xa4] ss:$16 sps:$4 sm:$0xff]  }
 0x695   :  { %3318 = vmatpush1.bf16.msra.mxu0 %v9885_v57  ;;  %3361 = vmatpush1.bf16.msra.mxu1 %v8092_v45  ;;  %v8106_v57 = vld [vmem:[%s11136_s3 + $0xac] ss:$16 sps:$4 sm:$0xff]  }
 0x696   :  { %3319 = vmatprep.subr.bf16.mxu0 %v9893_v58  ;;  %3362 = vmatprep.subr.bf16.mxu1 %v8097_v42  ;;  %v8104_v58 = vld [vmem:[%s11136_s3 + $0xa8] ss:$16 sps:$4 sm:$0xff]  }
 0x699   :  { %3320 = vmatpush1.bf16.msra.mxu0 %v9899_v12  ;;  %3363 = vmatpush1.bf16.msra.mxu1 %v8095_v46  ;;  %v8109_v12 = vld [vmem:[%s11136_s3 + $0xc4] ss:$16 sps:$4 sm:$0xff]  }
 0x69a   :  { %3321 = vmatprep.subr.bf16.mxu0 %v9912_v7  ;;  %3364 = vmatprep.subr.bf16.mxu1 %v8100_v60  ;;  %v8112_v7 = vld [vmem:[%s11136_s3 + $0xcc] ss:$16 sps:$4 sm:$0xff]  }
 0x69d   :  { %3322 = vmatpush1.bf16.msra.mxu0 %v9907_v16  ;;  %3365 = vmatpush1.bf16.msra.mxu1 %v8098_v54  ;;  %v8107_v16 = vld [vmem:[%s11136_s3 + $0xc0] ss:$16 sps:$4 sm:$0xff]  }
 0x69e   :  { %3323 = vmatprep.subr.bf16.mxu0 %v8103_v59  ;;  %3366 = vmatprep.subr.bf16.mxu1 %v8106_v57 }
 0x6a1   :  { %3324 = vmatpush1.bf16.msra.mxu0 %v8101_v33  ;;  %3367 = vmatpush1.bf16.msra.mxu1 %v8104_v58 }
 0x6a2   :  { %3325 = vmatprep.subr.bf16.mxu0 %v8109_v12  ;;  %3368 = vmatprep.subr.bf16.mxu1 %v8112_v7 }
 0x6a5   :  { %3326 = vmatpush1.bf16.msra.mxu0 %v8107_v16  ;;  %3369 = vmatpush1.bf16.msra.mxu1 %v8110_v50 }
 0x6a6   :  { %3327 = vmatprep.subr.bf16.mxu0 %v8115_v28  ;;  %3370 = vmatprep.subr.bf16.mxu1 %v8118_v21 }
 0x6a9   :  { %3328 = vmatpush1.bf16.msra.mxu0 %v8113_v39  ;;  %3371 = vmatpush1.bf16.msra.mxu1 %v8116_v47 }
 0x6aa   :  { %3694 = vmatprep.subr.bf16.mxu0 %v8121_v51  ;;  %3807 = vmatprep.subr.bf16.mxu1 %v8124_v48 }
 0x75f   :  { %v2989_v2 = vpop.f32.mrb[56].mxu0  ;;  %v3032_v6 = vpop.f32.mrb[56].mxu1 }
 0x760   :  { %v3049_v40 = vadd.f32 %v3041_v63, %v2989_v2  ;;  %v3051_v36 = vadd.f32 %v3043_v0, %v3032_v6  ;;  %v2991_v53 = vpop.f32.mrb[57].mxu0  ;;  %v3034_v25 = vpop.f32.mrb[57].mxu1 }
 0x761   :  { %v3050_v55 = vadd.f32 %v3042_v10, %v2991_v53  ;;  %v3052_v26 = vadd.f32 %v3044_v34, %v3034_v25  ;;  %v2993_v62 = vpop.f32.mrb[58].mxu0  ;;  %v3036_v44 = vpop.f32.mrb[58].mxu1  ;;  %v8130_v34 = vld [vmem:[%s11138_s2 + $0x2c] ss:$16 sps:$4 sm:$0xff]   ;;  %v8133_v53 = vld [vmem:[%s11138_s2 + $0x44] ss:$16 sps:$4 sm:$0xff]  }
 0x762   :  { %v7241_v11 = vmul.f32 -1.442695, %v3049_v40  ;;  %v3053_v14 = vadd.f32 %v3045_v52, %v2993_v62  ;;  %v3055_v20 = vadd.f32 %v3047_v30, %v3036_v44  ;;  %v2995_v22 = vpop.f32.mrb[59].mxu0  ;;  %v3038_v31 = vpop.f32.mrb[59].mxu1  ;;  %v7243_v35 = vmul.f32 -1.442695, %v3051_v36 }
 0x763   :  { %v7242_v32 = vmul.f32 -1.442695, %v3050_v55  ;;  %v3054_v13 = vadd.f32 %v3046_v23, %v2995_v22  ;;  %v3056_v9 = vadd.f32 %v3048_v1, %v3038_v31  ;;  %v8125_v40 = vld [vmem:[%s11138_s2 + $0x20] ss:$16 sps:$4 sm:$0xff]   ;;  %v8128_v36 = vld [vmem:[%s11138_s2 + $0x28] ss:$16 sps:$4 sm:$0xff]  }
 0x764   :  { %8511 = vpow2.f32 %v7241_v11  ;;  %v7244_v5 = vmul.f32 -1.442695, %v3053_v14  ;;  %v7246_v15 = vmul.f32 -1.442695, %v3055_v20  ;;  %v8136_v25 = vld [vmem:[%s11138_s2 + $0x4c] ss:$16 sps:$4 sm:$0xff]  }
 0x765   :  { %v7245_v27 = vmul.f32 -1.442695, %v3054_v13  ;;  %8513 = vpow2.f32 %v7242_v32  ;;  %v8131_v52 = vld [vmem:[%s11138_s2 + $0x40] ss:$16 sps:$4 sm:$0xff]   ;;  %v8134_v30 = vld [vmem:[%s11138_s2 + $0x48] ss:$16 sps:$4 sm:$0xff]  }
 0x766   :  { %8515 = vpow2.f32 %v7244_v5  ;;  %v8139_v55 = vld [vmem:[%s11138_s2 + $0x64] ss:$16 sps:$4 sm:$0xff]   ;;  %v8137_v62 = vld [vmem:[%s11138_s2 + $0x60] ss:$16 sps:$4 sm:$0xff]   ;;  %v8140_v44 = vld [vmem:[%s11138_s2 + $0x68] ss:$16 sps:$4 sm:$0xff]  }
 0x767   :  { %8517 = vpow2.f32 %v7245_v27  ;;  %v8145_v23 = vld [vmem:[%s11138_s2 + $0x84] ss:$16 sps:$4 sm:$0xff]   ;;  %v8148_v1 = vld [vmem:[%s11138_s2 + $0x8c] ss:$16 sps:$4 sm:$0xff]   ;;  %v8143_v11 = vld [vmem:[%s11138_s2 + $0x80] ss:$16 sps:$4 sm:$0xff]  }
 0x768   :  { %8519 = vtanh.f32 %v3052_v26  ;;  %v8142_v26 = vld [vmem:[%s11138_s2 + $0x6c] ss:$16 sps:$4 sm:$0xff]   ;;  %v8146_v14 = vld [vmem:[%s11138_s2 + $0x88] ss:$16 sps:$4 sm:$0xff]   ;;  %v8151_v20 = vld [vmem:[%s11138_s2 + $0xa4] ss:$16 sps:$4 sm:$0xff]  }
 0x769   :  { %8521 = vpow2.f32 %v7243_v35  ;;  %v8154_v22 = vld [vmem:[%s11138_s2 + $0xac] ss:$16 sps:$4 sm:$0xff]   ;;  %v8149_v31 = vld [vmem:[%s11138_s2 + $0xa0] ss:$16 sps:$4 sm:$0xff]   ;;  %v8152_v32 = vld [vmem:[%s11138_s2 + $0xa8] ss:$16 sps:$4 sm:$0xff]  }
 0x76a   :  { %8523 = vpow2.f32 %v7246_v15  ;;  %v8157_v13 = vld [vmem:[%s11138_s2 + $0xc4] ss:$16 sps:$4 sm:$0xff]   ;;  %v8155_v5 = vld [vmem:[%s11138_s2 + $0xc0] ss:$16 sps:$4 sm:$0xff]   ;;  %v8158_v27 = vld [vmem:[%s11138_s2 + $0xc8] ss:$16 sps:$4 sm:$0xff]  }
 0x76b   :  { %v8163_v35 = vld [vmem:[%s11138_s2 + $0xe4] ss:$16 sps:$4 sm:$0xff]   ;;  %v8166_v15 = vld [vmem:[%s11138_s2 + $0xec] ss:$16 sps:$4 sm:$0xff]  }
 0x76e   :  { %v8512_v17 = vpop.eup %8511 }
 0x76f   :  { %v3075_v61 = vadd.f32 1.0, %v8512_v17  ;;  %v8514_v43 = vpop.eup %8513  ;;  %v8161_v17 = vld [vmem:[%s11138_s2 + $0xe0] ss:$16 sps:$4 sm:$0xff]  }
 0x770   :  { %v8516_v24 = vpop.eup %8515  ;;  %v3076_v45 = vadd.f32 1.0, %v8514_v43  ;;  %v10139_v43 = vld [vmem:[%s11136_s3 + $0x104] ss:$16 sps:$4 sm:$0xff]  }
 0x771   :  { %8525 = vrcp.f32 %v3075_v61  ;;  %v3078_v42 = vadd.f32 1.0, %v8516_v24  ;;  %v8518_v46 = vpop.eup %8517  ;;  %v8164_v61 = vld [vmem:[%s11138_s2 + $0xe8] ss:$16 sps:$4 sm:$0xff]   ;;  %v10144_v24 = vld [vmem:[%s11136_s3 + $0x100] ss:$16 sps:$4 sm:$0xff]  }
 0x772   :  { %8527 = vtanh.f32 %v3056_v9  ;;  %v3079_v60 = vadd.f32 1.0, %v8518_v46  ;;  %v8520_v54 = vpop.eup %8519  ;;  %v8160_v9 = vld [vmem:[%s11138_s2 + $0xcc] ss:$16 sps:$4 sm:$0xff]   ;;  %v10201_v46 = vld [vmem:[%s11136_s3 + $0x120] ss:$16 sps:$4 sm:$0xff]  }
 0x773   :  { %8529 = vrcp.f32 %v3076_v45  ;;  %v8522_v33 = vpop.eup %8521  ;;  %v11230_v45 = vld [vmem:[#allocation27_spill] sm:$0xff] }
 0x774   :  { %8531 = vrcp.f32 %v3078_v42  ;;  %v8524_v59 = vpop.eup %8523  ;;  %v3077_v28 = vadd.f32 1.0, %v8522_v33  ;;  %v11231_v42 = vld [vmem:[#allocation28_spill] sm:$0xff] }
 0x775   :  { %8533 = vrcp.f32 %v3079_v60  ;;  %v3080_v47 = vadd.f32 1.0, %v8524_v59  ;;  %v10206_v60 = vld [vmem:[%s11136_s3 + $0x128] ss:$16 sps:$4 sm:$0xff]   ;;  %v10220_v33 = vld [vmem:[%s11136_s3 + $0x144] ss:$16 sps:$4 sm:$0xff]  }
 0x776   :  { %8535 = vrcp.f32 %v3077_v28  ;;  %v10225_v59 = vld [vmem:[%s11136_s3 + $0x164] ss:$16 sps:$4 sm:$0xff]   ;;  %v10260_v28 = vld [vmem:[%s11136_s3 + $0x168] ss:$16 sps:$4 sm:$0xff]  }
 0x77b   :  { %v8526_v57 = vpop.eup %8525 }
 0x77c   :  { %v8528_v58 = vpop.eup %8527  ;;  %v3099_v12 = vmul.f32 %v8526_v57, %v8520_v54  ;;  %v10215_v54 = vld [vmem:[%s11136_s3 + $0x140] ss:$16 sps:$4 sm:$0xff]   ;;  %v10230_v57 = vld [vmem:[%s11136_s3 + $0x148] ss:$16 sps:$4 sm:$0xff]  }
 0x77d   :  { %v8530_v16 = vpop.eup %8529 }
 0x77e   :  { %v8532_v7 = vpop.eup %8531  ;;  %v3097_v50 = vmul.f32 %v8530_v16, %v9939_v3  ;;  %v10248_v16 = vld [vmem:[%s11136_s3 + $0x16c] ss:$16 sps:$4 sm:$0xff]  }
 0x77f   :  { %v3100_v39 = vmul.f32 %v8532_v7, %v8528_v58  ;;  %v8534_v21 = vpop.eup %8533  ;;  %v10235_v58 = vld [vmem:[%s11136_s3 + $0x14c] ss:$16 sps:$4 sm:$0xff]   ;;  %v10254_v7 = vld [vmem:[%s11136_s3 + $0x184] ss:$16 sps:$4 sm:$0xff]  }
 0x780   :  { %v10033_v51 = vadd.f32 %v3099_v12, %v3097_v50  ;;  %v3098_v48 = vmul.f32 %v8534_v21, %v9943_v4  ;;  %v8536_v63 = vpop.eup %8535  ;;  %v8122_v4 = vld [vmem:[%s11138_s2 + $0x8] ss:$16 sps:$4 sm:$0xff]   ;;  %v10242_v12 = vld [vmem:[%s11136_s3 + $0x160] ss:$16 sps:$4 sm:$0xff]  }
 0x781   :  { %v10267_v50 = vld [vmem:[%s11136_s3 + $0x180] ss:$16 sps:$4 sm:$0xff]   ;;  %v10279_v21 = vld [vmem:[%s11136_s3 + $0x188] ss:$16 sps:$4 sm:$0xff]  }
 0x782   :  { %8537 = vtanh.f32 %v10033_v51  ;;  %v10037_v49 = vadd.f32 %v3100_v39, %v3098_v48  ;;  %v10273_v39 = vld [vmem:[%s11136_s3 + $0x1a4] ss:$16 sps:$4 sm:$0xff]   ;;  %v10291_v48 = vld [vmem:[%s11136_s3 + $0x1a0] ss:$16 sps:$4 sm:$0xff]  }
 0x783   :  { %8539 = vrcp.f32 %v3080_v47  ;;  %v10284_v47 = vld [vmem:[%s11136_s3 + $0x18c] ss:$16 sps:$4 sm:$0xff]  }
 0x784   :  { %8541 = vtanh.f32 %v10037_v49 }
 0x78c   :  { %v8538_v18 = vpop.eup %8537 }
 0x78d   :  { %v8540_v0 = vpop.eup %8539  ;;  %v3105_v3 = vmul.f32 %v8538_v18, %v8536_v63  ;;  %v10296_v63 = vld [vmem:[%s11136_s3 + $0x1ac] ss:$16 sps:$4 sm:$0xff]   ;;  %v10302_v18 = vld [vmem:[%s11136_s3 + $0x1c4] ss:$16 sps:$4 sm:$0xff]  }
 0x78e   :  { %v8542_v2 = vpop.eup %8541 }
 0x78f   :  { %v3106_v6 = vmul.f32 %v8542_v2, %v8540_v0  ;;  %v10308_v0 = vld [vmem:[%s11136_s3 + $0x1a8] ss:$16 sps:$4 sm:$0xff]   ;;  %v10315_v2 = vld [vmem:[%s11136_s3 + $0x1c0] ss:$16 sps:$4 sm:$0xff]  }
 0x791   :  { %v10046_v10 = vpack.c.bf16 %v3106_v6, %v3105_v3  ;;  %v10322_v3 = vld [vmem:[%s11136_s3 + $0x1e4] ss:$16 sps:$4 sm:$0xff]   ;;  %v10327_v6 = vld [vmem:[%s11136_s3 + $0x1c8] ss:$16 sps:$4 sm:$0xff]  }
 0x793   :  { %3346 = vmatmul.mubr.bf16.vlgmr.msra.gmra.mrb[60].mxu0 %v10046_v10  ;;  %3389 = vmatmul.mubr.bf16.vlgmr.msra.gmra.mrb[60].mxu1 %v10046_v10 }
 0x794   :  { %3695 = vmatpush1.bf16.msra.mxu0 %v8119_v8  ;;  %3808 = vmatpush1.bf16.msra.mxu1 %v8122_v4  ;;  %v10332_v8 = vld [vmem:[%s11136_s3 + $0x1cc] ss:$16 sps:$4 sm:$0xff]   ;;  %v10338_v4 = vld [vmem:[%s11136_s3 + $0x1e0] ss:$16 sps:$4 sm:$0xff]  }
 0x795   :  { %3696 = vmatprep.subr.bf16.mxu0 %v8127_v19  ;;  %3809 = vmatprep.subr.bf16.mxu1 %v8130_v34  ;;  %v10351_v19 = vld [vmem:[%s11136_s3 + $0x1e8] ss:$16 sps:$4 sm:$0xff]  }
 0x796   :  { %3726 = vmatprep.mubr.bf16.mxu0 %v11215_v37  ;;  %3839 = vmatprep.mubr.bf16.mxu1 %v11215_v37  ;;  %v11232_v34 = vld [vmem:[#allocation23_spill] sm:$0xff] }
 0x798   :  { %3697 = vmatpush1.bf16.msra.mxu0 %v8125_v40  ;;  %3810 = vmatpush1.bf16.msra.mxu1 %v8128_v36  ;;  %v3399_v40 = vunpack.c.l.bf16 %v11232_v34  ;;  %v11233_v36 = vld [vmem:[#allocation24_spill] sm:$0xff] }
 0x799   :  { %3698 = vmatprep.subr.bf16.mxu0 %v8133_v53  ;;  %3811 = vmatprep.subr.bf16.mxu1 %v8136_v25  ;;  %v3401_v53 = vunpack.c.l.bf16 %v11233_v36 }
 0x79c   :  { %3699 = vmatpush1.bf16.msra.mxu0 %v8131_v52  ;;  %3812 = vmatpush1.bf16.msra.mxu1 %v8134_v30  ;;  %v11234_v30 = vld [vmem:[#allocation25_spill] sm:$0xff] }
 0x79d   :  { %3700 = vmatprep.subr.bf16.mxu0 %v8139_v55  ;;  %3813 = vmatprep.subr.bf16.mxu1 %v8142_v26  ;;  %v3400_v55 = vunpack.c.l.bf16 %v11234_v30  ;;  %v11235_v26 = vld [vmem:[#allocation26_spill] sm:$0xff] }
 0x7a0   :  { %3701 = vmatpush1.bf16.msra.mxu0 %v8137_v62  ;;  %3814 = vmatpush1.bf16.msra.mxu1 %v8140_v44  ;;  %v3402_v62 = vunpack.c.l.bf16 %v11235_v26 }
 0x7a1   :  { %3702 = vmatprep.subr.bf16.mxu0 %v8145_v23  ;;  %3815 = vmatprep.subr.bf16.mxu1 %v8148_v1 }
 0x7a4   :  { %3703 = vmatpush1.bf16.msra.mxu0 %v8143_v11  ;;  %3816 = vmatpush1.bf16.msra.mxu1 %v8146_v14  ;;  %v3403_v14 = vunpack.c.h.bf16 %v11232_v34 }
 0x7a5   :  { %3704 = vmatprep.subr.bf16.mxu0 %v8151_v20  ;;  %3817 = vmatprep.subr.bf16.mxu1 %v8154_v22  ;;  %v3405_v20 = vunpack.c.h.bf16 %v11233_v36 }
 0x7a8   :  { %3705 = vmatpush1.bf16.msra.mxu0 %v8149_v31  ;;  %3818 = vmatpush1.bf16.msra.mxu1 %v8152_v32 }
 0x7a9   :  { %3706 = vmatprep.subr.bf16.mxu0 %v8157_v13  ;;  %3819 = vmatprep.subr.bf16.mxu1 %v8160_v9  ;;  %v3404_v9 = vunpack.c.h.bf16 %v11234_v30 }
 0x7ac   :  { %3707 = vmatpush1.bf16.msra.mxu0 %v8155_v5  ;;  %3820 = vmatpush1.bf16.msra.mxu1 %v8158_v27  ;;  %v3406_v5 = vunpack.c.h.bf16 %v11235_v26 }
 0x7ad   :  { %3708 = vmatprep.subr.bf16.mxu0 %v8163_v35  ;;  %3821 = vmatprep.subr.bf16.mxu1 %v8166_v15 }
 0x7b0   :  { %3709 = vmatpush1.bf16.msra.mxu0 %v8161_v17  ;;  %3822 = vmatpush1.bf16.msra.mxu1 %v8164_v61 }
 0x7b1   :  { %4183 = vmatprep.subr.bf16.mxu0 %v10139_v43 }
 0x7b3   :  { %3727 = vmatmul.mubr.bf16.vlgmr.msra.gmra.mrb[64].mxu0 %v11230_v45  ;;  %3840 = vmatmul.mubr.bf16.vlgmr.msra.gmra.mrb[64].mxu1 %v11230_v45 }
 0x7b4   :  { %3736 = vmatprep.mubr.bf16.mxu0 %v11215_v37  ;;  %3849 = vmatprep.mubr.bf16.mxu1 %v11215_v37 }
 0x7b5   :  { %4184 = vmatpush1.bf16.msra.mxu0 %v10144_v24 }
 0x7bb   :  { %3737 = vmatmul.mubr.bf16.gmra.mrb[68].mxu0 %v11231_v42  ;;  %3850 = vmatmul.mubr.bf16.gmra.mrb[68].mxu1 %v11231_v42 }
 0x7bc   :  { %3746 = vmatprep.mubr.bf16.mxu0 %v11215_v37  ;;  %3859 = vmatprep.mubr.bf16.mxu1 %v11215_v37 }
 0x7c3   :  { %3747 = vmatmul.mubr.bf16.gmra.mrb[72].mxu0 %v9722_v29  ;;  %3860 = vmatmul.mubr.bf16.gmra.mrb[72].mxu1 %v9722_v29  ;;  %v10179_v29 = vld [vmem:[%s11136_s3 + $0x10c] ss:$16 sps:$4 sm:$0xff]  }
 0x7c4   :  { %3756 = vmatprep.mubr.bf16.mxu0 %v11215_v37  ;;  %3869 = vmatprep.mubr.bf16.mxu1 %v11215_v37 }
 0x7c5   :  { %4226 = vmatprep.subr.bf16.mxu1 %v10179_v29 }
 0x7cb   :  { %3757 = vmatmul.mubr.bf16.gmra.mrb[76].mxu0 %v9776_v56  ;;  %3870 = vmatmul.mubr.bf16.gmra.mrb[76].mxu1 %v9776_v56  ;;  %v10184_v56 = vld [vmem:[%s11136_s3 + $0x108] ss:$16 sps:$4 sm:$0xff]  }
 0x7cc   :  { %3766 = vmatprep.mubr.bf16.mxu0 %v11215_v37  ;;  %3879 = vmatprep.mubr.bf16.mxu1 %v11215_v37 }
 0x7cd   :  { %4227 = vmatpush1.bf16.msra.mxu1 %v10184_v56 }
 0x7d3   :  { %3767 = vmatmul.mubr.bf16.gmra.mrb[80].mxu0 %v9828_v41  ;;  %3880 = vmatmul.mubr.bf16.gmra.mrb[80].mxu1 %v9828_v41  ;;  %v10191_v41 = vld [vmem:[%s11136_s3 + $0x124] ss:$16 sps:$4 sm:$0xff]  }
 0x7d4   :  { %3776 = vmatprep.mubr.bf16.mxu0 %v11215_v37  ;;  %3889 = vmatprep.mubr.bf16.mxu1 %v11215_v37 }
 0x7d5   :  { %4185 = vmatprep.subr.bf16.mxu0 %v10191_v41 }
 0x7d6   :  { %4186 = vmatpush1.bf16.msra.mxu0 %v10201_v46 }
 0x7d7   :  { %4187 = vmatprep.subr.bf16.mxu0 %v10220_v33 }
 0x7da   :  { %4188 = vmatpush1.bf16.msra.mxu0 %v10215_v54 }
 0x7db   :  { %3777 = vmatmul.mubr.bf16.gmra.mrb[84].mxu0 %v9946_v38  ;;  %3890 = vmatmul.mubr.bf16.gmra.mrb[84].mxu1 %v9946_v38  ;;  %v10196_v38 = vld [vmem:[%s11136_s3 + $0x12c] ss:$16 sps:$4 sm:$0xff]  }
 0x7dc   :  { %3786 = vmatprep.mubr.bf16.mxu0 %v11215_v37  ;;  %3899 = vmatprep.mubr.bf16.mxu1 %v11215_v37 }
 0x7dd   :  { %4228 = vmatprep.subr.bf16.mxu1 %v10196_v38  ;;  %4189 = vmatprep.subr.bf16.mxu0 %v10225_v59 }
 0x7de   :  { %4229 = vmatpush1.bf16.msra.mxu1 %v10206_v60  ;;  %4190 = vmatpush1.bf16.msra.mxu0 %v10242_v12 }
 0x7df   :  { %4230 = vmatprep.subr.bf16.mxu1 %v10235_v58  ;;  %4191 = vmatprep.subr.bf16.mxu0 %v10254_v7 }
 0x7e2   :  { %4231 = vmatpush1.bf16.msra.mxu1 %v10230_v57  ;;  %4192 = vmatpush1.bf16.msra.mxu0 %v10267_v50 }
 0x7e3   :  { %3787 = vmatmul.mubr.bf16.gmra.mrb[88].mxu0 %v10046_v10  ;;  %3900 = vmatmul.mubr.bf16.gmra.mrb[88].mxu1 %v10046_v10  ;;  %v10344_v10 = vld [vmem:[%s11136_s3 + $0x1ec] ss:$16 sps:$4 sm:$0xff]  }
 0x7e4   :  { %3796 = vmatprep.mubr.bf16.mxu0 %v11215_v37  ;;  %3909 = vmatprep.mubr.bf16.mxu1 %v11215_v37 }
 0x7e5   :  { %4232 = vmatprep.subr.bf16.mxu1 %v10248_v16  ;;  %4193 = vmatprep.subr.bf16.mxu0 %v10273_v39 }
 0x7e6   :  { %4233 = vmatpush1.bf16.msra.mxu1 %v10260_v28  ;;  %4194 = vmatpush1.bf16.msra.mxu0 %v10291_v48 }
 0x7e7   :  { %4234 = vmatprep.subr.bf16.mxu1 %v10284_v47  ;;  %4195 = vmatprep.subr.bf16.mxu0 %v10302_v18 }
 0x7ea   :  { %4235 = vmatpush1.bf16.msra.mxu1 %v10279_v21  ;;  %4196 = vmatpush1.bf16.msra.mxu0 %v10315_v2 }
 0x7eb   :  { %4236 = vmatprep.subr.bf16.mxu1 %v10296_v63  ;;  %4197 = vmatprep.subr.bf16.mxu0 %v10322_v3 }
 0x7ee   :  { %4237 = vmatpush1.bf16.msra.mxu1 %v10308_v0  ;;  %4198 = vmatpush1.bf16.msra.mxu0 %v10338_v4 }
 0x7ef   :  { %4238 = vmatprep.subr.bf16.mxu1 %v10332_v8  ;;  %4537 = vmatprep.subr.bf16.mxu0 %v10139_v43 }
 0x7f2   :  { %4239 = vmatpush1.bf16.msra.mxu1 %v10327_v6 }
 0x7f3   :  { %4240 = vmatprep.subr.bf16.mxu1 %v10344_v10 }
 0x7f6   :  { %4241 = vmatpush1.bf16.msra.mxu1 %v10351_v19 }
 0x7f7   :  { %4580 = vmatprep.subr.bf16.mxu1 %v10179_v29 }
 0x866   :  { %v3347_v25 = vpop.f32.mrb[60].mxu0  ;;  %v3390_v52 = vpop.f32.mrb[60].mxu1 }
 0x867   :  { %v3407_v44 = vadd.f32 %v3399_v40, %v3347_v25  ;;  %v3409_v23 = vadd.f32 %v3401_v53, %v3390_v52  ;;  %v3349_v1 = vpop.f32.mrb[61].mxu0  ;;  %v3392_v11 = vpop.f32.mrb[61].mxu1 }
 0x868   :  { %v3408_v22 = vadd.f32 %v3400_v55, %v3349_v1  ;;  %v3410_v31 = vadd.f32 %v3402_v62, %v3392_v11  ;;  %v3351_v32 = vpop.f32.mrb[62].mxu0  ;;  %v3394_v13 = vpop.f32.mrb[62].mxu1 }
 0x869   :  { %v7279_v27 = vmul.f32 -1.442695, %v3407_v44  ;;  %v3411_v35 = vadd.f32 %v3403_v14, %v3351_v32  ;;  %v3413_v15 = vadd.f32 %v3405_v20, %v3394_v13  ;;  %v3353_v17 = vpop.f32.mrb[63].mxu0  ;;  %v3396_v61 = vpop.f32.mrb[63].mxu1  ;;  %v7281_v36 = vmul.f32 -1.442695, %v3409_v23 }
 0x86a   :  { %v7280_v43 = vmul.f32 -1.442695, %v3408_v22  ;;  %v3412_v45 = vadd.f32 %v3404_v9, %v3353_v17  ;;  %v3414_v42 = vadd.f32 %v3406_v5, %v3396_v61  ;;  %v7285_v20 = vld [vmem:[%s11137_s4 + $0x4] sm:$0xf] }
 0x86b   :  { %8543 = vpow2.f32 %v7279_v27  ;;  %v7282_v34 = vmul.f32 -1.442695, %v3411_v35  ;;  %v7284_v53 = vmul.f32 -1.442695, %v3413_v15  ;;  %v11236_v5 = vld [vmem:[#allocation8_spill] sm:$0xff] }
 0x86c   :  { %v7283_v40 = vmul.f32 -1.442695, %v3412_v45  ;;  %8545 = vpow2.f32 %v7280_v43  ;;  %v11237_v27 = vsub.s32 0, %v11236_v5  ;;  %v11238_v15 = vsub.s32 2, %v11236_v5 }
 0x86d   :  { %8547 = vpow2.f32 %v7282_v34  ;;  %v11239_v45 = vsub.s32 1, %v11236_v5 }
 0x86e   :  { %8549 = vpow2.f32 %v7283_v40  ;;  %v10371_v35 = vrot.slane %v7285_v20, %v11237_v27  ;;  %v10375_v17 = vrot.slane %v7285_v20, %v11238_v15 }
 0x86f   :  { %8551 = vtanh.f32 %v3410_v31 }
 0x870   :  { %8553 = vpow2.f32 %v7281_v36 }
 0x871   :  { %8555 = vpow2.f32 %v7284_v53  ;;  %v11240_v53 = vsub.s32 3, %v11236_v5 }
 0x875   :  { %v8544_v25 = vpop.eup %8543 }
 0x876   :  { %v3433_v52 = vadd.f32 1.0, %v8544_v25  ;;  %v8546_v30 = vpop.eup %8545  ;;  %v10384_v25 = vrot.slane %v7285_v20, %v11240_v53 }
 0x877   :  { %v8548_v55 = vpop.eup %8547  ;;  %v3434_v26 = vadd.f32 1.0, %v8546_v30 }
 0x878   :  { %8557 = vrcp.f32 %v3433_v52  ;;  %v3436_v62 = vadd.f32 1.0, %v8548_v55  ;;  %v8550_v44 = vpop.eup %8549 }
 0x879   :  { %8559 = vtanh.f32 %v3414_v42  ;;  %v3437_v1 = vadd.f32 1.0, %v8550_v44  ;;  %v8552_v11 = vpop.eup %8551  ;;  %v10380_v42 = vrot.slane %v7285_v20, %v11239_v45 }
 0x87a   :  { %8561 = vrcp.f32 %v3434_v26  ;;  %v8554_v14 = vpop.eup %8553 }
 0x87b   :  { %8563 = vrcp.f32 %v3436_v62  ;;  %v8556_v23 = vpop.eup %8555  ;;  %v3435_v9 = vadd.f32 1.0, %v8554_v14 }
 0x87c   :  { %8565 = vrcp.f32 %v3437_v1  ;;  %v3438_v55 = vadd.f32 1.0, %v8556_v23 }
 0x87d   :  { %8567 = vrcp.f32 %v3435_v9 }
 0x882   :  { %v8558_v22 = vpop.eup %8557 }
 0x883   :  { %v8560_v31 = vpop.eup %8559  ;;  %v3457_v32 = vmul.f32 %v8558_v22, %v8552_v11 }
 0x884   :  { %v8562_v13 = vpop.eup %8561 }
 0x885   :  { %v8564_v61 = vpop.eup %8563  ;;  %v3455_v43 = vmul.f32 %v8562_v13, %v10033_v51 }
 0x886   :  { %v3458_v34 = vmul.f32 %v8564_v61, %v8560_v31  ;;  %v3728_v40 = vpop.f32.mrb[64].mxu0  ;;  %v3841_v36 = vpop.f32.mrb[64].mxu1 }
 0x887   :  { %v8566_v52 = vpop.eup %8565  ;;  %v3459_v30 = vadd.f32 %v3457_v32, %v3455_v43  ;;  %v3730_v26 = vpop.f32.mrb[65].mxu0  ;;  %v3729_v51 = vadd.f32 %v3728_v40, %v10371_v35  ;;  %v3842_v1 = vadd.f32 %v3841_v36, %v10375_v17 }
 0x888   :  { %v3843_v62 = vpop.f32.mrb[65].mxu1  ;;  %v3456_v44 = vmul.f32 %v8566_v52, %v10037_v49  ;;  %v3732_v11 = vpop.f32.mrb[66].mxu0  ;;  %v3731_v22 = vadd.f32 %v3730_v26, %v10380_v42 }
 0x889   :  { %v3845_v14 = vpop.f32.mrb[66].mxu1  ;;  %8569 = vtanh.f32 %v3459_v30  ;;  %v3733_v20 = vadd.f32 %v3732_v11, %v10371_v35  ;;  %v3734_v32 = vpop.f32.mrb[67].mxu0  ;;  %v3844_v9 = vadd.f32 %v3843_v62, %v10384_v25 }
 0x88a   :  { %v3846_v31 = vadd.f32 %v3845_v14, %v10375_v17  ;;  %v3847_v23 = vpop.f32.mrb[67].mxu1  ;;  %v3460_v13 = vadd.f32 %v3458_v34, %v3456_v44  ;;  %v3735_v49 = vadd.f32 %v3734_v32, %v10380_v42  ;;  %8571 = vrcp.f32 %v3438_v55 }
 0x88b   :  { %v3848_v5 = vadd.f32 %v3847_v23, %v10384_v25  ;;  %v10395_v27 = vpack.c.bf16 %v3733_v20, %v3729_v51 }
 0x88c   :  { %v10397_v15 = vpack.c.bf16 %v3846_v31, %v3842_v1  ;;  %8573 = vtanh.f32 %v3460_v13  ;;  %v10399_v61 = vpack.c.bf16 %v3735_v49, %v3731_v22  ;;  %v8568_v1 = vpop.eup %8567 }
 0x88d   :  { %v10401_v43 = vpack.c.bf16 %v3848_v5, %v3844_v9 }
 0x88e   :  { %v3738_v45 = vpop.f32.mrb[68].mxu0  ;;  %v3851_v40 = vpop.f32.mrb[68].mxu1 }
 0x88f   :  { %11241 = vst [vmem:[#allocation9_spill] sm:$0xff] %v10401_v43  ;;  %v3740_v36 = vpop.f32.mrb[69].mxu0  ;;  %v3853_v34 = vpop.f32.mrb[69].mxu1  ;;  %v3739_v30 = vadd.f32 %v3738_v45, %v10371_v35  ;;  %v3852_v26 = vadd.f32 %v3851_v40, %v10375_v17 }
 0x890   :  { %v3742_v53 = vpop.f32.mrb[70].mxu0  ;;  %v3855_v52 = vpop.f32.mrb[70].mxu1  ;;  %v3741_v11 = vadd.f32 %v3740_v36, %v10380_v42  ;;  %v3854_v14 = vadd.f32 %v3853_v34, %v10384_v25 }
 0x891   :  { %v3743_v55 = vadd.f32 %v3742_v53, %v10371_v35  ;;  %v3856_v62 = vadd.f32 %v3855_v52, %v10375_v17  ;;  %v3744_v44 = vpop.f32.mrb[71].mxu0  ;;  %v3857_v51 = vpop.f32.mrb[71].mxu1 }
 0x892   :  { %v3745_v22 = vadd.f32 %v3744_v44, %v10380_v42  ;;  %v3858_v20 = vadd.f32 %v3857_v51, %v10384_v25 }
 0x893   :  { %v8570_v31 = vpop.eup %8569  ;;  %v10411_v32 = vpack.c.bf16 %v3743_v55, %v3739_v30  ;;  %v10413_v23 = vpack.c.bf16 %v3856_v62, %v3852_v26 }
 0x894   :  { %v10415_v13 = vpack.c.bf16 %v3745_v22, %v3741_v11  ;;  %v10417_v9 = vpack.c.bf16 %v3858_v20, %v3854_v14  ;;  %v3463_v49 = vmul.f32 %v8570_v31, %v8568_v1  ;;  %v8572_v5 = vpop.eup %8571 }
 0x896   :  { %v8574_v45 = vpop.eup %8573  ;;  %v3748_v40 = vpop.f32.mrb[72].mxu0 }
 0x897   :  { %v3861_v36 = vpop.f32.mrb[72].mxu1  ;;  %v3750_v53 = vpop.f32.mrb[73].mxu0  ;;  %v3464_v52 = vmul.f32 %v8574_v45, %v8572_v5  ;;  %v3749_v44 = vadd.f32 %v3748_v40, %v10371_v35 }
 0x898   :  { %v3863_v34 = vpop.f32.mrb[73].mxu1  ;;  %v3752_v51 = vpop.f32.mrb[74].mxu0  ;;  %v3862_v30 = vadd.f32 %v3861_v36, %v10375_v17  ;;  %v3751_v14 = vadd.f32 %v3750_v53, %v10380_v42 }
 0x899   :  { %v3865_v43 = vpop.f32.mrb[74].mxu1  ;;  %v3753_v26 = vadd.f32 %v3752_v51, %v10371_v35  ;;  %v3754_v62 = vpop.f32.mrb[75].mxu0  ;;  %v3465_v1 = vpack.c.bf16 %v3464_v52, %v3463_v49  ;;  %v3864_v22 = vadd.f32 %v3863_v34, %v10384_v25 }
 0x89a   :  { %v3866_v55 = vadd.f32 %v3865_v43, %v10375_v17  ;;  %v3867_v11 = vpop.f32.mrb[75].mxu1  ;;  %v3755_v20 = vadd.f32 %v3754_v62, %v10380_v42 }
 0x89b   :  { %v3868_v31 = vadd.f32 %v3867_v11, %v10384_v25  ;;  %v10427_v5 = vpack.c.bf16 %v3753_v26, %v3749_v44  ;;  %3797 = vmatmul.mubr.bf16.gmra.mrb[92].mxu0 %v3465_v1  ;;  %3910 = vmatmul.mubr.bf16.gmra.mrb[92].mxu1 %v3465_v1 }
 0x89c   :  { %v10429_v45 = vpack.c.bf16 %v3866_v55, %v3862_v30  ;;  %v10431_v40 = vpack.c.bf16 %v3755_v20, %v3751_v14  ;;  %4215 = vmatprep.mubr.bf16.mxu0 %v11215_v37  ;;  %4258 = vmatprep.mubr.bf16.mxu1 %v11215_v37 }
 0x89d   :  { %v10433_v43 = vpack.c.bf16 %v3868_v31, %v3864_v22 }
 0x89e   :  { %v3758_v49 = vpop.f32.mrb[76].mxu0  ;;  %v3871_v36 = vpop.f32.mrb[76].mxu1 }
 0x89f   :  { %11242 = vst [vmem:[#allocation10_spill] sm:$0xff] %v10433_v43  ;;  %v3760_v53 = vpop.f32.mrb[77].mxu0  ;;  %v3873_v34 = vpop.f32.mrb[77].mxu1  ;;  %v3759_v44 = vadd.f32 %v3758_v49, %v10371_v35  ;;  %v3872_v30 = vadd.f32 %v3871_v36, %v10375_v17 }
 0x8a0   :  { %v3762_v52 = vpop.f32.mrb[78].mxu0  ;;  %v3875_v51 = vpop.f32.mrb[78].mxu1  ;;  %v3761_v1 = vadd.f32 %v3760_v53, %v10380_v42  ;;  %v3874_v14 = vadd.f32 %v3873_v34, %v10384_v25 }
 0x8a1   :  { %v3763_v26 = vadd.f32 %v3762_v52, %v10371_v35  ;;  %v3876_v55 = vadd.f32 %v3875_v51, %v10375_v17  ;;  %v3764_v62 = vpop.f32.mrb[79].mxu0  ;;  %v3877_v11 = vpop.f32.mrb[79].mxu1 }
 0x8a2   :  { %v3765_v22 = vadd.f32 %v3764_v62, %v10380_v42  ;;  %v3878_v20 = vadd.f32 %v3877_v11, %v10384_v25 }
 0x8a3   :  { %v10445_v31 = vpack.c.bf16 %v3763_v26, %v3759_v44  ;;  %v10447_v43 = vpack.c.bf16 %v3876_v55, %v3872_v30  ;;  %4216 = vmatmul.mubr.bf16.vlgmr.msra.gmra.mrb[96].mxu0 %v11215_v37  ;;  %4259 = vmatmul.mubr.bf16.vlgmr.msra.gmra.mrb[96].mxu1 %v11215_v37 }
 0x8a4   :  { %v10451_v49 = vpack.c.bf16 %v3765_v22, %v3761_v1  ;;  %v10453_v36 = vpack.c.bf16 %v3878_v20, %v3874_v14  ;;  %4538 = vmatpush1.bf16.msra.mxu0 %v10144_v24  ;;  %4581 = vmatpush1.bf16.msra.mxu1 %v10184_v56 }
 0x8a5   :  { %11243 = vst [vmem:[#allocation11_spill] sm:$0xff] %v10445_v31  ;;  %11244 = vst [vmem:[#allocation12_spill] sm:$0xff] %v10447_v43  ;;  %4539 = vmatprep.subr.bf16.mxu0 %v10191_v41  ;;  %4582 = vmatprep.subr.bf16.mxu1 %v10196_v38 }
 0x8a6   :  { %11245 = vst [vmem:[#allocation13_spill] sm:$0xff] %v10451_v49  ;;  %11246 = vst [vmem:[#allocation14_spill] sm:$0xff] %v10453_v36  ;;  %v3768_v53 = vpop.f32.mrb[80].mxu0  ;;  %v3881_v34 = vpop.f32.mrb[80].mxu1  ;;  %4569 = vmatprep.mubr.bf16.mxu0 %v11215_v37  ;;  %4612 = vmatprep.mubr.bf16.mxu1 %v11215_v37 }
 0x8a7   :  { %v3770_v52 = vpop.f32.mrb[81].mxu0  ;;  %v3883_v51 = vpop.f32.mrb[81].mxu1  ;;  %v3769_v44 = vadd.f32 %v3768_v53, %v10371_v35  ;;  %v3882_v24 = vadd.f32 %v3881_v34, %v10375_v17 }
 0x8a8   :  { %v3772_v30 = vpop.f32.mrb[82].mxu0  ;;  %v3885_v26 = vpop.f32.mrb[82].mxu1  ;;  %4540 = vmatpush1.bf16.msra.mxu0 %v10201_v46  ;;  %4583 = vmatpush1.bf16.msra.mxu1 %v10206_v60  ;;  %v3771_v14 = vadd.f32 %v3770_v52, %v10380_v42  ;;  %v3884_v22 = vadd.f32 %v3883_v51, %v10384_v25 }
 0x8a9   :  { %v3773_v55 = vadd.f32 %v3772_v30, %v10371_v35  ;;  %v3886_v62 = vadd.f32 %v3885_v26, %v10375_v17  ;;  %v3774_v11 = vpop.f32.mrb[83].mxu0  ;;  %v3887_v1 = vpop.f32.mrb[83].mxu1  ;;  %4541 = vmatprep.subr.bf16.mxu0 %v10220_v33  ;;  %4584 = vmatprep.subr.bf16.mxu1 %v10235_v58 }
 0x8aa   :  { %v3775_v20 = vadd.f32 %v3774_v11, %v10380_v42  ;;  %v3888_v53 = vadd.f32 %v3887_v1, %v10384_v25 }
 0x8ab   :  { %v10473_v36 = vpack.c.bf16 %v3773_v55, %v3769_v44  ;;  %v10475_v34 = vpack.c.bf16 %v3886_v62, %v3882_v24 }
 0x8ac   :  { %v10477_v30 = vpack.c.bf16 %v3775_v20, %v3771_v14  ;;  %v10479_v26 = vpack.c.bf16 %v3888_v53, %v3884_v22  ;;  %4542 = vmatpush1.bf16.msra.mxu0 %v10215_v54  ;;  %4585 = vmatpush1.bf16.msra.mxu1 %v10230_v57 }
 0x8ad   :  { %11247 = vst [vmem:[#allocation15_spill] sm:$0xff] %v10473_v36  ;;  %11248 = vst [vmem:[#allocation16_spill] sm:$0xff] %v10475_v34  ;;  %4543 = vmatprep.subr.bf16.mxu0 %v10225_v59  ;;  %4586 = vmatprep.subr.bf16.mxu1 %v10248_v16 }
 0x8ae   :  { %11249 = vst [vmem:[#allocation17_spill] sm:$0xff] %v10477_v30  ;;  %11250 = vst [vmem:[#allocation18_spill] sm:$0xff] %v10479_v26  ;;  %v3778_v52 = vpop.f32.mrb[84].mxu0  ;;  %v3891_v51 = vpop.f32.mrb[84].mxu1 }
 0x8af   :  { %v3780_v11 = vpop.f32.mrb[85].mxu0  ;;  %v3893_v1 = vpop.f32.mrb[85].mxu1  ;;  %v3779_v44 = vadd.f32 %v3778_v52, %v10371_v35  ;;  %v3892_v62 = vadd.f32 %v3891_v51, %v10375_v17 }
 0x8b0   :  { %v3782_v24 = vpop.f32.mrb[86].mxu0  ;;  %v3895_v55 = vpop.f32.mrb[86].mxu1  ;;  %4544 = vmatpush1.bf16.msra.mxu0 %v10242_v12  ;;  %4587 = vmatpush1.bf16.msra.mxu1 %v10260_v28  ;;  %v3781_v52 = vadd.f32 %v3780_v11, %v10380_v42  ;;  %v3894_v26 = vadd.f32 %v3893_v1, %v10384_v25 }
 0x8b1   :  { %v3783_v14 = vadd.f32 %v3782_v24, %v10371_v35  ;;  %v3896_v22 = vadd.f32 %v3895_v55, %v10375_v17  ;;  %v3784_v20 = vpop.f32.mrb[87].mxu0  ;;  %v3897_v53 = vpop.f32.mrb[87].mxu1  ;;  %4545 = vmatprep.subr.bf16.mxu0 %v10254_v7  ;;  %4588 = vmatprep.subr.bf16.mxu1 %v10284_v47 }
 0x8b2   :  { %v3785_v30 = vadd.f32 %v3784_v20, %v10380_v42  ;;  %v3898_v34 = vadd.f32 %v3897_v53, %v10384_v25 }
 0x8b3   :  { %v10497_v36 = vpack.c.bf16 %v3783_v14, %v3779_v44  ;;  %v10499_v51 = vpack.c.bf16 %v3896_v22, %v3892_v62 }
 0x8b4   :  { %v10501_v24 = vpack.c.bf16 %v3785_v30, %v3781_v52  ;;  %v10503_v55 = vpack.c.bf16 %v3898_v34, %v3894_v26  ;;  %4546 = vmatpush1.bf16.msra.mxu0 %v10267_v50  ;;  %4589 = vmatpush1.bf16.msra.mxu1 %v10279_v21 }
 0x8b5   :  { %11251 = vst [vmem:[#allocation19_spill] sm:$0xff] %v10497_v36  ;;  %11252 = vst [vmem:[#allocation20_spill] sm:$0xff] %v10499_v51  ;;  %4547 = vmatprep.subr.bf16.mxu0 %v10273_v39  ;;  %4590 = vmatprep.subr.bf16.mxu1 %v10296_v63 }
 0x8b6   :  { %11253 = vst [vmem:[#allocation21_spill] sm:$0xff] %v10501_v24  ;;  %11254 = vst [vmem:[#allocation22_spill] sm:$0xff] %v10503_v55  ;;  %v3788_v11 = vpop.f32.mrb[88].mxu0  ;;  %v3901_v1 = vpop.f32.mrb[88].mxu1 }
 0x8b7   :  { %v3790_v20 = vpop.f32.mrb[89].mxu0  ;;  %v3903_v53 = vpop.f32.mrb[89].mxu1  ;;  %v3789_v44 = vadd.f32 %v3788_v11, %v10371_v35  ;;  %v3902_v34 = vadd.f32 %v3901_v1, %v10375_v17 }
 0x8b8   :  { %v3792_v62 = vpop.f32.mrb[90].mxu0  ;;  %v3905_v14 = vpop.f32.mrb[90].mxu1  ;;  %4548 = vmatpush1.bf16.msra.mxu0 %v10291_v48  ;;  %4591 = vmatpush1.bf16.msra.mxu1 %v10308_v0  ;;  %v3791_v11 = vadd.f32 %v3790_v20, %v10380_v42  ;;  %v3904_v55 = vadd.f32 %v3903_v53, %v10384_v25 }
 0x8b9   :  { %v3793_v30 = vadd.f32 %v3792_v62, %v10371_v35  ;;  %v3906_v26 = vadd.f32 %v3905_v14, %v10375_v17  ;;  %v3794_v22 = vpop.f32.mrb[91].mxu0  ;;  %v3907_v52 = vpop.f32.mrb[91].mxu1  ;;  %4549 = vmatprep.subr.bf16.mxu0 %v10302_v18  ;;  %4592 = vmatprep.subr.bf16.mxu1 %v10332_v8 }
 0x8ba   :  { %v3795_v24 = vadd.f32 %v3794_v22, %v10380_v42  ;;  %v3908_v51 = vadd.f32 %v3907_v52, %v10384_v25 }
 0x8bb   :  { %v10521_v36 = vpack.c.bf16 %v3793_v30, %v3789_v44  ;;  %v10523_v1 = vpack.c.bf16 %v3906_v26, %v3902_v34 }
 0x8bc   :  { %v10525_v62 = vpack.c.bf16 %v3795_v24, %v3791_v11  ;;  %v10527_v14 = vpack.c.bf16 %v3908_v51, %v3904_v55  ;;  %4550 = vmatpush1.bf16.msra.mxu0 %v10315_v2  ;;  %4593 = vmatpush1.bf16.msra.mxu1 %v10327_v6 }
 0x8bd   :  { %11255 = vst [vmem:[#allocation27_spill] sm:$0xff] %v10521_v36  ;;  %11256 = vst [vmem:[#allocation28_spill] sm:$0xff] %v10523_v1  ;;  %4551 = vmatprep.subr.bf16.mxu0 %v10322_v3  ;;  %4594 = vmatprep.subr.bf16.mxu1 %v10344_v10 }
 0x8be   :  { %11257 = vst [vmem:[#allocation23_spill] sm:$0xff] %v10525_v62  ;;  %11258 = vst [vmem:[#allocation24_spill] sm:$0xff] %v10527_v14 }
 0x8c0   :  { %4552 = vmatpush1.bf16.msra.mxu0 %v10338_v4  ;;  %4595 = vmatpush1.bf16.msra.mxu1 %v10351_v19 }
 0x8c1   :  { %4933 = vmatprep.subr.bf16.mxu1 %v10179_v29 }
 0x96e   :  { %v3798_v20 = vpop.f32.mrb[92].mxu0  ;;  %v3911_v53 = vpop.f32.mrb[92].mxu1 }
 0x96f   :  { %v3800_v24 = vpop.f32.mrb[93].mxu0  ;;  %v3913_v44 = vpop.f32.mrb[93].mxu1  ;;  %v3799_v34 = vadd.f32 %v3798_v20, %v10371_v35  ;;  %v3912_v30 = vadd.f32 %v3911_v53, %v10375_v17 }
 0x970   :  { %v3802_v51 = vpop.f32.mrb[94].mxu0  ;;  %v3915_v55 = vpop.f32.mrb[94].mxu1  ;;  %v3801_v14 = vadd.f32 %v3800_v24, %v10380_v42  ;;  %v3914_v29 = vadd.f32 %v3913_v44, %v10384_v25  ;;  %v4270_v44 = vunpack.c.l.bf16 %v10399_v61 }
 0x971   :  { %v3803_v26 = vadd.f32 %v3802_v51, %v10371_v35  ;;  %v3916_v22 = vadd.f32 %v3915_v55, %v10375_v17  ;;  %v3804_v52 = vpop.f32.mrb[95].mxu0  ;;  %v3917_v11 = vpop.f32.mrb[95].mxu1  ;;  %v4269_v35 = vunpack.c.l.bf16 %v10395_v27  ;;  %v4271_v17 = vunpack.c.l.bf16 %v10397_v15  ;;  %v11263_v55 = vld [vmem:[#allocation9_spill] sm:$0xff] }
 0x972   :  { %v3805_v62 = vadd.f32 %v3804_v52, %v10380_v42  ;;  %v3918_v1 = vadd.f32 %v3917_v11, %v10384_v25  ;;  %v4272_v42 = vunpack.c.l.bf16 %v11263_v55 }
 0x973   :  { %v10544_v36 = vpack.c.bf16 %v3803_v26, %v3799_v34  ;;  %v10546_v49 = vpack.c.bf16 %v3916_v22, %v3912_v30  ;;  %v4273_v30 = vunpack.c.h.bf16 %v10395_v27 }
 0x974   :  { %v10548_v20 = vpack.c.bf16 %v3805_v62, %v3801_v14  ;;  %v10550_v53 = vpack.c.bf16 %v3918_v1, %v3914_v29  ;;  %v4275_v62 = vunpack.c.h.bf16 %v10397_v15  ;;  %v4274_v29 = vunpack.c.h.bf16 %v10399_v61 }
 0x975   :  { %11259 = vst [vmem:[#allocation25_spill] sm:$0xff] %v10544_v36  ;;  %11260 = vst [vmem:[#allocation26_spill] sm:$0xff] %v10546_v49 }
 0x976   :  { %11261 = vst [vmem:[#allocation8_spill] sm:$0xff] %v10548_v20  ;;  %11262 = vst [vmem:[#allocation29_spill] sm:$0xff] %v10550_v53  ;;  %v4217_v51 = vpop.f32.mrb[96].mxu0  ;;  %v4260_v24 = vpop.f32.mrb[96].mxu1  ;;  %v4276_v53 = vunpack.c.h.bf16 %v11263_v55 }
 0x977   :  { %v4277_v52 = vadd.f32 %v4269_v35, %v4217_v51  ;;  %v4279_v25 = vadd.f32 %v4271_v17, %v4260_v24  ;;  %v4219_v34 = vpop.f32.mrb[97].mxu0  ;;  %v4262_v26 = vpop.f32.mrb[97].mxu1 }
 0x978   :  { %v4278_v1 = vadd.f32 %v4270_v44, %v4219_v34  ;;  %v4280_v14 = vadd.f32 %v4272_v42, %v4262_v26  ;;  %v4221_v22 = vpop.f32.mrb[98].mxu0  ;;  %v4264_v11 = vpop.f32.mrb[98].mxu1 }
 0x979   :  { %v7382_v20 = vmul.f32 -1.442695, %v4277_v52  ;;  %v4281_v49 = vadd.f32 %v4273_v30, %v4221_v22  ;;  %v4283_v36 = vadd.f32 %v4275_v62, %v4264_v11  ;;  %v4223_v43 = vpop.f32.mrb[99].mxu0  ;;  %v4266_v35 = vpop.f32.mrb[99].mxu1  ;;  %v7384_v15 = vmul.f32 -1.442695, %v4279_v25 }
 0x97a   :  { %v7383_v17 = vmul.f32 -1.442695, %v4278_v1  ;;  %v4282_v51 = vadd.f32 %v4274_v29, %v4223_v43  ;;  %v4284_v24 = vadd.f32 %v4276_v53, %v4266_v35 }
 0x97b   :  { %8575 = vpow2.f32 %v7382_v20  ;;  %v7385_v27 = vmul.f32 -1.442695, %v4281_v49  ;;  %v7387_v44 = vmul.f32 -1.442695, %v4283_v36 }
 0x97c   :  { %v7386_v31 = vmul.f32 -1.442695, %v4282_v51  ;;  %8577 = vpow2.f32 %v7383_v17 }
 0x97d   :  { %8579 = vpow2.f32 %v7385_v27 }
 0x97e   :  { %8581 = vpow2.f32 %v7386_v31 }
 0x97f   :  { %8583 = vtanh.f32 %v4280_v14 }
 0x980   :  { %8585 = vpow2.f32 %v7384_v15 }
 0x981   :  { %8587 = vpow2.f32 %v7387_v44 }
 0x985   :  { %v8576_v42 = vpop.eup %8575 }
 0x986   :  { %v4303_v61 = vadd.f32 1.0, %v8576_v42  ;;  %v8578_v55 = vpop.eup %8577 }
 0x987   :  { %v8580_v52 = vpop.eup %8579  ;;  %v4304_v34 = vadd.f32 1.0, %v8578_v55 }
 0x988   :  { %8589 = vrcp.f32 %v4303_v61  ;;  %v4306_v26 = vadd.f32 1.0, %v8580_v52  ;;  %v8582_v43 = vpop.eup %8581 }
 0x989   :  { %8591 = vtanh.f32 %v4284_v24  ;;  %v4307_v49 = vadd.f32 1.0, %v8582_v43  ;;  %v8584_v20 = vpop.eup %8583 }
 0x98a   :  { %8593 = vrcp.f32 %v4304_v34  ;;  %v8586_v31 = vpop.eup %8585 }
 0x98b   :  { %8595 = vrcp.f32 %v4306_v26  ;;  %v8588_v53 = vpop.eup %8587  ;;  %v4305_v14 = vadd.f32 1.0, %v8586_v31 }
 0x98c   :  { %8597 = vrcp.f32 %v4307_v49  ;;  %v4308_v17 = vadd.f32 1.0, %v8588_v53 }
 0x98d   :  { %8599 = vrcp.f32 %v4305_v14 }
 0x992   :  { %v8590_v36 = vpop.eup %8589 }
 0x993   :  { %v8592_v25 = vpop.eup %8591  ;;  %v4328_v30 = vmul.f32 %v8590_v36, %v8584_v20 }
 0x994   :  { %v8594_v62 = vpop.eup %8593 }
 0x995   :  { %v8596_v1 = vpop.eup %8595  ;;  %v4326_v22 = vmul.f32 0.0, %v8594_v62 }
 0x996   :  { %v4329_v11 = vmul.f32 %v8596_v1, %v8592_v25  ;;  %v8598_v29 = vpop.eup %8597 }
 0x997   :  { %v10560_v35 = vadd.f32 %v4328_v30, %v4326_v22  ;;  %v4327_v51 = vmul.f32 0.0, %v8598_v29  ;;  %v8600_v27 = vpop.eup %8599 }
 0x999   :  { %8601 = vtanh.f32 %v10560_v35  ;;  %v10563_v24 = vadd.f32 %v4329_v11, %v4327_v51 }
 0x99a   :  { %8603 = vrcp.f32 %v4308_v17 }
 0x99b   :  { %8605 = vtanh.f32 %v10563_v24 }
 0x9a3   :  { %v8602_v15 = vpop.eup %8601 }
 0x9a4   :  { %v8604_v44 = vpop.eup %8603  ;;  %v4334_v61 = vmul.f32 %v8602_v15, %v8600_v27 }
 0x9a5   :  { %v8606_v42 = vpop.eup %8605 }
 0x9a6   :  { %v4335_v55 = vmul.f32 %v8606_v42, %v8604_v44 }
 0x9a8   :  { %v4336_v52 = vpack.c.bf16 %v4335_v55, %v4334_v61 }
 0x9aa   :  { %4570 = vmatmul.mubr.bf16.vlgmr.msra.gmra.mrb[100].mxu0 %v4336_v52  ;;  %4613 = vmatmul.mubr.bf16.vlgmr.msra.gmra.mrb[100].mxu1 %v4336_v52 }
 0x9ab   :  { %4934 = vmatpush1.bf16.msra.mxu1 %v10184_v56  ;;  %4922 = vmatprep.mubr.bf16.mxu0 %v11215_v37  ;;  %v10586_v56 = vld [vmem:[%s11136_s3 + $0x104] ss:$16 sps:$4 sm:$0xff]  }
 0x9ac   :  { %4935 = vmatprep.subr.bf16.mxu1 %v10196_v38  ;;  %4965 = vmatprep.mubr.bf16.mxu1 %v11215_v37  ;;  %v10591_v38 = vld [vmem:[%s11136_s3 + $0x100] ss:$16 sps:$4 sm:$0xff]  }
 0x9ad   :  { %4890 = vmatprep.subr.bf16.mxu0 %v10586_v56 }
 0x9ae   :  { %4891 = vmatpush1.bf16.msra.mxu0 %v10591_v38 }
 0x9af   :  { %4936 = vmatpush1.bf16.msra.mxu1 %v10206_v60  ;;  %4892 = vmatprep.subr.bf16.mxu0 %v10191_v41  ;;  %v4623_v41 = vunpack.c.l.bf16 %v10411_v32 }
 0x9b0   :  { %4937 = vmatprep.subr.bf16.mxu1 %v10235_v58 }
 0x9b2   :  { %4893 = vmatpush1.bf16.msra.mxu0 %v10201_v46  ;;  %v4625_v46 = vunpack.c.l.bf16 %v10413_v23 }
 0x9b3   :  { %4938 = vmatpush1.bf16.msra.mxu1 %v10230_v57  ;;  %4894 = vmatprep.subr.bf16.mxu0 %v10220_v33  ;;  %v4624_v33 = vunpack.c.l.bf16 %v10415_v13 }
 0x9b4   :  { %4939 = vmatprep.subr.bf16.mxu1 %v10248_v16 }
 0x9b6   :  { %4895 = vmatpush1.bf16.msra.mxu0 %v10215_v54 }
 0x9b7   :  { %4940 = vmatpush1.bf16.msra.mxu1 %v10260_v28  ;;  %4896 = vmatprep.subr.bf16.mxu0 %v10225_v59  ;;  %v4626_v59 = vunpack.c.l.bf16 %v10417_v9  ;;  %v4629_v28 = vunpack.c.h.bf16 %v10413_v23 }
 0x9b8   :  { %4941 = vmatprep.subr.bf16.mxu1 %v10284_v47 }
 0x9ba   :  { %4897 = vmatpush1.bf16.msra.mxu0 %v10242_v12 }
 0x9bb   :  { %4942 = vmatpush1.bf16.msra.mxu1 %v10279_v21  ;;  %4898 = vmatprep.subr.bf16.mxu0 %v10254_v7  ;;  %v4627_v7 = vunpack.c.h.bf16 %v10411_v32 }
 0x9bc   :  { %4943 = vmatprep.subr.bf16.mxu1 %v10296_v63  ;;  %v4630_v63 = vunpack.c.h.bf16 %v10417_v9 }
 0x9be   :  { %4899 = vmatpush1.bf16.msra.mxu0 %v10267_v50 }
 0x9bf   :  { %4944 = vmatpush1.bf16.msra.mxu1 %v10308_v0  ;;  %4900 = vmatprep.subr.bf16.mxu0 %v10273_v39 }
 0x9c0   :  { %4945 = vmatprep.subr.bf16.mxu1 %v10332_v8 }
 0x9c2   :  { %4901 = vmatpush1.bf16.msra.mxu0 %v10291_v48  ;;  %v4628_v48 = vunpack.c.h.bf16 %v10415_v13 }
 0x9c3   :  { %4946 = vmatpush1.bf16.msra.mxu1 %v10327_v6  ;;  %4902 = vmatprep.subr.bf16.mxu0 %v10302_v18 }
 0x9c4   :  { %4947 = vmatprep.subr.bf16.mxu1 %v10344_v10 }
 0x9c6   :  { %4903 = vmatpush1.bf16.msra.mxu0 %v10315_v2 }
 0x9c7   :  { %4948 = vmatpush1.bf16.msra.mxu1 %v10351_v19  ;;  %4904 = vmatprep.subr.bf16.mxu0 %v10322_v3 }
 0x9ca   :  { %4905 = vmatpush1.bf16.msra.mxu0 %v10338_v4 }
 0x9cb   :  { %5243 = vmatprep.subr.bf16.mxu0 %v10586_v56 }
 0xa7d   :  { %v4571_v60 = vpop.f32.mrb[100].mxu0  ;;  %v4614_v54 = vpop.f32.mrb[100].mxu1 }
 0xa7e   :  { %v4631_v57 = vadd.f32 %v4623_v41, %v4571_v60  ;;  %v4633_v58 = vadd.f32 %v4625_v46, %v4614_v54  ;;  %v4573_v12 = vpop.f32.mrb[101].mxu0  ;;  %v4616_v16 = vpop.f32.mrb[101].mxu1 }
 0xa7f   :  { %v4632_v50 = vadd.f32 %v4624_v33, %v4573_v12  ;;  %v4634_v39 = vadd.f32 %v4626_v59, %v4616_v16  ;;  %v4575_v21 = vpop.f32.mrb[102].mxu0  ;;  %v4618_v47 = vpop.f32.mrb[102].mxu1  ;;  %v10637_v33 = vld [vmem:[%s11136_s3 + $0x108] ss:$16 sps:$4 sm:$0xff]   ;;  %v10644_v59 = vld [vmem:[%s11136_s3 + $0x124] ss:$16 sps:$4 sm:$0xff]  }
 0xa80   :  { %v7452_v18 = vmul.f32 -1.442695, %v4631_v57  ;;  %v4635_v0 = vadd.f32 %v4627_v7, %v4575_v21  ;;  %v4637_v2 = vadd.f32 %v4629_v28, %v4618_v47  ;;  %v4577_v3 = vpop.f32.mrb[103].mxu0  ;;  %v4620_v6 = vpop.f32.mrb[103].mxu1  ;;  %v7454_v23 = vmul.f32 -1.442695, %v4633_v58 }
 0xa81   :  { %v7453_v8 = vmul.f32 -1.442695, %v4632_v50  ;;  %v4636_v4 = vadd.f32 %v4628_v48, %v4577_v3  ;;  %v4638_v10 = vadd.f32 %v4630_v63, %v4620_v6  ;;  %v10649_v57 = vld [vmem:[%s11136_s3 + $0x12c] ss:$16 sps:$4 sm:$0xff]   ;;  %v10654_v58 = vld [vmem:[%s11136_s3 + $0x120] ss:$16 sps:$4 sm:$0xff]  }
 0xa82   :  { %8607 = vpow2.f32 %v7452_v18  ;;  %v7455_v19 = vmul.f32 -1.442695, %v4635_v0  ;;  %v7457_v34 = vmul.f32 -1.442695, %v4637_v2  ;;  %v10659_v12 = vld [vmem:[%s11136_s3 + $0x128] ss:$16 sps:$4 sm:$0xff]  }
 0xa83   :  { %v7456_v32 = vmul.f32 -1.442695, %v4636_v4  ;;  %8609 = vpow2.f32 %v7453_v8  ;;  %v10668_v16 = vld [vmem:[%s11136_s3 + $0x144] ss:$16 sps:$4 sm:$0xff]   ;;  %v10673_v7 = vld [vmem:[%s11136_s3 + $0x14c] ss:$16 sps:$4 sm:$0xff]  }
 0xa84   :  { %8611 = vpow2.f32 %v7455_v19  ;;  %v10678_v28 = vld [vmem:[%s11136_s3 + $0x140] ss:$16 sps:$4 sm:$0xff]   ;;  %v10683_v50 = vld [vmem:[%s11136_s3 + $0x148] ss:$16 sps:$4 sm:$0xff]   ;;  %v10697_v21 = vld [vmem:[%s11136_s3 + $0x16c] ss:$16 sps:$4 sm:$0xff]  }
 0xa85   :  { %8613 = vpow2.f32 %v7456_v32  ;;  %v10702_v47 = vld [vmem:[%s11136_s3 + $0x160] ss:$16 sps:$4 sm:$0xff]   ;;  %v10707_v48 = vld [vmem:[%s11136_s3 + $0x168] ss:$16 sps:$4 sm:$0xff]   ;;  %v10721_v18 = vld [vmem:[%s11136_s3 + $0x184] ss:$16 sps:$4 sm:$0xff]  }
 0xa86   :  { %8615 = vtanh.f32 %v4634_v39  ;;  %v10692_v39 = vld [vmem:[%s11136_s3 + $0x164] ss:$16 sps:$4 sm:$0xff]   ;;  %v10716_v63 = vld [vmem:[%s11136_s3 + $0x180] ss:$16 sps:$4 sm:$0xff]   ;;  %v10726_v0 = vld [vmem:[%s11136_s3 + $0x188] ss:$16 sps:$4 sm:$0xff]  }
 0xa87   :  { %8617 = vpow2.f32 %v7454_v23  ;;  %v10731_v2 = vld [vmem:[%s11136_s3 + $0x18c] ss:$16 sps:$4 sm:$0xff]   ;;  %v10736_v3 = vld [vmem:[%s11136_s3 + $0x1a4] ss:$16 sps:$4 sm:$0xff]   ;;  %v10749_v8 = vld [vmem:[%s11136_s3 + $0x1a0] ss:$16 sps:$4 sm:$0xff]  }
 0xa88   :  { %8619 = vpow2.f32 %v7457_v34  ;;  %v10742_v6 = vld [vmem:[%s11136_s3 + $0x1ac] ss:$16 sps:$4 sm:$0xff]   ;;  %v10756_v4 = vld [vmem:[%s11136_s3 + $0x1a8] ss:$16 sps:$4 sm:$0xff]   ;;  %v10773_v32 = vld [vmem:[%s11136_s3 + $0x1c0] ss:$16 sps:$4 sm:$0xff]  }
 0xa89   :  { %v10767_v19 = vld [vmem:[%s11136_s3 + $0x1cc] ss:$16 sps:$4 sm:$0xff]   ;;  %v10780_v23 = vld [vmem:[%s11136_s3 + $0x1c8] ss:$16 sps:$4 sm:$0xff]   ;;  %v10785_v34 = vld [vmem:[%s11136_s3 + $0x1e4] ss:$16 sps:$4 sm:$0xff]  }
 0xa8c   :  { %v8608_v26 = vpop.eup %8607 }
 0xa8d   :  { %v4657_v13 = vadd.f32 1.0, %v8608_v26  ;;  %v8610_v9 = vpop.eup %8609  ;;  %v10791_v26 = vld [vmem:[%s11136_s3 + $0x1ec] ss:$16 sps:$4 sm:$0xff]  }
 0xa8e   :  { %v8612_v43 = vpop.eup %8611  ;;  %v4658_v49 = vadd.f32 1.0, %v8610_v9  ;;  %v10804_v9 = vld [vmem:[%s11136_s3 + $0x1e8] ss:$16 sps:$4 sm:$0xff]  }
 0xa8f   :  { %8621 = vrcp.f32 %v4657_v13  ;;  %v4660_v20 = vadd.f32 1.0, %v8612_v43  ;;  %v8614_v31 = vpop.eup %8613  ;;  %v10797_v13 = vld [vmem:[%s11136_s3 + $0x1e0] ss:$16 sps:$4 sm:$0xff]   ;;  %v4976_v43 = vunpack.c.l.bf16 %v10427_v5 }
 0xa90   :  { %8623 = vtanh.f32 %v4638_v10  ;;  %v4661_v53 = vadd.f32 1.0, %v8614_v31  ;;  %v8616_v36 = vpop.eup %8615  ;;  %v10761_v10 = vld [vmem:[%s11136_s3 + $0x1c4] ss:$16 sps:$4 sm:$0xff]  }
 0xa91   :  { %8625 = vrcp.f32 %v4658_v49  ;;  %v8618_v25 = vpop.eup %8617  ;;  %v4978_v49 = vunpack.c.l.bf16 %v10429_v45 }
 0xa92   :  { %8627 = vrcp.f32 %v4660_v20  ;;  %v8620_v30 = vpop.eup %8619  ;;  %v4659_v29 = vadd.f32 1.0, %v8618_v25 }
 0xa93   :  { %8629 = vrcp.f32 %v4661_v53  ;;  %v4662_v44 = vadd.f32 1.0, %v8620_v30  ;;  %v4977_v53 = vunpack.c.l.bf16 %v10431_v40 }
 0xa94   :  { %8631 = vrcp.f32 %v4659_v29 }
 0xa99   :  { %v8622_v62 = vpop.eup %8621 }
 0xa9a   :  { %v8624_v1 = vpop.eup %8623  ;;  %v4681_v14 = vmul.f32 %v8622_v62, %v8616_v36  ;;  %v11264_v36 = vld [vmem:[#allocation10_spill] sm:$0xff] }
 0xa9b   :  { %v8626_v22 = vpop.eup %8625  ;;  %v4979_v25 = vunpack.c.l.bf16 %v11264_v36 }
 0xa9c   :  { %v8628_v11 = vpop.eup %8627  ;;  %v4679_v17 = vmul.f32 %v8626_v22, %v10560_v35  ;;  %v4980_v22 = vunpack.c.h.bf16 %v10427_v5 }
 0xa9d   :  { %v4682_v51 = vmul.f32 %v8628_v11, %v8624_v1  ;;  %v8630_v27 = vpop.eup %8629  ;;  %v4982_v11 = vunpack.c.h.bf16 %v10429_v45 }
 0xa9e   :  { %v10619_v15 = vadd.f32 %v4681_v14, %v4679_v17  ;;  %v4680_v42 = vmul.f32 %v8630_v27, %v10563_v24  ;;  %v8632_v55 = vpop.eup %8631  ;;  %v10632_v24 = vld [vmem:[%s11136_s3 + $0x10c] ss:$16 sps:$4 sm:$0xff]  }
 0xa9f   :  { %5286 = vmatprep.subr.bf16.mxu1 %v10632_v24 }
 0xaa0   :  { %8633 = vtanh.f32 %v10619_v15  ;;  %v10623_v61 = vadd.f32 %v4682_v51, %v4680_v42  ;;  %v4983_v42 = vunpack.c.h.bf16 %v11264_v36 }
 0xaa1   :  { %8635 = vrcp.f32 %v4662_v44  ;;  %v4981_v44 = vunpack.c.h.bf16 %v10431_v40 }
 0xaa2   :  { %8637 = vtanh.f32 %v10623_v61 }
 0xaaa   :  { %v8634_v52 = vpop.eup %8633 }
 0xaab   :  { %v8636_v41 = vpop.eup %8635  ;;  %v4687_v35 = vmul.f32 %v8634_v52, %v8632_v55 }
 0xaac   :  { %v8638_v46 = vpop.eup %8637 }
 0xaad   :  { %v4688_v60 = vmul.f32 %v8638_v46, %v8636_v41 }
 0xaaf   :  { %v4689_v54 = vpack.c.bf16 %v4688_v60, %v4687_v35 }
 0xab1   :  { %4923 = vmatmul.mubr.bf16.vlgmr.msra.gmra.mrb[104].mxu0 %v4689_v54  ;;  %4966 = vmatmul.mubr.bf16.vlgmr.msra.gmra.mrb[104].mxu1 %v4689_v54 }
 0xab2   :  { %5244 = vmatpush1.bf16.msra.mxu0 %v10591_v38  ;;  %5275 = vmatprep.mubr.bf16.mxu0 %v11215_v37 }
 0xab3   :  { %5318 = vmatprep.mubr.bf16.mxu1 %v11215_v37  ;;  %5287 = vmatpush1.bf16.msra.mxu1 %v10637_v33 }
 0xab4   :  { %5245 = vmatprep.subr.bf16.mxu0 %v10644_v59  ;;  %5288 = vmatprep.subr.bf16.mxu1 %v10649_v57 }
 0xab6   :  { %5246 = vmatpush1.bf16.msra.mxu0 %v10654_v58 }
 0xab7   :  { %5289 = vmatpush1.bf16.msra.mxu1 %v10659_v12  ;;  %5247 = vmatprep.subr.bf16.mxu0 %v10668_v16 }
 0xab8   :  { %5290 = vmatprep.subr.bf16.mxu1 %v10673_v7 }
 0xaba   :  { %5248 = vmatpush1.bf16.msra.mxu0 %v10678_v28 }
 0xabb   :  { %5291 = vmatpush1.bf16.msra.mxu1 %v10683_v50  ;;  %5249 = vmatprep.subr.bf16.mxu0 %v10692_v39 }
 0xabc   :  { %5292 = vmatprep.subr.bf16.mxu1 %v10697_v21 }
 0xabe   :  { %5250 = vmatpush1.bf16.msra.mxu0 %v10702_v47 }
 0xabf   :  { %5293 = vmatpush1.bf16.msra.mxu1 %v10707_v48  ;;  %5251 = vmatprep.subr.bf16.mxu0 %v10721_v18 }
 0xac0   :  { %5294 = vmatprep.subr.bf16.mxu1 %v10731_v2 }
 0xac2   :  { %5252 = vmatpush1.bf16.msra.mxu0 %v10716_v63 }
 0xac3   :  { %5295 = vmatpush1.bf16.msra.mxu1 %v10726_v0  ;;  %5253 = vmatprep.subr.bf16.mxu0 %v10736_v3 }
 0xac4   :  { %5296 = vmatprep.subr.bf16.mxu1 %v10742_v6 }
 0xac6   :  { %5254 = vmatpush1.bf16.msra.mxu0 %v10749_v8 }
 0xac7   :  { %5297 = vmatpush1.bf16.msra.mxu1 %v10756_v4  ;;  %5255 = vmatprep.subr.bf16.mxu0 %v10761_v10 }
 0xac8   :  { %5298 = vmatprep.subr.bf16.mxu1 %v10767_v19 }
 0xaca   :  { %5256 = vmatpush1.bf16.msra.mxu0 %v10773_v32 }
 0xacb   :  { %5299 = vmatpush1.bf16.msra.mxu1 %v10780_v23  ;;  %5257 = vmatprep.subr.bf16.mxu0 %v10785_v34 }
 0xacc   :  { %5300 = vmatprep.subr.bf16.mxu1 %v10791_v26 }
 0xace   :  { %5258 = vmatpush1.bf16.msra.mxu0 %v10797_v13 }
 0xacf   :  { %5301 = vmatpush1.bf16.msra.mxu1 %v10804_v9  ;;  %5596 = vmatprep.subr.bf16.mxu0 %v10586_v56 }
 0xad0   :  { %5639 = vmatprep.subr.bf16.mxu1 %v10632_v24 }
 0xb84   :  { %v4924_v20 = vpop.f32.mrb[104].mxu0  ;;  %v4967_v31 = vpop.f32.mrb[104].mxu1 }
 0xb85   :  { %v4984_v30 = vadd.f32 %v4976_v43, %v4924_v20  ;;  %v4986_v62 = vadd.f32 %v4978_v49, %v4967_v31  ;;  %v4926_v1 = vpop.f32.mrb[105].mxu0  ;;  %v4969_v14 = vpop.f32.mrb[105].mxu1 }
 0xb86   :  { %v4985_v29 = vadd.f32 %v4977_v53, %v4926_v1  ;;  %v4987_v17 = vadd.f32 %v4979_v25, %v4969_v14  ;;  %v4928_v51 = vpop.f32.mrb[106].mxu0  ;;  %v4971_v27 = vpop.f32.mrb[106].mxu1 }
 0xb87   :  { %v7522_v55 = vmul.f32 -1.442695, %v4984_v30  ;;  %v4988_v52 = vadd.f32 %v4980_v22, %v4928_v51  ;;  %v4990_v41 = vadd.f32 %v4982_v11, %v4971_v27  ;;  %v4930_v46 = vpop.f32.mrb[107].mxu0  ;;  %v4973_v35 = vpop.f32.mrb[107].mxu1  ;;  %v7524_v45 = vmul.f32 -1.442695, %v4986_v62 }
 0xb88   :  { %v7523_v60 = vmul.f32 -1.442695, %v4985_v29  ;;  %v4989_v54 = vadd.f32 %v4981_v44, %v4930_v46  ;;  %v4991_v43 = vadd.f32 %v4983_v42, %v4973_v35 }
 0xb89   :  { %8639 = vpow2.f32 %v7522_v55  ;;  %v7525_v5 = vmul.f32 -1.442695, %v4988_v52  ;;  %v7527_v20 = vmul.f32 -1.442695, %v4990_v41 }
 0xb8a   :  { %v7526_v49 = vmul.f32 -1.442695, %v4989_v54  ;;  %8641 = vpow2.f32 %v7523_v60 }
 0xb8b   :  { %8643 = vpow2.f32 %v7525_v5 }
 0xb8c   :  { %8645 = vpow2.f32 %v7526_v49 }
 0xb8d   :  { %8647 = vtanh.f32 %v4987_v17 }
 0xb8e   :  { %8649 = vpow2.f32 %v7524_v45 }
 0xb8f   :  { %8651 = vpow2.f32 %v7527_v20 }
 0xb93   :  { %v8640_v31 = vpop.eup %8639 }
 0xb94   :  { %v5010_v40 = vadd.f32 1.0, %v8640_v31  ;;  %v8642_v53 = vpop.eup %8641 }
 0xb95   :  { %v8644_v36 = vpop.eup %8643  ;;  %v5011_v25 = vadd.f32 1.0, %v8642_v53  ;;  %v11266_v53 = vld [vmem:[#allocation12_spill] sm:$0xff] }
 0xb96   :  { %8653 = vrcp.f32 %v5010_v40  ;;  %v5013_v30 = vadd.f32 1.0, %v8644_v36  ;;  %v8646_v1 = vpop.eup %8645  ;;  %v5331_v36 = vunpack.c.l.bf16 %v11266_v53 }
 0xb97   :  { %8655 = vtanh.f32 %v4991_v43  ;;  %v5014_v14 = vadd.f32 1.0, %v8646_v1  ;;  %v8648_v22 = vpop.eup %8647  ;;  %v11267_v1 = vld [vmem:[#allocation13_spill] sm:$0xff] }
 0xb98   :  { %8657 = vrcp.f32 %v5011_v25  ;;  %v8650_v11 = vpop.eup %8649 }
 0xb99   :  { %8659 = vrcp.f32 %v5013_v30  ;;  %v8652_v62 = vpop.eup %8651  ;;  %v5012_v42 = vadd.f32 1.0, %v8650_v11 }
 0xb9a   :  { %8661 = vrcp.f32 %v5014_v14  ;;  %v5015_v35 = vadd.f32 1.0, %v8652_v62  ;;  %v5330_v14 = vunpack.c.l.bf16 %v11267_v1 }
 0xb9b   :  { %8663 = vrcp.f32 %v5012_v42 }
 0xba0   :  { %v8654_v29 = vpop.eup %8653 }
 0xba1   :  { %v8656_v51 = vpop.eup %8655  ;;  %v5034_v17 = vmul.f32 %v8654_v29, %v8648_v22  ;;  %v11268_v22 = vld [vmem:[#allocation14_spill] sm:$0xff] }
 0xba2   :  { %v8658_v27 = vpop.eup %8657  ;;  %v5332_v11 = vunpack.c.l.bf16 %v11268_v22 }
 0xba3   :  { %v8660_v44 = vpop.eup %8659  ;;  %v5032_v55 = vmul.f32 %v8658_v27, %v10619_v15 }
 0xba4   :  { %v5035_v52 = vmul.f32 %v8660_v44, %v8656_v51  ;;  %v8662_v41 = vpop.eup %8661 }
 0xba5   :  { %v10820_v46 = vadd.f32 %v5034_v17, %v5032_v55  ;;  %v5033_v60 = vmul.f32 %v8662_v41, %v10623_v61  ;;  %v8664_v43 = vpop.eup %8663  ;;  %v11265_v61 = vld [vmem:[#allocation11_spill] sm:$0xff]  ;;  %v5334_v41 = vunpack.c.h.bf16 %v11267_v1 }
 0xba6   :  { %v5329_v40 = vunpack.c.l.bf16 %v11265_v61  ;;  %v5333_v27 = vunpack.c.h.bf16 %v11265_v61 }
 0xba7   :  { %8665 = vtanh.f32 %v10820_v46  ;;  %v10824_v54 = vadd.f32 %v5035_v52, %v5033_v60 }
 0xba8   :  { %8667 = vrcp.f32 %v5015_v35  ;;  %v5336_v35 = vunpack.c.h.bf16 %v11268_v22 }
 0xba9   :  { %8669 = vtanh.f32 %v10824_v54 }
 0xbb1   :  { %v8666_v5 = vpop.eup %8665 }
 0xbb2   :  { %v8668_v49 = vpop.eup %8667  ;;  %v5040_v15 = vmul.f32 %v8666_v5, %v8664_v43 }
 0xbb3   :  { %v8670_v45 = vpop.eup %8669 }
 0xbb4   :  { %v5041_v20 = vmul.f32 %v8670_v45, %v8668_v49 }
 0xbb6   :  { %v5042_v31 = vpack.c.bf16 %v5041_v20, %v5040_v15 }
 0xbb8   :  { %5276 = vmatmul.mubr.bf16.vlgmr.msra.gmra.mrb[108].mxu0 %v5042_v31  ;;  %5319 = vmatmul.mubr.bf16.vlgmr.msra.gmra.mrb[108].mxu1 %v5042_v31 }
 0xbb9   :  { %5597 = vmatpush1.bf16.msra.mxu0 %v10591_v38  ;;  %5640 = vmatpush1.bf16.msra.mxu1 %v10637_v33 }
 0xbba   :  { %5598 = vmatprep.subr.bf16.mxu0 %v10644_v59  ;;  %5641 = vmatprep.subr.bf16.mxu1 %v10649_v57 }
 0xbbb   :  { %5628 = vmatprep.mubr.bf16.mxu0 %v11215_v37  ;;  %5671 = vmatprep.mubr.bf16.mxu1 %v11215_v37 }
 0xbbd   :  { %5599 = vmatpush1.bf16.msra.mxu0 %v10654_v58  ;;  %5642 = vmatpush1.bf16.msra.mxu1 %v10659_v12 }
 0xbbe   :  { %5600 = vmatprep.subr.bf16.mxu0 %v10668_v16  ;;  %5643 = vmatprep.subr.bf16.mxu1 %v10673_v7 }
 0xbc1   :  { %5601 = vmatpush1.bf16.msra.mxu0 %v10678_v28  ;;  %5644 = vmatpush1.bf16.msra.mxu1 %v10683_v50 }
 0xbc2   :  { %5602 = vmatprep.subr.bf16.mxu0 %v10692_v39  ;;  %5645 = vmatprep.subr.bf16.mxu1 %v10697_v21 }
 0xbc5   :  { %5603 = vmatpush1.bf16.msra.mxu0 %v10702_v47  ;;  %5646 = vmatpush1.bf16.msra.mxu1 %v10707_v48 }
 0xbc6   :  { %5604 = vmatprep.subr.bf16.mxu0 %v10721_v18  ;;  %5647 = vmatprep.subr.bf16.mxu1 %v10731_v2 }
 0xbc9   :  { %5605 = vmatpush1.bf16.msra.mxu0 %v10716_v63  ;;  %5648 = vmatpush1.bf16.msra.mxu1 %v10726_v0 }
 0xbca   :  { %5606 = vmatprep.subr.bf16.mxu0 %v10736_v3  ;;  %5649 = vmatprep.subr.bf16.mxu1 %v10742_v6 }
 0xbcd   :  { %5607 = vmatpush1.bf16.msra.mxu0 %v10749_v8  ;;  %5650 = vmatpush1.bf16.msra.mxu1 %v10756_v4 }
 0xbce   :  { %5608 = vmatprep.subr.bf16.mxu0 %v10761_v10  ;;  %5651 = vmatprep.subr.bf16.mxu1 %v10767_v19 }
 0xbd1   :  { %5609 = vmatpush1.bf16.msra.mxu0 %v10773_v32  ;;  %5652 = vmatpush1.bf16.msra.mxu1 %v10780_v23 }
 0xbd2   :  { %5610 = vmatprep.subr.bf16.mxu0 %v10785_v34  ;;  %5653 = vmatprep.subr.bf16.mxu1 %v10791_v26 }
 0xbd5   :  { %5611 = vmatpush1.bf16.msra.mxu0 %v10797_v13  ;;  %5654 = vmatpush1.bf16.msra.mxu1 %v10804_v9 }
 0xbd6   :  { %5949 = vmatprep.subr.bf16.mxu0 %v10586_v56  ;;  %5992 = vmatprep.subr.bf16.mxu1 %v10632_v24  ;;  %v5335_v56 = vunpack.c.h.bf16 %v11266_v53 }
 0xc8b   :  { %v5277_v25 = vpop.f32.mrb[108].mxu0  ;;  %v5320_v30 = vpop.f32.mrb[108].mxu1 }
 0xc8c   :  { %v5337_v62 = vadd.f32 %v5329_v40, %v5277_v25  ;;  %v5339_v29 = vadd.f32 %v5331_v36, %v5320_v30  ;;  %v5279_v51 = vpop.f32.mrb[109].mxu0  ;;  %v5322_v17 = vpop.f32.mrb[109].mxu1 }
 0xc8d   :  { %v5338_v44 = vadd.f32 %v5330_v14, %v5279_v51  ;;  %v5340_v42 = vadd.f32 %v5332_v11, %v5322_v17  ;;  %v5281_v55 = vpop.f32.mrb[110].mxu0  ;;  %v5324_v52 = vpop.f32.mrb[110].mxu1 }
 0xc8e   :  { %v7592_v60 = vmul.f32 -1.442695, %v5337_v62  ;;  %v5341_v43 = vadd.f32 %v5333_v27, %v5281_v55  ;;  %v5343_v5 = vadd.f32 %v5335_v56, %v5324_v52  ;;  %v5283_v49 = vpop.f32.mrb[111].mxu0  ;;  %v5326_v45 = vpop.f32.mrb[111].mxu1  ;;  %v7594_v53 = vmul.f32 -1.442695, %v5339_v29 }
 0xc8f   :  { %v7593_v15 = vmul.f32 -1.442695, %v5338_v44  ;;  %v5342_v20 = vadd.f32 %v5334_v41, %v5283_v49  ;;  %v5344_v31 = vadd.f32 %v5336_v35, %v5326_v45 }
 0xc90   :  { %8671 = vpow2.f32 %v7592_v60  ;;  %v7595_v61 = vmul.f32 -1.442695, %v5341_v43  ;;  %v7597_v36 = vmul.f32 -1.442695, %v5343_v5 }
 0xc91   :  { %v7596_v40 = vmul.f32 -1.442695, %v5342_v20  ;;  %8673 = vpow2.f32 %v7593_v15 }
 0xc92   :  { %8675 = vpow2.f32 %v7595_v61 }
 0xc93   :  { %8677 = vpow2.f32 %v7596_v40 }
 0xc94   :  { %8679 = vtanh.f32 %v5340_v42 }
 0xc95   :  { %8681 = vpow2.f32 %v7594_v53 }
 0xc96   :  { %8683 = vpow2.f32 %v7597_v36 }
 0xc9a   :  { %v8672_v25 = vpop.eup %8671 }
 0xc9b   :  { %v5363_v30 = vadd.f32 1.0, %v8672_v25  ;;  %v8674_v1 = vpop.eup %8673  ;;  %v11270_v25 = vld [vmem:[#allocation16_spill] sm:$0xff] }
 0xc9c   :  { %v8676_v14 = vpop.eup %8675  ;;  %v5364_v22 = vadd.f32 1.0, %v8674_v1 }
 0xc9d   :  { %8685 = vrcp.f32 %v5363_v30  ;;  %v5366_v11 = vadd.f32 1.0, %v8676_v14  ;;  %v8678_v62 = vpop.eup %8677  ;;  %v5684_v30 = vunpack.c.l.bf16 %v11270_v25 }
 0xc9e   :  { %8687 = vtanh.f32 %v5344_v31  ;;  %v5367_v51 = vadd.f32 1.0, %v8678_v62  ;;  %v8680_v17 = vpop.eup %8679  ;;  %v11272_v62 = vld [vmem:[#allocation18_spill] sm:$0xff] }
 0xc9f   :  { %8689 = vrcp.f32 %v5364_v22  ;;  %v8682_v27 = vpop.eup %8681  ;;  %v11271_v22 = vld [vmem:[#allocation17_spill] sm:$0xff] }
 0xca0   :  { %8691 = vrcp.f32 %v5366_v11  ;;  %v8684_v29 = vpop.eup %8683  ;;  %v5365_v41 = vadd.f32 1.0, %v8682_v27  ;;  %v5683_v11 = vunpack.c.l.bf16 %v11271_v22 }
 0xca1   :  { %8693 = vrcp.f32 %v5367_v51  ;;  %v5368_v49 = vadd.f32 1.0, %v8684_v29  ;;  %v5685_v51 = vunpack.c.l.bf16 %v11272_v62 }
 0xca2   :  { %8695 = vrcp.f32 %v5365_v41 }
 0xca7   :  { %v8686_v56 = vpop.eup %8685 }
 0xca8   :  { %v8688_v44 = vpop.eup %8687  ;;  %v5387_v42 = vmul.f32 %v8686_v56, %v8680_v17 }
 0xca9   :  { %v8690_v55 = vpop.eup %8689 }
 0xcaa   :  { %v8692_v52 = vpop.eup %8691  ;;  %v5385_v35 = vmul.f32 %v8690_v55, %v10820_v46 }
 0xcab   :  { %v5388_v60 = vmul.f32 %v8692_v52, %v8688_v44  ;;  %v8694_v43 = vpop.eup %8693 }
 0xcac   :  { %v10870_v5 = vadd.f32 %v5387_v42, %v5385_v35  ;;  %v5386_v45 = vmul.f32 %v8694_v43, %v10824_v54  ;;  %v8696_v20 = vpop.eup %8695  ;;  %v5688_v42 = vunpack.c.h.bf16 %v11270_v25  ;;  %v5687_v35 = vunpack.c.h.bf16 %v11271_v22 }
 0xcae   :  { %8697 = vtanh.f32 %v10870_v5  ;;  %v10874_v15 = vadd.f32 %v5388_v60, %v5386_v45  ;;  %v5689_v60 = vunpack.c.h.bf16 %v11272_v62 }
 0xcaf   :  { %8699 = vrcp.f32 %v5368_v49 }
 0xcb0   :  { %8701 = vtanh.f32 %v10874_v15 }
 0xcb8   :  { %v8698_v31 = vpop.eup %8697 }
 0xcb9   :  { %v8700_v61 = vpop.eup %8699  ;;  %v5393_v46 = vmul.f32 %v8698_v31, %v8696_v20 }
 0xcba   :  { %v8702_v40 = vpop.eup %8701 }
 0xcbb   :  { %v5394_v53 = vmul.f32 %v8702_v40, %v8700_v61 }
 0xcbd   :  { %v5395_v36 = vpack.c.bf16 %v5394_v53, %v5393_v46 }
 0xcbf   :  { %5629 = vmatmul.mubr.bf16.vlgmr.msra.gmra.mrb[112].mxu0 %v5395_v36  ;;  %5672 = vmatmul.mubr.bf16.vlgmr.msra.gmra.mrb[112].mxu1 %v5395_v36 }
 0xcc0   :  { %5950 = vmatpush1.bf16.msra.mxu0 %v10591_v38  ;;  %5993 = vmatpush1.bf16.msra.mxu1 %v10637_v33  ;;  %v11269_v38 = vld [vmem:[#allocation15_spill] sm:$0xff] }
 0xcc1   :  { %5951 = vmatprep.subr.bf16.mxu0 %v10644_v59  ;;  %5994 = vmatprep.subr.bf16.mxu1 %v10649_v57  ;;  %v5682_v54 = vunpack.c.l.bf16 %v11269_v38  ;;  %v5686_v44 = vunpack.c.h.bf16 %v11269_v38 }
 0xcc2   :  { %5981 = vmatprep.mubr.bf16.mxu0 %v11215_v37  ;;  %6024 = vmatprep.mubr.bf16.mxu1 %v11215_v37 }
 0xcc4   :  { %5952 = vmatpush1.bf16.msra.mxu0 %v10654_v58  ;;  %5995 = vmatpush1.bf16.msra.mxu1 %v10659_v12 }
 0xcc5   :  { %5953 = vmatprep.subr.bf16.mxu0 %v10668_v16  ;;  %5996 = vmatprep.subr.bf16.mxu1 %v10673_v7 }
 0xcc8   :  { %5954 = vmatpush1.bf16.msra.mxu0 %v10678_v28  ;;  %5997 = vmatpush1.bf16.msra.mxu1 %v10683_v50 }
 0xcc9   :  { %5955 = vmatprep.subr.bf16.mxu0 %v10692_v39  ;;  %5998 = vmatprep.subr.bf16.mxu1 %v10697_v21 }
 0xccc   :  { %5956 = vmatpush1.bf16.msra.mxu0 %v10702_v47  ;;  %5999 = vmatpush1.bf16.msra.mxu1 %v10707_v48 }
 0xccd   :  { %5957 = vmatprep.subr.bf16.mxu0 %v10721_v18  ;;  %6000 = vmatprep.subr.bf16.mxu1 %v10731_v2 }
 0xcd0   :  { %5958 = vmatpush1.bf16.msra.mxu0 %v10716_v63  ;;  %6001 = vmatpush1.bf16.msra.mxu1 %v10726_v0 }
 0xcd1   :  { %5959 = vmatprep.subr.bf16.mxu0 %v10736_v3  ;;  %6002 = vmatprep.subr.bf16.mxu1 %v10742_v6 }
 0xcd4   :  { %5960 = vmatpush1.bf16.msra.mxu0 %v10749_v8  ;;  %6003 = vmatpush1.bf16.msra.mxu1 %v10756_v4 }
 0xcd5   :  { %5961 = vmatprep.subr.bf16.mxu0 %v10761_v10  ;;  %6004 = vmatprep.subr.bf16.mxu1 %v10767_v19 }
 0xcd8   :  { %5962 = vmatpush1.bf16.msra.mxu0 %v10773_v32  ;;  %6005 = vmatpush1.bf16.msra.mxu1 %v10780_v23 }
 0xcd9   :  { %5963 = vmatprep.subr.bf16.mxu0 %v10785_v34  ;;  %6006 = vmatprep.subr.bf16.mxu1 %v10791_v26 }
 0xcdc   :  { %5964 = vmatpush1.bf16.msra.mxu0 %v10797_v13  ;;  %6007 = vmatpush1.bf16.msra.mxu1 %v10804_v9 }
 0xcdd   :  { %6345 = vmatprep.subr.bf16.mxu1 %v10632_v24 }
 0xd92   :  { %v5630_v1 = vpop.f32.mrb[112].mxu0  ;;  %v5673_v14 = vpop.f32.mrb[112].mxu1 }
 0xd93   :  { %v5690_v17 = vadd.f32 %v5682_v54, %v5630_v1  ;;  %v5692_v27 = vadd.f32 %v5684_v30, %v5673_v14  ;;  %v5632_v29 = vpop.f32.mrb[113].mxu0  ;;  %v5675_v56 = vpop.f32.mrb[113].mxu1 }
 0xd94   :  { %v5691_v55 = vadd.f32 %v5683_v11, %v5632_v29  ;;  %v5693_v24 = vadd.f32 %v5685_v51, %v5675_v56  ;;  %v5634_v52 = vpop.f32.mrb[114].mxu0  ;;  %v5677_v41 = vpop.f32.mrb[114].mxu1 }
 0xd95   :  { %v7662_v43 = vmul.f32 -1.442695, %v5690_v17  ;;  %v5694_v49 = vadd.f32 %v5686_v44, %v5634_v52  ;;  %v5696_v45 = vadd.f32 %v5688_v42, %v5677_v41  ;;  %v5636_v20 = vpop.f32.mrb[115].mxu0  ;;  %v5679_v31 = vpop.f32.mrb[115].mxu1  ;;  %v7664_v38 = vmul.f32 -1.442695, %v5692_v27 }
 0xd96   :  { %v7663_v61 = vmul.f32 -1.442695, %v5691_v55  ;;  %v5695_v40 = vadd.f32 %v5687_v35, %v5636_v20  ;;  %v5697_v46 = vadd.f32 %v5689_v60, %v5679_v31 }
 0xd97   :  { %8703 = vpow2.f32 %v7662_v43  ;;  %v7665_v53 = vmul.f32 -1.442695, %v5694_v49  ;;  %v7667_v54 = vmul.f32 -1.442695, %v5696_v45 }
 0xd98   :  { %v7666_v36 = vmul.f32 -1.442695, %v5695_v40  ;;  %8705 = vpow2.f32 %v7663_v61 }
 0xd99   :  { %8707 = vpow2.f32 %v7665_v53 }
 0xd9a   :  { %8709 = vpow2.f32 %v7666_v36 }
 0xd9b   :  { %8711 = vtanh.f32 %v5693_v24 }
 0xd9c   :  { %8713 = vpow2.f32 %v7664_v38 }
 0xd9d   :  { %8715 = vpow2.f32 %v7667_v54 }
 0xda1   :  { %v8704_v25 = vpop.eup %8703 }
 0xda2   :  { %v5716_v30 = vadd.f32 1.0, %v8704_v25  ;;  %v8706_v1 = vpop.eup %8705 }
 0xda3   :  { %v8708_v14 = vpop.eup %8707  ;;  %v5717_v22 = vadd.f32 1.0, %v8706_v1 }
 0xda4   :  { %8717 = vrcp.f32 %v5716_v30  ;;  %v5719_v11 = vadd.f32 1.0, %v8708_v14  ;;  %v8710_v62 = vpop.eup %8709 }
 0xda5   :  { %8719 = vtanh.f32 %v5697_v46  ;;  %v5720_v51 = vadd.f32 1.0, %v8710_v62  ;;  %v8712_v17 = vpop.eup %8711 }
 0xda6   :  { %8721 = vrcp.f32 %v5717_v22  ;;  %v8714_v29 = vpop.eup %8713 }
 0xda7   :  { %8723 = vrcp.f32 %v5719_v11  ;;  %v8716_v27 = vpop.eup %8715  ;;  %v5718_v52 = vadd.f32 1.0, %v8714_v29 }
 0xda8   :  { %8725 = vrcp.f32 %v5720_v51  ;;  %v5721_v49 = vadd.f32 1.0, %v8716_v27 }
 0xda9   :  { %8727 = vrcp.f32 %v5718_v52 }
 0xdae   :  { %v8718_v56 = vpop.eup %8717 }
 0xdaf   :  { %v8720_v44 = vpop.eup %8719  ;;  %v5740_v42 = vmul.f32 %v8718_v56, %v8712_v17 }
 0xdb0   :  { %v8722_v55 = vpop.eup %8721 }
 0xdb1   :  { %v8724_v24 = vpop.eup %8723  ;;  %v5738_v41 = vmul.f32 %v8722_v55, %v10870_v5 }
 0xdb2   :  { %v5741_v35 = vmul.f32 %v8724_v24, %v8720_v44  ;;  %v8726_v60 = vpop.eup %8725 }
 0xdb3   :  { %v10919_v43 = vadd.f32 %v5740_v42, %v5738_v41  ;;  %v5739_v45 = vmul.f32 %v8726_v60, %v10874_v15  ;;  %v8728_v31 = vpop.eup %8727 }
 0xdb5   :  { %8729 = vtanh.f32 %v10919_v43  ;;  %v10923_v20 = vadd.f32 %v5741_v35, %v5739_v45 }
 0xdb6   :  { %8731 = vrcp.f32 %v5721_v49 }
 0xdb7   :  { %8733 = vtanh.f32 %v10923_v20 }
 0xdbf   :  { %v8730_v61 = vpop.eup %8729 }
 0xdc0   :  { %v8732_v40 = vpop.eup %8731  ;;  %v5746_v5 = vmul.f32 %v8730_v61, %v8728_v31 }
 0xdc1   :  { %v8734_v46 = vpop.eup %8733 }
 0xdc2   :  { %v5747_v53 = vmul.f32 %v8734_v46, %v8732_v40 }
 0xdc4   :  { %v5748_v36 = vpack.c.bf16 %v5747_v53, %v5746_v5 }
 0xdc6   :  { %5982 = vmatmul.mubr.bf16.vlgmr.msra.gmra.mrb[116].mxu0 %v5748_v36  ;;  %6025 = vmatmul.mubr.bf16.vlgmr.msra.gmra.mrb[116].mxu1 %v5748_v36 }
 0xdc7   :  { %6346 = vmatpush1.bf16.msra.mxu1 %v10637_v33  ;;  %6334 = vmatprep.mubr.bf16.mxu0 %v11215_v37  ;;  %v8265_v33 = vld [vmem:[%s11136_s3 + $0x104] ss:$16 sps:$4 sm:$0xff]  }
 0xdc8   :  { %6347 = vmatprep.subr.bf16.mxu1 %v10649_v57  ;;  %6377 = vmatprep.mubr.bf16.mxu1 %v11215_v37  ;;  %v10949_v57 = vld [vmem:[%s11136_s3 + $0x100] ss:$16 sps:$4 sm:$0xff]  }
 0xdc9   :  { %6302 = vmatprep.subr.bf16.mxu0 %v8265_v33 }
 0xdca   :  { %6303 = vmatpush1.bf16.msra.mxu0 %v10949_v57 }
 0xdcb   :  { %6348 = vmatpush1.bf16.msra.mxu1 %v10659_v12  ;;  %6304 = vmatprep.subr.bf16.mxu0 %v10644_v59  ;;  %v11273_v59 = vld [vmem:[#allocation19_spill] sm:$0xff]  ;;  %v11274_v12 = vld [vmem:[#allocation20_spill] sm:$0xff] }
 0xdcc   :  { %6349 = vmatprep.subr.bf16.mxu1 %v10673_v7 }
 0xdce   :  { %6305 = vmatpush1.bf16.msra.mxu0 %v10654_v58  ;;  %v6035_v58 = vunpack.c.l.bf16 %v11273_v59 }
 0xdcf   :  { %6350 = vmatpush1.bf16.msra.mxu1 %v10683_v50  ;;  %6306 = vmatprep.subr.bf16.mxu0 %v10668_v16  ;;  %v6037_v16 = vunpack.c.l.bf16 %v11274_v12  ;;  %v11275_v50 = vld [vmem:[#allocation21_spill] sm:$0xff] }
 0xdd0   :  { %6351 = vmatprep.subr.bf16.mxu1 %v10697_v21  ;;  %v11276_v21 = vld [vmem:[#allocation22_spill] sm:$0xff] }
 0xdd2   :  { %6307 = vmatpush1.bf16.msra.mxu0 %v10678_v28 }
 0xdd3   :  { %6352 = vmatpush1.bf16.msra.mxu1 %v10707_v48  ;;  %6308 = vmatprep.subr.bf16.mxu0 %v10692_v39  ;;  %v6036_v39 = vunpack.c.l.bf16 %v11275_v50 }
 0xdd4   :  { %6353 = vmatprep.subr.bf16.mxu1 %v10731_v2  ;;  %v6039_v2 = vunpack.c.h.bf16 %v11273_v59 }
 0xdd6   :  { %6309 = vmatpush1.bf16.msra.mxu0 %v10702_v47  ;;  %v6038_v47 = vunpack.c.l.bf16 %v11276_v21 }
 0xdd7   :  { %6354 = vmatpush1.bf16.msra.mxu1 %v10726_v0  ;;  %6310 = vmatprep.subr.bf16.mxu0 %v10721_v18 }
 0xdd8   :  { %6355 = vmatprep.subr.bf16.mxu1 %v10742_v6 }
 0xdda   :  { %6311 = vmatpush1.bf16.msra.mxu0 %v10716_v63 }
 0xddb   :  { %6356 = vmatpush1.bf16.msra.mxu1 %v10756_v4  ;;  %6312 = vmatprep.subr.bf16.mxu0 %v10736_v3  ;;  %v6041_v3 = vunpack.c.h.bf16 %v11274_v12 }
 0xddc   :  { %6357 = vmatprep.subr.bf16.mxu1 %v10767_v19  ;;  %v6040_v19 = vunpack.c.h.bf16 %v11275_v50  ;;  %v8272_v50 = vld [vmem:[%s11136_s3 + $0x128] ss:$16 sps:$4 sm:$0xff]  }
 0xdde   :  { %6313 = vmatpush1.bf16.msra.mxu0 %v10749_v8 }
 0xddf   :  { %6358 = vmatpush1.bf16.msra.mxu1 %v10780_v23  ;;  %6314 = vmatprep.subr.bf16.mxu0 %v10761_v10 }
 0xde0   :  { %6359 = vmatprep.subr.bf16.mxu1 %v10791_v26 }
 0xde2   :  { %6315 = vmatpush1.bf16.msra.mxu0 %v10773_v32  ;;  %v6042_v32 = vunpack.c.h.bf16 %v11276_v21  ;;  %v8280_v21 = vld [vmem:[%s11136_s3 + $0x14c] ss:$16 sps:$4 sm:$0xff]  }
 0xde3   :  { %6360 = vmatpush1.bf16.msra.mxu1 %v10804_v9  ;;  %6316 = vmatprep.subr.bf16.mxu0 %v10785_v34 }
 0xde6   :  { %6317 = vmatpush1.bf16.msra.mxu0 %v10797_v13 }
 0xde7   :  { %6655 = vmatprep.subr.bf16.mxu0 %v8265_v33 }
 0xe99   :  { %v5983_v7 = vpop.f32.mrb[116].mxu0  ;;  %v6026_v28 = vpop.f32.mrb[116].mxu1 }
 0xe9a   :  { %v6043_v48 = vadd.f32 %v6035_v58, %v5983_v7  ;;  %v6045_v63 = vadd.f32 %v6037_v16, %v6026_v28  ;;  %v5985_v18 = vpop.f32.mrb[117].mxu0  ;;  %v6028_v0 = vpop.f32.mrb[117].mxu1  ;;  %v8266_v7 = vld [vmem:[%s11136_s3 + $0x108] ss:$16 sps:$4 sm:$0xff]   ;;  %v8271_v28 = vld [vmem:[%s11136_s3 + $0x124] ss:$16 sps:$4 sm:$0xff]  }
 0xe9b   :  { %v6044_v6 = vadd.f32 %v6036_v39, %v5985_v18  ;;  %v6046_v8 = vadd.f32 %v6038_v47, %v6028_v0  ;;  %v5987_v4 = vpop.f32.mrb[118].mxu0  ;;  %v6030_v10 = vpop.f32.mrb[118].mxu1  ;;  %v8277_v39 = vld [vmem:[%s11136_s3 + $0x144] ss:$16 sps:$4 sm:$0xff]   ;;  %v8275_v47 = vld [vmem:[%s11136_s3 + $0x140] ss:$16 sps:$4 sm:$0xff]  }
 0xe9c   :  { %v7732_v23 = vmul.f32 -1.442695, %v6043_v48  ;;  %v6047_v34 = vadd.f32 %v6039_v2, %v5987_v4  ;;  %v6049_v26 = vadd.f32 %v6041_v3, %v6030_v10  ;;  %v5989_v13 = vpop.f32.mrb[119].mxu0  ;;  %v6032_v9 = vpop.f32.mrb[119].mxu1  ;;  %v7734_v1 = vmul.f32 -1.442695, %v6045_v63 }
 0xe9d   :  { %v7733_v15 = vmul.f32 -1.442695, %v6044_v6  ;;  %v6048_v38 = vadd.f32 %v6040_v19, %v5989_v13  ;;  %v6050_v54 = vadd.f32 %v6042_v32, %v6032_v9  ;;  %v8278_v48 = vld [vmem:[%s11136_s3 + $0x148] ss:$16 sps:$4 sm:$0xff]   ;;  %v8283_v63 = vld [vmem:[%s11136_s3 + $0x164] ss:$16 sps:$4 sm:$0xff]  }
 0xe9e   :  { %8735 = vpow2.f32 %v7732_v23  ;;  %v7735_v25 = vmul.f32 -1.442695, %v6047_v34  ;;  %v7737_v14 = vmul.f32 -1.442695, %v6049_v26  ;;  %v8286_v18 = vld [vmem:[%s11136_s3 + $0x16c] ss:$16 sps:$4 sm:$0xff]  }
 0xe9f   :  { %v7736_v30 = vmul.f32 -1.442695, %v6048_v38  ;;  %8737 = vpow2.f32 %v7733_v15  ;;  %v8281_v0 = vld [vmem:[%s11136_s3 + $0x160] ss:$16 sps:$4 sm:$0xff]   ;;  %v8284_v2 = vld [vmem:[%s11136_s3 + $0x168] ss:$16 sps:$4 sm:$0xff]  }
 0xea0   :  { %8739 = vpow2.f32 %v7735_v25  ;;  %v8287_v3 = vld [vmem:[%s11136_s3 + $0x180] ss:$16 sps:$4 sm:$0xff]   ;;  %v8289_v6 = vld [vmem:[%s11136_s3 + $0x184] ss:$16 sps:$4 sm:$0xff]   ;;  %v8292_v4 = vld [vmem:[%s11136_s3 + $0x18c] ss:$16 sps:$4 sm:$0xff]  }
 0xea1   :  { %8741 = vpow2.f32 %v7736_v30  ;;  %v8295_v10 = vld [vmem:[%s11136_s3 + $0x1a4] ss:$16 sps:$4 sm:$0xff]   ;;  %v8298_v19 = vld [vmem:[%s11136_s3 + $0x1ac] ss:$16 sps:$4 sm:$0xff]   ;;  %v8293_v32 = vld [vmem:[%s11136_s3 + $0x1a0] ss:$16 sps:$4 sm:$0xff]  }
 0xea2   :  { %8743 = vtanh.f32 %v6046_v8  ;;  %v8290_v8 = vld [vmem:[%s11136_s3 + $0x188] ss:$16 sps:$4 sm:$0xff]   ;;  %v8301_v34 = vld [vmem:[%s11136_s3 + $0x1c4] ss:$16 sps:$4 sm:$0xff]   ;;  %v8304_v26 = vld [vmem:[%s11136_s3 + $0x1cc] ss:$16 sps:$4 sm:$0xff]  }
 0xea3   :  { %8745 = vpow2.f32 %v7734_v1  ;;  %v8296_v23 = vld [vmem:[%s11136_s3 + $0x1a8] ss:$16 sps:$4 sm:$0xff]   ;;  %v8299_v13 = vld [vmem:[%s11136_s3 + $0x1c0] ss:$16 sps:$4 sm:$0xff]   ;;  %v8307_v15 = vld [vmem:[%s11136_s3 + $0x1e4] ss:$16 sps:$4 sm:$0xff]  }
 0xea4   :  { %8747 = vpow2.f32 %v7737_v14  ;;  %v8302_v9 = vld [vmem:[%s11136_s3 + $0x1c8] ss:$16 sps:$4 sm:$0xff]   ;;  %v8310_v38 = vld [vmem:[%s11136_s3 + $0x1ec] ss:$16 sps:$4 sm:$0xff]  }
 0xea5   :  { %v8308_v25 = vld [vmem:[%s11136_s3 + $0x1e8] ss:$16 sps:$4 sm:$0xff]  }
 0xea6   :  { %v11277_v30 = vld [vmem:[#allocation27_spill] sm:$0xff]  ;;  %v11278_v14 = vld [vmem:[#allocation28_spill] sm:$0xff] }
 0xea7   :  { %v6388_v1 = vunpack.c.l.bf16 %v11277_v30 }
 0xea8   :  { %v8736_v22 = vpop.eup %8735 }
 0xea9   :  { %v6069_v11 = vadd.f32 1.0, %v8736_v22  ;;  %v8738_v62 = vpop.eup %8737  ;;  %v6390_v22 = vunpack.c.l.bf16 %v11278_v14 }
 0xeaa   :  { %v8740_v51 = vpop.eup %8739  ;;  %v6070_v17 = vadd.f32 1.0, %v8738_v62 }
 0xeab   :  { %8749 = vrcp.f32 %v6069_v11  ;;  %v6072_v29 = vadd.f32 1.0, %v8740_v51  ;;  %v8742_v27 = vpop.eup %8741  ;;  %v11279_v51 = vld [vmem:[#allocation23_spill] sm:$0xff] }
 0xeac   :  { %8751 = vtanh.f32 %v6050_v54  ;;  %v6073_v56 = vadd.f32 1.0, %v8742_v27  ;;  %v8744_v44 = vpop.eup %8743  ;;  %v8305_v54 = vld [vmem:[%s11136_s3 + $0x1e0] ss:$16 sps:$4 sm:$0xff]  }
 0xead   :  { %8753 = vrcp.f32 %v6070_v17  ;;  %v8746_v42 = vpop.eup %8745  ;;  %v6389_v17 = vunpack.c.l.bf16 %v11279_v51 }
 0xeae   :  { %8755 = vrcp.f32 %v6072_v29  ;;  %v8748_v55 = vpop.eup %8747  ;;  %v6071_v49 = vadd.f32 1.0, %v8746_v42  ;;  %v11280_v29 = vld [vmem:[#allocation24_spill] sm:$0xff] }
 0xeaf   :  { %8757 = vrcp.f32 %v6073_v56  ;;  %v6074_v46 = vadd.f32 1.0, %v8748_v55  ;;  %v6391_v27 = vunpack.c.l.bf16 %v11280_v29 }
 0xeb0   :  { %8759 = vrcp.f32 %v6071_v49 }
 0xeb5   :  { %v8750_v24 = vpop.eup %8749 }
 0xeb6   :  { %v8752_v52 = vpop.eup %8751  ;;  %v6093_v41 = vmul.f32 %v8750_v24, %v8744_v44  ;;  %v6392_v24 = vunpack.c.h.bf16 %v11277_v30 }
 0xeb7   :  { %v8754_v35 = vpop.eup %8753 }
 0xeb8   :  { %v8756_v60 = vpop.eup %8755  ;;  %v6091_v45 = vmul.f32 %v8754_v35, %v10919_v43 }
 0xeb9   :  { %v6094_v31 = vmul.f32 %v8756_v60, %v8752_v52  ;;  %v8758_v61 = vpop.eup %8757  ;;  %v6394_v52 = vunpack.c.h.bf16 %v11278_v14  ;;  %v8847_v14 = vmov 0.0  }
 0xeba   :  { %v10975_v40 = vadd.f32 %v6093_v41, %v6091_v45  ;;  %v6092_v5 = vmul.f32 %v8758_v61, %v10923_v20  ;;  %v8760_v36 = vpop.eup %8759  ;;  %v8268_v20 = vld [vmem:[%s11136_s3 + $0x10c] ss:$16 sps:$4 sm:$0xff]   ;;  %v6393_v45 = vunpack.c.h.bf16 %v11279_v51  ;;  %v8315_v51 = vld [vmem:[%s11139_s5 + $0x20] sm:$0xff]  }
 0xebb   :  { %6698 = vmatprep.subr.bf16.mxu1 %v8268_v20 }
 0xebc   :  { %8761 = vtanh.f32 %v10975_v40  ;;  %v10979_v53 = vadd.f32 %v6094_v31, %v6092_v5  ;;  %v6395_v31 = vunpack.c.h.bf16 %v11280_v29  ;;  %v8317_v29 = vld [vmem:[%s11139_s5 + $0x30] sm:$0xff]  }
 0xebd   :  { %8763 = vrcp.f32 %v6074_v46 }
 0xebe   :  { %8765 = vtanh.f32 %v10979_v53 }
 0xec6   :  { %v8762_v33 = vpop.eup %8761 }
 0xec7   :  { %v8764_v59 = vpop.eup %8763  ;;  %v6099_v43 = vmul.f32 %v8762_v33, %v8760_v36 }
 0xec8   :  { %v8766_v58 = vpop.eup %8765 }
 0xec9   :  { %v6100_v12 = vmul.f32 %v8766_v58, %v8764_v59 }
 0xecb   :  { %v6101_v16 = vpack.c.bf16 %v6100_v12, %v6099_v43 }
 0xecd   :  { %6335 = vmatmul.mubr.bf16.vlgmr.msra.gmra.mrb[120].mxu0 %v6101_v16  ;;  %6378 = vmatmul.mubr.bf16.vlgmr.msra.gmra.mrb[120].mxu1 %v6101_v16 }
 0xece   :  { %6656 = vmatpush1.bf16.msra.mxu0 %v10949_v57  ;;  %6687 = vmatprep.mubr.bf16.mxu0 %v11215_v37  ;;  %v8274_v57 = vld [vmem:[%s11136_s3 + $0x12c] ss:$16 sps:$4 sm:$0xff]  }
 0xecf   :  { %6730 = vmatprep.mubr.bf16.mxu1 %v11215_v37  ;;  %6699 = vmatpush1.bf16.msra.mxu1 %v8266_v7  ;;  %v8269_v37 = vld [vmem:[%s11136_s3 + $0x120] ss:$16 sps:$4 sm:$0xff]  }
 0xed0   :  { %6657 = vmatprep.subr.bf16.mxu0 %v8271_v28  ;;  %6700 = vmatprep.subr.bf16.mxu1 %v8274_v57 }
 0xed2   :  { %6658 = vmatpush1.bf16.msra.mxu0 %v8269_v37 }
 0xed3   :  { %6701 = vmatpush1.bf16.msra.mxu1 %v8272_v50  ;;  %6659 = vmatprep.subr.bf16.mxu0 %v8277_v39 }
 0xed4   :  { %6702 = vmatprep.subr.bf16.mxu1 %v8280_v21 }
 0xed6   :  { %6660 = vmatpush1.bf16.msra.mxu0 %v8275_v47 }
 0xed7   :  { %6703 = vmatpush1.bf16.msra.mxu1 %v8278_v48  ;;  %6661 = vmatprep.subr.bf16.mxu0 %v8283_v63 }
 0xed8   :  { %6704 = vmatprep.subr.bf16.mxu1 %v8286_v18 }
 0xeda   :  { %6662 = vmatpush1.bf16.msra.mxu0 %v8281_v0 }
 0xedb   :  { %6705 = vmatpush1.bf16.msra.mxu1 %v8284_v2  ;;  %6663 = vmatprep.subr.bf16.mxu0 %v8289_v6 }
 0xedc   :  { %6706 = vmatprep.subr.bf16.mxu1 %v8292_v4 }
 0xede   :  { %6664 = vmatpush1.bf16.msra.mxu0 %v8287_v3 }
 0xedf   :  { %6707 = vmatpush1.bf16.msra.mxu1 %v8290_v8  ;;  %6665 = vmatprep.subr.bf16.mxu0 %v8295_v10 }
 0xee0   :  { %6708 = vmatprep.subr.bf16.mxu1 %v8298_v19 }
 0xee2   :  { %6666 = vmatpush1.bf16.msra.mxu0 %v8293_v32 }
 0xee3   :  { %6709 = vmatpush1.bf16.msra.mxu1 %v8296_v23  ;;  %6667 = vmatprep.subr.bf16.mxu0 %v8301_v34 }
 0xee4   :  { %6710 = vmatprep.subr.bf16.mxu1 %v8304_v26 }
 0xee6   :  { %6668 = vmatpush1.bf16.msra.mxu0 %v8299_v13 }
 0xee7   :  { %6711 = vmatpush1.bf16.msra.mxu1 %v8302_v9  ;;  %6669 = vmatprep.subr.bf16.mxu0 %v8307_v15 }
 0xee8   :  { %6712 = vmatprep.subr.bf16.mxu1 %v8310_v38 }
 0xeea   :  { %6670 = vmatpush1.bf16.msra.mxu0 %v8305_v54 }
 0xeeb   :  { %6713 = vmatpush1.bf16.msra.mxu1 %v8308_v25  ;;  %7896 = vmatprep.subr.bf16.mxu0 %v8847_v14 }
 0xfa0   :  { %v6336_v11 = vpop.f32.mrb[120].mxu0  ;;  %v6379_v62 = vpop.f32.mrb[120].mxu1 }
 0xfa1   :  { %v6396_v56 = vadd.f32 %v6388_v1, %v6336_v11  ;;  %v6398_v44 = vadd.f32 %v6390_v22, %v6379_v62  ;;  %v6338_v42 = vpop.f32.mrb[121].mxu0  ;;  %v6381_v55 = vpop.f32.mrb[121].mxu1  ;;  %v8312_v22 = vld [vmem:[%s11139_s5 + $0x8] sm:$0xff]   ;;  %v8313_v11 = vld [vmem:[%s11139_s5 + $0x10] sm:$0xff]   ;;  %v8314_v62 = vld [vmem:[%s11139_s5 + $0x18] sm:$0xff]  }
 0xfa2   :  { %v6397_v41 = vadd.f32 %v6389_v17, %v6338_v42  ;;  %v6399_v35 = vadd.f32 %v6391_v27, %v6381_v55  ;;  %v6340_v60 = vpop.f32.mrb[122].mxu0  ;;  %v6383_v49 = vpop.f32.mrb[122].mxu1  ;;  %v8316_v17 = vld [vmem:[%s11139_s5 + $0x28] sm:$0xff]   ;;  %v8318_v27 = vld [vmem:[%s11139_s5 + $0x38] sm:$0xff]  }
 0xfa3   :  { %v7802_v61 = vmul.f32 -1.442695, %v6396_v56  ;;  %v6400_v46 = vadd.f32 %v6392_v24, %v6340_v60  ;;  %v6402_v5 = vadd.f32 %v6394_v52, %v6383_v49  ;;  %v6342_v36 = vpop.f32.mrb[123].mxu0  ;;  %v6385_v33 = vpop.f32.mrb[123].mxu1  ;;  %v7804_v20 = vmul.f32 -1.442695, %v6398_v44 }
 0xfa4   :  { %v7803_v59 = vmul.f32 -1.442695, %v6397_v41  ;;  %v6401_v58 = vadd.f32 %v6393_v45, %v6342_v36  ;;  %v6403_v43 = vadd.f32 %v6395_v31, %v6385_v33  ;;  %v12_v56 = vstv %s11140_s6  ;;  %v11281_v44 = vld [vmem:[#allocation25_spill] sm:$0xff]  ;;  %v11282_v55 = vld [vmem:[#allocation26_spill] sm:$0xff] }
 0xfa5   :  { %8767 = vpow2.f32 %v7802_v61  ;;  %v7805_v12 = vmul.f32 -1.442695, %v6400_v46  ;;  %v7807_v7 = vmul.f32 -1.442695, %v6402_v5  ;;  %13 = vst [vmem:[#allocation7] sm:$0x1] %v12_v56  ;;  %v6741_v42 = vunpack.c.l.bf16 %v11281_v44 }
 0xfa6   :  { %v7806_v16 = vmul.f32 -1.442695, %v6401_v58  ;;  %8769 = vpow2.f32 %v7803_v59  ;;  %v6743_v24 = vunpack.c.l.bf16 %v11282_v55  ;;  %v11284_v49 = vld [vmem:[#allocation29_spill] sm:$0xff]  ;;  %v6745_v36 = vunpack.c.h.bf16 %v11281_v44 }
 0xfa7   :  { %8771 = vpow2.f32 %v7805_v12  ;;  %v6744_v45 = vunpack.c.l.bf16 %v11284_v49  ;;  %v6747_v33 = vunpack.c.h.bf16 %v11282_v55 }
 0xfa8   :  { %8773 = vpow2.f32 %v7806_v16 }
 0xfa9   :  { %8775 = vtanh.f32 %v6399_v35  ;;  %v11283_v35 = vld [vmem:[#allocation8_spill] sm:$0xff] }
 0xfaa   :  { %8777 = vpow2.f32 %v7804_v20  ;;  %v6742_v60 = vunpack.c.l.bf16 %v11283_v35  ;;  %v6746_v16 = vunpack.c.h.bf16 %v11283_v35  ;;  %v6748_v20 = vunpack.c.h.bf16 %v11284_v49 }
 0xfab   :  { %8779 = vpow2.f32 %v7807_v7 }
 0xfaf   :  { %v8768_v28 = vpop.eup %8767 }
 0xfb0   :  { %v6422_v57 = vadd.f32 1.0, %v8768_v28  ;;  %v8770_v37 = vpop.eup %8769 }
 0xfb1   :  { %v8772_v50 = vpop.eup %8771  ;;  %v6423_v39 = vadd.f32 1.0, %v8770_v37 }
 0xfb2   :  { %8781 = vrcp.f32 %v6422_v57  ;;  %v6425_v21 = vadd.f32 1.0, %v8772_v50  ;;  %v8774_v47 = vpop.eup %8773 }
 0xfb3   :  { %8783 = vtanh.f32 %v6403_v43  ;;  %v6426_v48 = vadd.f32 1.0, %v8774_v47  ;;  %v8776_v63 = vpop.eup %8775 }
 0xfb4   :  { %8785 = vrcp.f32 %v6423_v39  ;;  %v8778_v18 = vpop.eup %8777 }
 0xfb5   :  { %8787 = vrcp.f32 %v6425_v21  ;;  %v8780_v0 = vpop.eup %8779  ;;  %v6424_v10 = vadd.f32 1.0, %v8778_v18 }
 0xfb6   :  { %8789 = vrcp.f32 %v6426_v48  ;;  %v6427_v26 = vadd.f32 1.0, %v8780_v0 }
 0xfb7   :  { %8791 = vrcp.f32 %v6424_v10 }
 0xfbc   :  { %v8782_v2 = vpop.eup %8781 }
 0xfbd   :  { %v8784_v3 = vpop.eup %8783  ;;  %v6446_v6 = vmul.f32 %v8782_v2, %v8776_v63 }
 0xfbe   :  { %v8786_v8 = vpop.eup %8785 }
 0xfbf   :  { %v8788_v4 = vpop.eup %8787  ;;  %v6444_v19 = vmul.f32 %v8786_v8, %v10975_v40 }
 0xfc0   :  { %v6447_v32 = vmul.f32 %v8788_v4, %v8784_v3  ;;  %v8790_v23 = vpop.eup %8789 }
 0xfc1   :  { %v11084_v34 = vadd.f32 %v6446_v6, %v6444_v19  ;;  %v6445_v13 = vmul.f32 %v8790_v23, %v10979_v53  ;;  %v8792_v15 = vpop.eup %8791  ;;  %v8311_v53 = vld [vmem:[%s11139_s5] sm:$0xff]  }
 0xfc3   :  { %8793 = vtanh.f32 %v11084_v34  ;;  %v11088_v9 = vadd.f32 %v6447_v32, %v6445_v13 }
 0xfc4   :  { %8795 = vrcp.f32 %v6427_v26 }
 0xfc5   :  { %8797 = vtanh.f32 %v11088_v9 }
 0xfcd   :  { %v8794_v38 = vpop.eup %8793 }
 0xfce   :  { %v8796_v54 = vpop.eup %8795  ;;  %v6452_v40 = vmul.f32 %v8794_v38, %v8792_v15 }
 0xfcf   :  { %v8798_v25 = vpop.eup %8797 }
 0xfd0   :  { %v6453_v30 = vmul.f32 %v8798_v25, %v8796_v54 }
 0xfd2   :  { %v6454_v1 = vpack.c.bf16 %v6453_v30, %v6452_v40 }
 0xfd4   :  { %6688 = vmatmul.mubr.bf16.vlgmr.msra.gmra.mrb[124].mxu0 %v6454_v1  ;;  %6731 = vmatmul.mubr.bf16.vlgmr.msra.gmra.mrb[124].mxu1 %v6454_v1 }
 0xfd5   :  { %7897 = vmatpush3.bf16.msra.mxu0 %v8311_v53  ;;  %7912 = vmatprep.mubr.msk.bf16.mxu0 %vm8848_vm0, %v8847_v14 }
 0xfd6   :  { %7898 = vmatprep.subr.bf16.mxu0 %v8847_v14 }
 0xfd9   :  { %7899 = vmatpush3.bf16.msra.mxu0 %v8312_v22 }
 0xfda   :  { %7900 = vmatprep.subr.bf16.mxu0 %v8847_v14 }
 0xfdd   :  { %7901 = vmatpush3.bf16.msra.mxu0 %v8313_v11 }
 0xfde   :  { %7902 = vmatprep.subr.bf16.mxu0 %v8847_v14 }
 0xfe1   :  { %7903 = vmatpush3.bf16.msra.mxu0 %v8314_v62 }
 0xfe2   :  { %7904 = vmatprep.subr.bf16.mxu0 %v8847_v14 }
 0xfe5   :  { %7905 = vmatpush3.bf16.msra.mxu0 %v8315_v51 }
 0xfe6   :  { %7906 = vmatprep.subr.bf16.mxu0 %v8847_v14 }
 0xfe9   :  { %7907 = vmatpush3.bf16.msra.mxu0 %v8316_v17 }
 0xfea   :  { %7908 = vmatprep.subr.bf16.mxu0 %v8847_v14 }
 0xfed   :  { %7909 = vmatpush3.bf16.msra.mxu0 %v8317_v29 }
 0xfee   :  { %7910 = vmatprep.subr.bf16.mxu0 %v8847_v14 }
 0xff1   :  { %7911 = vmatpush3.bf16.msra.mxu0 %v8318_v27 }
0x10a7   :  { %v6689_v52 = vpop.f32.mrb[124].mxu0  ;;  %v6732_v41 = vpop.f32.mrb[124].mxu1 }
0x10a8   :  { %v6749_v31 = vadd.f32 %v6741_v42, %v6689_v52  ;;  %v6751_v61 = vadd.f32 %v6743_v24, %v6732_v41  ;;  %v6691_v46 = vpop.f32.mrb[125].mxu0  ;;  %v6734_v5 = vpop.f32.mrb[125].mxu1 }
0x10a9   :  { %v6750_v59 = vadd.f32 %v6742_v60, %v6691_v46  ;;  %v6752_v58 = vadd.f32 %v6744_v45, %v6734_v5  ;;  %v6693_v43 = vpop.f32.mrb[126].mxu0  ;;  %v6736_v12 = vpop.f32.mrb[126].mxu1 }
0x10aa   :  { %v7872_v7 = vmul.f32 -1.442695, %v6749_v31  ;;  %v6753_v28 = vadd.f32 %v6745_v36, %v6693_v43  ;;  %v6755_v57 = vadd.f32 %v6747_v33, %v6736_v12  ;;  %v6695_v37 = vpop.f32.mrb[127].mxu0  ;;  %v6738_v50 = vpop.f32.mrb[127].mxu1  ;;  %v7874_v18 = vmul.f32 -1.442695, %v6751_v61 }
0x10ab   :  { %v7873_v39 = vmul.f32 -1.442695, %v6750_v59  ;;  %v6754_v21 = vadd.f32 %v6746_v16, %v6695_v37  ;;  %v6756_v47 = vadd.f32 %v6748_v20, %v6738_v50 }
0x10ac   :  { %8799 = vpow2.f32 %v7872_v7  ;;  %v7875_v48 = vmul.f32 -1.442695, %v6753_v28  ;;  %v7877_v0 = vmul.f32 -1.442695, %v6755_v57 }
0x10ad   :  { %v7876_v63 = vmul.f32 -1.442695, %v6754_v21  ;;  %8801 = vpow2.f32 %v7873_v39 }
0x10ae   :  { %8803 = vpow2.f32 %v7875_v48 }
0x10af   :  { %8805 = vpow2.f32 %v7876_v63 }
0x10b0   :  { %8807 = vtanh.f32 %v6752_v58 }
0x10b1   :  { %8809 = vpow2.f32 %v7874_v18 }
0x10b2   :  { %8811 = vpow2.f32 %v7877_v0 }
0x10b6   :  { %v8800_v2 = vpop.eup %8799 }
0x10b7   :  { %v6775_v3 = vadd.f32 1.0, %v8800_v2  ;;  %v8802_v6 = vpop.eup %8801 }
0x10b8   :  { %v8804_v8 = vpop.eup %8803  ;;  %v6776_v4 = vadd.f32 1.0, %v8802_v6 }
0x10b9   :  { %8813 = vrcp.f32 %v6775_v3  ;;  %v6778_v10 = vadd.f32 1.0, %v8804_v8  ;;  %v8806_v19 = vpop.eup %8805 }
0x10ba   :  { %8815 = vtanh.f32 %v6756_v47  ;;  %v6779_v32 = vadd.f32 1.0, %v8806_v19  ;;  %v8808_v23 = vpop.eup %8807 }
0x10bb   :  { %8817 = vrcp.f32 %v6776_v4  ;;  %v8810_v26 = vpop.eup %8809 }
0x10bc   :  { %8819 = vrcp.f32 %v6778_v10  ;;  %v8812_v13 = vpop.eup %8811  ;;  %v6777_v40 = vadd.f32 1.0, %v8810_v26 }
0x10bd   :  { %8821 = vrcp.f32 %v6779_v32  ;;  %v6780_v11 = vadd.f32 1.0, %v8812_v13 }
0x10be   :  { %8823 = vrcp.f32 %v6777_v40 }
0x10c3   :  { %v8814_v15 = vpop.eup %8813 }
0x10c4   :  { %v8816_v38 = vpop.eup %8815  ;;  %v6799_v54 = vmul.f32 %v8814_v15, %v8808_v23 }
0x10c5   :  { %v8818_v25 = vpop.eup %8817 }
0x10c6   :  { %v8820_v30 = vpop.eup %8819  ;;  %v6797_v1 = vmul.f32 %v8818_v25, %v11084_v34  ;;  %v7878_v34 = vld [vmem:[#allocation7] ss:$0 sm:$0xff] }
0x10c7   :  { %v6800_v53 = vmul.f32 %v8820_v30, %v8816_v38  ;;  %v8822_v14 = vpop.eup %8821 }
0x10c8   :  { %v6801_v22 = vadd.f32 %v6799_v54, %v6797_v1  ;;  %v6798_v62 = vmul.f32 %v8822_v14, %v11088_v9  ;;  %v8824_v17 = vpop.eup %8823 }
0x10ca   :  { %8825 = vtanh.f32 %v6801_v22  ;;  %v6802_v51 = vadd.f32 %v6800_v53, %v6798_v62 }
0x10cb   :  { %8827 = vrcp.f32 %v6780_v11 }
0x10cc   :  { %8829 = vtanh.f32 %v6802_v51 }
0x10d4   :  { %v8826_v29 = vpop.eup %8825 }
0x10d5   :  { %v6805_v27 = vmul.f32 %v8826_v29, %v8824_v17  ;;  %v8828_v56 = vpop.eup %8827 }
0x10d6   :  { %v8830_v44 = vpop.eup %8829 }
0x10d7   :  { %v6806_v42 = vmul.f32 %v8830_v44, %v8828_v56 }
0x10d9   :  { %v6807_v55 = vpack.c.bf16 %v6806_v42, %v6805_v27 }
0x10db   :  { %7913 = vmatmul.mubr.bf16.vlgmr.msra.gmra.mrb[128].mxu0 %v6807_v55 }
0x11ae   :  { %v6920_v24 = vpop.f32.mrb[128].mxu0 }
0x11af   :  { %v6921_v52 = vadd.f32 %v7878_v34, %v6920_v24  ;;  %v7914_v41 = vpop.f32.mrb[129].mxu0 }
0x11b0   :  { %v6923_v35 = vpop.f32.mrb[130].mxu0 }
0x11b1   :  { %6928 = vst.msk [vmem:[%s11141_s7] sm:$0xff] %vm6927_vm1, %v6921_v52  ;;  %v6924_v9 = vadd.f32 %v7878_v34, %v6923_v35  ;;  %v7915_v60 = vpop.f32.mrb[131].mxu0 }
0x11b3   :  { %6929 = vst.msk [vmem:[%s11141_s7 + $0x8] sm:$0xff] %vm6927_vm1, %v6924_v9 }

</bundles_post_ra>
